<compile_context>
chip_gen: v5e
topology: v5e:2x2
jax: 0.10.0
libtpu: 0.0.40
codegen_flags: <defaults>
</compile_context>

<pallas_src>
import functools
import math

import jax
import jax.numpy as jnp
from jax.experimental import pallas as pl
from jax.experimental.pallas import tpu as pltpu

CONFIG = {
    "input_size": 40,
    "feedforward_size": 128,
    "nhead": 8,
    "LSTM_hidden_size": 64,
    "output_size": 128,
    "dropout": 0.2,
}
LN_EPS = 1e-5
NEG_INF = -1e30

# Whole-array-in-VMEM block spec helper.
VMEM = functools.partial(pl.BlockSpec, memory_space=pltpu.MemorySpace.VMEM)


def _round_up(x, mult):
    return (x + mult - 1) // mult * mult


def _layer_norm(v, g, b):
    mu = jnp.mean(v, axis=-1, keepdims=True)
    var = jnp.mean(jnp.square(v - mu), axis=-1, keepdims=True)
    return (v - mu) * jax.lax.rsqrt(var + LN_EPS) * g + b


# ----------------------------------------------------------------------------
# Fused kernel
# ----------------------------------------------------------------------------
def _fused_forward_kernel(x_ref, pre_ref, h0_ref, c0_ref, amask_ref, hmask_ref,
                          rep_ref, rept_ref, w_ref, b_ref,
                          out_ref, hc_ref, *,
                          wmap, bmap, seq, batch, nhead, head_dim, hidden, idx):
    d = nhead * head_dim

    def W(name):
        r0, nr, nc = wmap[name]                 # all offsets multiples of 16
        return w_ref[r0:r0 + nr, 0:nc]          # bf16, lane-aligned width

    def bias(name):
        r, nc = bmap[name]
        return b_ref[r:r + 1, 0:nc]             # (1, nc) f32 row

    def mm(a, wname, bname=None):
        # bf16 operands, f32 accumulation on the MXU; single fused bias add.
        y = jnp.dot(a.astype(jnp.bfloat16), W(wname),
                    preferred_element_type=jnp.float32)
        return y if bname is None else y + bias(bname)

    def encoder_layer(x, l):
        # x: (n, d).  qkv: (n, 3d).  Replicate rows per head with one constant
        # matmul: qkv_r[h*n + i, :] = qkv[i, :]   -> (m, 3d), m = nhead*n.
        qkv = mm(x, f"w_in{l}", f"b_in{l}")
        qkv_r = jnp.dot(rep_ref[...], qkv.astype(jnp.bfloat16),
                        preferred_element_type=jnp.float32)
        q = qkv_r[:, :d]                                   # lane-aligned slices
        k = qkv_r[:, d:2 * d] * hmask_ref[...]             # keep only own head's dims
        v = qkv_r[:, 2 * d:] * hmask_ref[...]

        # Per-head scores on the diagonal blocks of one (m, m) matmul;
        # invalid (cross-block / cross-batch) entries killed by additive mask.
        scores = jax.lax.dot_general(
            q.astype(jnp.bfloat16), k.astype(jnp.bfloat16),
            (((1,), (1,)), ((), ())),
            preferred_element_type=jnp.float32)            # (m, m)
        scores = scores + amask_ref[...]
        scores = scores - jnp.max(scores, axis=-1, keepdims=True)
        p = jnp.exp(scores)
        p = p * pl.reciprocal(jnp.sum(p, axis=-1, keepdims=True), approx=True)

        ctx = jnp.dot(p.astype(jnp.bfloat16), v.astype(jnp.bfloat16),
                      preferred_element_type=jnp.float32)  # (m, d), head-masked
        # Fold head blocks back to (n, d) with one constant matmul (per (i, c)
        # exactly one of the nhead stacked rows is nonzero).
        attn = jnp.dot(rept_ref[...], ctx.astype(jnp.bfloat16),
                       preferred_element_type=jnp.float32)  # (n, d)

        attn = mm(attn, f"w_out{l}", f"b_out{l}")
        x1 = _layer_norm(x + attn, bias(f"ln1_g{l}"), bias(f"ln1_b{l}"))
        ff = jnp.maximum(mm(x1, f"w_ff1{l}", f"b_ff1{l}"), 0.0)
        ff = mm(ff, f"w_ff2{l}", f"b_ff2{l}")
        return _layer_norm(x1 + ff, bias(f"ln2_g{l}"), bias(f"ln2_b{l}"))

    # Per-timestep feedforward == one batched linear over all S*B rows
    # (row ordering = s*batch + b, a free contiguous reshape of (S, B, din)).
    h_enc = mm(x_ref[...], "ff_w", "ff_b")                 # (n, d)
    h_enc = encoder_layer(h_enc, 0)
    h_enc = encoder_layer(h_enc, 1)

    # Decode position idx (static): rows [idx*batch, idx*batch + batch).
    sel = h_enc[idx * batch:(idx + 1) * batch, :]          # (B, d)
    e = mm(pre_ref[...], "emb_w", "emb_b")                 # (B, d)

    # LSTM cell, PyTorch gate order (i, f, g, o); lstm_b = b_ih + b_hh.
    gates = (mm(sel, "lstm_wx") + mm(e, "lstm_we")
             + mm(h0_ref[...], "lstm_whh") + bias("lstm_b"))   # (B, 4H)

    if_act = jax.nn.sigmoid(gates[:, :2 * hidden])         # dense (i, f) half
    go = gates[:, 2 * hidden:]                             # dense (g, o) half
    is_g = jnp.broadcast_to(bias("go_sel") > 0.5, go.shape)
    go_act = jnp.where(is_g, jnp.tanh(go), jax.nn.sigmoid(go))
    i_g = if_act[:, :hidden]
    f_g = if_act[:, hidden:]
    g_g = go_act[:, :hidden]
    o_g = go_act[:, hidden:]
    c_new = f_g * c0_ref[...] + i_g * g_g
    h_new = o_g * jnp.tanh(c_new)
    hc_ref[...] = jnp.concatenate([h_new, c_new], axis=1)  # one dense store

    # conv1d(k=1) -> relu -> conv1d(k=1) -> softmax over channels.
    z = jnp.maximum(mm(h_new, "c1_w", "c1_b"), 0.0)
    y = mm(z, "c2_w", "c2_b")
    y = y - jnp.max(y, axis=-1, keepdims=True)
    ey = jnp.exp(y)
    out_ref[...] = ey / jnp.sum(ey, axis=-1, keepdims=True)   # exact recip here


# ----------------------------------------------------------------------------
# Parameters
# ----------------------------------------------------------------------------
def init_params(key, cfg=CONFIG):
    d = cfg["feedforward_size"]
    din = cfg["input_size"]
    hl = cfg["LSTM_hidden_size"]
    dout = cfg["output_size"]

    keys = iter(jax.random.split(key, 64))

    def dense(shape, scale=None):
        fan_in = shape[0]
        s = scale if scale is not None else 1.0 / math.sqrt(fan_in)
        return s * jax.random.normal(next(keys), shape, dtype=jnp.float32)

    params = {
        "ff_w": dense((din, d)),
        "ff_b": dense((d,), 0.02),
        "emb_w": dense((dout, d)),
        "emb_b": dense((d,), 0.02),
        "lstm_wih": dense((2 * d, 4 * hl)),
        "lstm_whh": dense((hl, 4 * hl)),
        "lstm_b": dense((4 * hl,), 0.02),     # = b_ih + b_hh when porting
        "c1_w": dense((hl, dout)),
        "c1_b": dense((dout,), 0.02),
        "c2_w": dense((dout, dout)),
        "c2_b": dense((dout,), 0.02),
    }
    layers = []
    for _ in range(2):
        layers.append({
            "w_in": dense((d, 3 * d)),
            "b_in": dense((3 * d,), 0.02),
            "w_out": dense((d, d)),
            "b_out": dense((d,), 0.02),
            "ln1_g": 1.0 + 0.1 * jax.random.normal(next(keys), (d,), jnp.float32),
            "ln1_b": dense((d,), 0.02),
            "w_ff1": dense((d, d)),
            "b_ff1": dense((d,), 0.02),
            "w_ff2": dense((d, d)),
            "b_ff2": dense((d,), 0.02),
            "ln2_g": 1.0 + 0.1 * jax.random.normal(next(keys), (d,), jnp.float32),
            "ln2_b": dense((d,), 0.02),
        })
    params["encoder_layers"] = layers
    return params


def prepare_fused_params(params, seq, batch, cfg=CONFIG):
    """Pack weights into 2 slabs + 4 small attention constants."""
    d = cfg["feedforward_size"]
    nhead = cfg["nhead"]
    hd = d // nhead
    hl = cfg["LSTM_hidden_size"]
    din = cfg["input_size"]
    din_p = _round_up(din, 16)
    n = seq * batch
    m = nhead * n
    scale = 1.0 / math.sqrt(hd)
    width = 3 * d

    # --- bf16 matmul-weight slab (rows padded to 16, stacked) ---------------
    w_entries = []

    def add_w(name, arr):
        arr = jnp.asarray(arr, jnp.float32)
        rows = _round_up(arr.shape[0], 16)
        if rows != arr.shape[0]:
            arr = jnp.pad(arr, ((0, rows - arr.shape[0]), (0, 0)))
        w_entries.append((name, arr))

    add_w("ff_w", params["ff_w"])                       # padded to din_p rows
    for l, lp in enumerate(params["encoder_layers"]):
        add_w(f"w_in{l}", lp["w_in"].at[:, :d].multiply(scale))  # fold 1/sqrt(hd)
        add_w(f"w_out{l}", lp["w_out"])
        add_w(f"w_ff1{l}", lp["w_ff1"])
        add_w(f"w_ff2{l}", lp["w_ff2"])
    add_w("emb_w", params["emb_w"])
    add_w("lstm_wx", params["lstm_wih"][:d])
    add_w("lstm_we", params["lstm_wih"][d:])
    add_w("lstm_whh", params["lstm_whh"])
    add_w("c1_w", params["c1_w"])
    add_w("c2_w", params["c2_w"])

    wmap, off = {}, 0
    for name, arr in w_entries:
        wmap[name] = (off, arr.shape[0], arr.shape[1])
        off += arr.shape[0]
    w_slab = jnp.zeros((_round_up(off, 16), width), jnp.float32)
    for name, arr in w_entries:
        r0, nr, nc = wmap[name]
        w_slab = w_slab.at[r0:r0 + nr, :nc].set(arr)
    w_slab = w_slab.astype(jnp.bfloat16)

    # --- f32 bias / LN / selector slab (one row per vector) -----------------
    b_entries = [("ff_b", params["ff_b"])]
    for l, lp in enumerate(params["encoder_layers"]):
        b_entries += [
            (f"b_in{l}", lp["b_in"].at[:d].multiply(scale)),
            (f"b_out{l}", lp["b_out"]),
            (f"ln1_g{l}", lp["ln1_g"]), (f"ln1_b{l}", lp["ln1_b"]),
            (f"b_ff1{l}", lp["b_ff1"]), (f"b_ff2{l}", lp["b_ff2"]),
            (f"ln2_g{l}", lp["ln2_g"]), (f"ln2_b{l}", lp["ln2_b"]),
        ]
    b_entries += [
        ("emb_b", params["emb_b"]), ("lstm_b", params["lstm_b"]),
        ("c1_b", params["c1_b"]), ("c2_b", params["c2_b"]),
        ("go_sel", jnp.concatenate([jnp.ones((hl,), jnp.float32),
                                    jnp.zeros((hl,), jnp.float32)])),
    ]
    bmap = {}
    b_slab = jnp.zeros((_round_up(len(b_entries), 8), width), jnp.float32)
    for i, (name, vec) in enumerate(b_entries):
        vec = jnp.asarray(vec, jnp.float32)
        bmap[name] = (i, vec.shape[0])
        b_slab = b_slab.at[i, :vec.shape[0]].set(vec)

    # --- attention constants (precomputed host-side) ------------------------
    r = jnp.arange(m)
    same_block = (r[:, None] // n) == (r[None, :] // n)        # same head block
    same_batch = (r[:, None] % batch) == (r[None, :] % batch)  # same batch elem
    amask = jnp.where(same_block & same_batch, 0.0, NEG_INF).astype(jnp.float32)
    hmask = ((r // n)[:, None] == (jnp.arange(d) // hd)[None, :]
             ).astype(jnp.float32)                              # (m, d) {0,1}
    rep = ((r[:, None] % n) == jnp.arange(n)[None, :]).astype(jnp.bfloat16)
    rept = jnp.transpose(rep).astype(jnp.bfloat16)              # (n, m)

    return {
        "w_slab": w_slab, "b_slab": b_slab, "wmap": wmap, "bmap": bmap,
        "amask": amask, "hmask": hmask, "rep": rep, "rept": rept,
        "din_padded": din_p, "seq": seq, "batch": batch,
    }


# ----------------------------------------------------------------------------
# Model wrapper (single pallas_call)
# ----------------------------------------------------------------------------
def transformer_lstm_forward(packed, x, idx, pre_output, memory, cfg=CONFIG):
    """x: (S, B, input_size); pre_output: (B, output_size); memory: (h, c)."""
    s, b, din = x.shape
    assert s == packed["seq"] and b == packed["batch"]
    d = cfg["feedforward_size"]
    nhead = cfg["nhead"]
    hl = cfg["LSTM_hidden_size"]
    dout = cfg["output_size"]
    h0, c0 = memory

    # Free, contiguous reshape (row = s*B + b); pad contraction dim to 16.
    x2 = x.reshape(s * b, din)
    pad = packed["din_padded"] - din
    if pad:
        x2 = jnp.pad(x2, ((0, 0), (0, pad)))

    kern = functools.partial(
        _fused_forward_kernel,
        wmap=packed["wmap"], bmap=packed["bmap"],
        seq=s, batch=b, nhead=nhead, head_dim=d // nhead,
        hidden=hl, idx=int(idx))

    out, hc = pl.pallas_call(
        kern,
        out_shape=(
            jax.ShapeDtypeStruct((b, dout), jnp.float32),
            jax.ShapeDtypeStruct((b, 2 * hl), jnp.float32),
        ),
        in_specs=[VMEM()] * 10,
        out_specs=(VMEM(), VMEM()),
    )(x2, pre_output, h0, c0, packed["amask"], packed["hmask"],
      packed["rep"], packed["rept"], packed["w_slab"], packed["b_slab"])

    return out, (hc[:, :hl], hc[:, hl:])


# ----------------------------------------------------------------------------
if __name__ == "__main__":
    cfg = CONFIG
    S, B = 8, 2
    key = jax.random.PRNGKey(0)
    k_param, k_x, k_prev, k_h, k_c = jax.random.split(key, 5)

    params = init_params(k_param, cfg)
    packed = prepare_fused_params(params, seq=S, batch=B, cfg=cfg)

    x = jax.random.normal(k_x, (S, B, cfg["input_size"]), dtype=jnp.float32)
    pre_output = jax.random.normal(k_prev, (B, cfg["output_size"]), jnp.float32)
    h0 = jax.random.normal(k_h, (B, cfg["LSTM_hidden_size"]), jnp.float32)
    c0 = jax.random.normal(k_c, (B, cfg["LSTM_hidden_size"]), jnp.float32)
    idx = 3  # static decode position

    out, (h1, c1_state) = transformer_lstm_forward(
        packed, x, idx, pre_output, (h0, c0), cfg)
    jax.block_until_ready((out, h1, c1_state))

    assert out.shape == (B, cfg["output_size"])
    assert h1.shape == (B, cfg["LSTM_hidden_size"])
    assert c1_state.shape == (B, cfg["LSTM_hidden_size"])
    assert bool(jnp.all(jnp.isfinite(out)))
    assert bool(jnp.all(jnp.isfinite(h1))) and bool(jnp.all(jnp.isfinite(c1_state)))
    assert bool(jnp.allclose(jnp.sum(out, axis=1), 1.0, atol=1e-4))
    print("KERNEL_OK")
</pallas_src>

<mosaic_0001>
module attributes {stable_mosaic.version = 11 : i64} {
  func.func @_fused_forward_kernel(%arg0: memref<16x48xf32, #tpu.memory_space<vmem>>, %arg1: memref<2x128xf32, #tpu.memory_space<vmem>>, %arg2: memref<2x64xf32, #tpu.memory_space<vmem>>, %arg3: memref<2x64xf32, #tpu.memory_space<vmem>>, %arg4: memref<128x128xf32, #tpu.memory_space<vmem>>, %arg5: memref<128x128xf32, #tpu.memory_space<vmem>>, %arg6: memref<128x16xbf16, #tpu.memory_space<vmem>>, %arg7: memref<16x128xbf16, #tpu.memory_space<vmem>>, %arg8: memref<1712x384xbf16, #tpu.memory_space<vmem>>, %arg9: memref<24x384xf32, #tpu.memory_space<vmem>>, %arg10: memref<2x128xf32, #tpu.memory_space<vmem>>, %arg11: memref<2x128xf32, #tpu.memory_space<vmem>>) attributes {dimension_semantics = [], scalar_prefetch = 0 : i64, scratch_operands = 0 : i64, tpu.core_type = #tpu.core_type<tc>} {
    %c0 = arith.constant 0 : index
    %c0_0 = arith.constant 0 : index
    %0 = vector.load %arg0[%c0, %c0_0] : memref<16x48xf32, #tpu.memory_space<vmem>>, vector<16x48xf32>
    %1 = arith.truncf %0 : vector<16x48xf32> to vector<16x48xbf16>
    %c0_1 = arith.constant 0 : index
    %c0_2 = arith.constant 0 : index
    %2 = vector.load %arg8[%c0_1, %c0_2] : memref<1712x384xbf16, #tpu.memory_space<vmem>>, vector<48x128xbf16>
    %cst = arith.constant dense<0.000000e+00> : vector<16x128xf32>
    %3 = tpu.matmul %1, %2, %cst {dimension_numbers = #tpu.dot_dimension_numbers<[1], [0], [0], [1], [0, 0, 1, 1], [], []>} : vector<16x48xbf16>, vector<48x128xbf16>, vector<16x128xf32> -> vector<16x128xf32>
    %c0_3 = arith.constant 0 : index
    %c0_4 = arith.constant 0 : index
    %4 = vector.load %arg9[%c0_3, %c0_4] : memref<24x384xf32, #tpu.memory_space<vmem>>, vector<1x128xf32>
    %5 = vector.broadcast %4 : vector<1x128xf32> to vector<16x128xf32>
    %6 = arith.addf %3, %5 : vector<16x128xf32>
    %7 = arith.truncf %6 : vector<16x128xf32> to vector<16x128xbf16>
    %c48 = arith.constant 48 : index
    %c0_5 = arith.constant 0 : index
    %8 = vector.load %arg8[%c48, %c0_5] : memref<1712x384xbf16, #tpu.memory_space<vmem>>, vector<128x384xbf16>
    %cst_6 = arith.constant dense<0.000000e+00> : vector<16x384xf32>
    %9 = tpu.matmul %7, %8, %cst_6 {dimension_numbers = #tpu.dot_dimension_numbers<[1], [0], [0], [1], [0, 0, 1, 1], [], []>} : vector<16x128xbf16>, vector<128x384xbf16>, vector<16x384xf32> -> vector<16x384xf32>
    %c1 = arith.constant 1 : index
    %c0_7 = arith.constant 0 : index
    %10 = vector.load %arg9[%c1, %c0_7] : memref<24x384xf32, #tpu.memory_space<vmem>>, vector<1x384xf32>
    %11 = vector.broadcast %10 : vector<1x384xf32> to vector<16x384xf32>
    %12 = arith.addf %9, %11 : vector<16x384xf32>
    %c0_8 = arith.constant 0 : index
    %c0_9 = arith.constant 0 : index
    %13 = vector.load %arg6[%c0_8, %c0_9] : memref<128x16xbf16, #tpu.memory_space<vmem>>, vector<128x16xbf16>
    %14 = arith.truncf %12 : vector<16x384xf32> to vector<16x384xbf16>
    %cst_10 = arith.constant dense<0.000000e+00> : vector<128x384xf32>
    %15 = tpu.matmul %13, %14, %cst_10 {dimension_numbers = #tpu.dot_dimension_numbers<[1], [0], [0], [1], [0, 0, 1, 1], [], []>} : vector<128x16xbf16>, vector<16x384xbf16>, vector<128x384xf32> -> vector<128x384xf32>
    %16 = vector.extract_strided_slice %15 {offsets = [0, 0], sizes = [128, 128], strides = [1, 1]} : vector<128x384xf32> to vector<128x128xf32>
    %17 = vector.extract_strided_slice %15 {offsets = [0, 128], sizes = [128, 128], strides = [1, 1]} : vector<128x384xf32> to vector<128x128xf32>
    %c0_11 = arith.constant 0 : index
    %c0_12 = arith.constant 0 : index
    %18 = vector.load %arg5[%c0_11, %c0_12] : memref<128x128xf32, #tpu.memory_space<vmem>>, vector<128x128xf32>
    %19 = arith.mulf %17, %18 : vector<128x128xf32>
    %20 = vector.extract_strided_slice %15 {offsets = [0, 256], sizes = [128, 128], strides = [1, 1]} : vector<128x384xf32> to vector<128x128xf32>
    %c0_13 = arith.constant 0 : index
    %c0_14 = arith.constant 0 : index
    %21 = vector.load %arg5[%c0_13, %c0_14] : memref<128x128xf32, #tpu.memory_space<vmem>>, vector<128x128xf32>
    %22 = arith.mulf %20, %21 : vector<128x128xf32>
    %23 = arith.truncf %16 : vector<128x128xf32> to vector<128x128xbf16>
    %24 = arith.truncf %19 : vector<128x128xf32> to vector<128x128xbf16>
    %cst_15 = arith.constant dense<0.000000e+00> : vector<128x128xf32>
    %25 = tpu.matmul %23, %24, %cst_15 {dimension_numbers = #tpu.dot_dimension_numbers<[1], [1], [0], [0], [0, 0, 1, 0], [], []>} : vector<128x128xbf16>, vector<128x128xbf16>, vector<128x128xf32> -> vector<128x128xf32>
    %c0_16 = arith.constant 0 : index
    %c0_17 = arith.constant 0 : index
    %26 = vector.load %arg4[%c0_16, %c0_17] : memref<128x128xf32, #tpu.memory_space<vmem>>, vector<128x128xf32>
    %27 = arith.addf %25, %26 : vector<128x128xf32>
    %cst_18 = arith.constant dense<0xFF800000> : vector<128xf32>
    %28 = vector.multi_reduction <maximumf>, %27, %cst_18 [1] : vector<128x128xf32> to vector<128xf32>
    %29 = vector.shape_cast %28 : vector<128xf32> to vector<128x1xf32>
    %30 = vector.broadcast %29 : vector<128x1xf32> to vector<128x128xf32>
    %31 = arith.subf %27, %30 : vector<128x128xf32>
    %32 = math.exp %31 : vector<128x128xf32>
    %cst_19 = arith.constant dense<0.000000e+00> : vector<128xf32>
    %33 = vector.multi_reduction <add>, %32, %cst_19 [1] : vector<128x128xf32> to vector<128xf32>
    %34 = vector.shape_cast %33 : vector<128xf32> to vector<128x1xf32>
    %35 = tpu.reciprocal %34 {approx = true} : vector<128x1xf32> -> vector<128x1xf32>
    %36 = vector.broadcast %35 : vector<128x1xf32> to vector<128x128xf32>
    %37 = arith.mulf %32, %36 : vector<128x128xf32>
    %38 = arith.truncf %37 : vector<128x128xf32> to vector<128x128xbf16>
    %39 = arith.truncf %22 : vector<128x128xf32> to vector<128x128xbf16>
    %cst_20 = arith.constant dense<0.000000e+00> : vector<128x128xf32>
    %40 = tpu.matmul %38, %39, %cst_20 {dimension_numbers = #tpu.dot_dimension_numbers<[1], [0], [0], [1], [0, 0, 1, 1], [], []>} : vector<128x128xbf16>, vector<128x128xbf16>, vector<128x128xf32> -> vector<128x128xf32>
    %c0_21 = arith.constant 0 : index
    %c0_22 = arith.constant 0 : index
    %41 = vector.load %arg7[%c0_21, %c0_22] : memref<16x128xbf16, #tpu.memory_space<vmem>>, vector<16x128xbf16>
    %42 = arith.truncf %40 : vector<128x128xf32> to vector<128x128xbf16>
    %cst_23 = arith.constant dense<0.000000e+00> : vector<16x128xf32>
    %43 = tpu.matmul %41, %42, %cst_23 {dimension_numbers = #tpu.dot_dimension_numbers<[1], [0], [0], [1], [0, 0, 1, 1], [], []>} : vector<16x128xbf16>, vector<128x128xbf16>, vector<16x128xf32> -> vector<16x128xf32>
    %44 = arith.truncf %43 : vector<16x128xf32> to vector<16x128xbf16>
    %c176 = arith.constant 176 : index
    %c0_24 = arith.constant 0 : index
    %45 = vector.load %arg8[%c176, %c0_24] : memref<1712x384xbf16, #tpu.memory_space<vmem>>, vector<128x128xbf16>
    %cst_25 = arith.constant dense<0.000000e+00> : vector<16x128xf32>
    %46 = tpu.matmul %44, %45, %cst_25 {dimension_numbers = #tpu.dot_dimension_numbers<[1], [0], [0], [1], [0, 0, 1, 1], [], []>} : vector<16x128xbf16>, vector<128x128xbf16>, vector<16x128xf32> -> vector<16x128xf32>
    %c2 = arith.constant 2 : index
    %c0_26 = arith.constant 0 : index
    %47 = vector.load %arg9[%c2, %c0_26] : memref<24x384xf32, #tpu.memory_space<vmem>>, vector<1x128xf32>
    %48 = vector.broadcast %47 : vector<1x128xf32> to vector<16x128xf32>
    %49 = arith.addf %46, %48 : vector<16x128xf32>
    %50 = arith.addf %6, %49 : vector<16x128xf32>
    %c3 = arith.constant 3 : index
    %c0_27 = arith.constant 0 : index
    %51 = vector.load %arg9[%c3, %c0_27] : memref<24x384xf32, #tpu.memory_space<vmem>>, vector<1x128xf32>
    %c4 = arith.constant 4 : index
    %c0_28 = arith.constant 0 : index
    %52 = vector.load %arg9[%c4, %c0_28] : memref<24x384xf32, #tpu.memory_space<vmem>>, vector<1x128xf32>
    %cst_29 = arith.constant dense<0.000000e+00> : vector<16xf32>
    %53 = vector.multi_reduction <add>, %50, %cst_29 [1] : vector<16x128xf32> to vector<16xf32>
    %54 = vector.shape_cast %53 : vector<16xf32> to vector<16x1xf32>
    %cst_30 = arith.constant 1.280000e+02 : f32
    %55 = vector.broadcast %cst_30 : f32 to vector<16x1xf32>
    %56 = arith.divf %54, %55 : vector<16x1xf32>
    %57 = vector.broadcast %56 : vector<16x1xf32> to vector<16x128xf32>
    %58 = arith.subf %50, %57 : vector<16x128xf32>
    %59 = arith.mulf %58, %58 : vector<16x128xf32>
    %cst_31 = arith.constant dense<0.000000e+00> : vector<16xf32>
    %60 = vector.multi_reduction <add>, %59, %cst_31 [1] : vector<16x128xf32> to vector<16xf32>
    %61 = vector.shape_cast %60 : vector<16xf32> to vector<16x1xf32>
    %cst_32 = arith.constant 1.280000e+02 : f32
    %62 = vector.broadcast %cst_32 : f32 to vector<16x1xf32>
    %63 = arith.divf %61, %62 : vector<16x1xf32>
    %64 = vector.broadcast %56 : vector<16x1xf32> to vector<16x128xf32>
    %65 = arith.subf %50, %64 : vector<16x128xf32>
    %cst_33 = arith.constant 9.99999974E-6 : f32
    %66 = vector.broadcast %cst_33 : f32 to vector<16x1xf32>
    %67 = arith.addf %63, %66 : vector<16x1xf32>
    %68 = math.rsqrt %67 : vector<16x1xf32>
    %69 = vector.broadcast %68 : vector<16x1xf32> to vector<16x128xf32>
    %70 = arith.mulf %65, %69 : vector<16x128xf32>
    %71 = vector.broadcast %51 : vector<1x128xf32> to vector<16x128xf32>
    %72 = arith.mulf %70, %71 : vector<16x128xf32>
    %73 = vector.broadcast %52 : vector<1x128xf32> to vector<16x128xf32>
    %74 = arith.addf %72, %73 : vector<16x128xf32>
    %75 = arith.truncf %74 : vector<16x128xf32> to vector<16x128xbf16>
    %c304 = arith.constant 304 : index
    %c0_34 = arith.constant 0 : index
    %76 = vector.load %arg8[%c304, %c0_34] : memref<1712x384xbf16, #tpu.memory_space<vmem>>, vector<128x128xbf16>
    %cst_35 = arith.constant dense<0.000000e+00> : vector<16x128xf32>
    %77 = tpu.matmul %75, %76, %cst_35 {dimension_numbers = #tpu.dot_dimension_numbers<[1], [0], [0], [1], [0, 0, 1, 1], [], []>} : vector<16x128xbf16>, vector<128x128xbf16>, vector<16x128xf32> -> vector<16x128xf32>
    %c5 = arith.constant 5 : index
    %c0_36 = arith.constant 0 : index
    %78 = vector.load %arg9[%c5, %c0_36] : memref<24x384xf32, #tpu.memory_space<vmem>>, vector<1x128xf32>
    %79 = vector.broadcast %78 : vector<1x128xf32> to vector<16x128xf32>
    %80 = arith.addf %77, %79 : vector<16x128xf32>
    %cst_37 = arith.constant 0.000000e+00 : f32
    %81 = vector.broadcast %cst_37 : f32 to vector<16x128xf32>
    %82 = arith.maximumf %80, %81 : vector<16x128xf32>
    %83 = arith.truncf %82 : vector<16x128xf32> to vector<16x128xbf16>
    %c432 = arith.constant 432 : index
    %c0_38 = arith.constant 0 : index
    %84 = vector.load %arg8[%c432, %c0_38] : memref<1712x384xbf16, #tpu.memory_space<vmem>>, vector<128x128xbf16>
    %cst_39 = arith.constant dense<0.000000e+00> : vector<16x128xf32>
    %85 = tpu.matmul %83, %84, %cst_39 {dimension_numbers = #tpu.dot_dimension_numbers<[1], [0], [0], [1], [0, 0, 1, 1], [], []>} : vector<16x128xbf16>, vector<128x128xbf16>, vector<16x128xf32> -> vector<16x128xf32>
    %c6 = arith.constant 6 : index
    %c0_40 = arith.constant 0 : index
    %86 = vector.load %arg9[%c6, %c0_40] : memref<24x384xf32, #tpu.memory_space<vmem>>, vector<1x128xf32>
    %87 = vector.broadcast %86 : vector<1x128xf32> to vector<16x128xf32>
    %88 = arith.addf %85, %87 : vector<16x128xf32>
    %89 = arith.addf %74, %88 : vector<16x128xf32>
    %c7 = arith.constant 7 : index
    %c0_41 = arith.constant 0 : index
    %90 = vector.load %arg9[%c7, %c0_41] : memref<24x384xf32, #tpu.memory_space<vmem>>, vector<1x128xf32>
    %c8 = arith.constant 8 : index
    %c0_42 = arith.constant 0 : index
    %91 = vector.load %arg9[%c8, %c0_42] : memref<24x384xf32, #tpu.memory_space<vmem>>, vector<1x128xf32>
    %cst_43 = arith.constant dense<0.000000e+00> : vector<16xf32>
    %92 = vector.multi_reduction <add>, %89, %cst_43 [1] : vector<16x128xf32> to vector<16xf32>
    %93 = vector.shape_cast %92 : vector<16xf32> to vector<16x1xf32>
    %cst_44 = arith.constant 1.280000e+02 : f32
    %94 = vector.broadcast %cst_44 : f32 to vector<16x1xf32>
    %95 = arith.divf %93, %94 : vector<16x1xf32>
    %96 = vector.broadcast %95 : vector<16x1xf32> to vector<16x128xf32>
    %97 = arith.subf %89, %96 : vector<16x128xf32>
    %98 = arith.mulf %97, %97 : vector<16x128xf32>
    %cst_45 = arith.constant dense<0.000000e+00> : vector<16xf32>
    %99 = vector.multi_reduction <add>, %98, %cst_45 [1] : vector<16x128xf32> to vector<16xf32>
    %100 = vector.shape_cast %99 : vector<16xf32> to vector<16x1xf32>
    %cst_46 = arith.constant 1.280000e+02 : f32
    %101 = vector.broadcast %cst_46 : f32 to vector<16x1xf32>
    %102 = arith.divf %100, %101 : vector<16x1xf32>
    %103 = vector.broadcast %95 : vector<16x1xf32> to vector<16x128xf32>
    %104 = arith.subf %89, %103 : vector<16x128xf32>
    %cst_47 = arith.constant 9.99999974E-6 : f32
    %105 = vector.broadcast %cst_47 : f32 to vector<16x1xf32>
    %106 = arith.addf %102, %105 : vector<16x1xf32>
    %107 = math.rsqrt %106 : vector<16x1xf32>
    %108 = vector.broadcast %107 : vector<16x1xf32> to vector<16x128xf32>
    %109 = arith.mulf %104, %108 : vector<16x128xf32>
    %110 = vector.broadcast %90 : vector<1x128xf32> to vector<16x128xf32>
    %111 = arith.mulf %109, %110 : vector<16x128xf32>
    %112 = vector.broadcast %91 : vector<1x128xf32> to vector<16x128xf32>
    %113 = arith.addf %111, %112 : vector<16x128xf32>
    %114 = arith.truncf %113 : vector<16x128xf32> to vector<16x128xbf16>
    %c560 = arith.constant 560 : index
    %c0_48 = arith.constant 0 : index
    %115 = vector.load %arg8[%c560, %c0_48] : memref<1712x384xbf16, #tpu.memory_space<vmem>>, vector<128x384xbf16>
    %cst_49 = arith.constant dense<0.000000e+00> : vector<16x384xf32>
    %116 = tpu.matmul %114, %115, %cst_49 {dimension_numbers = #tpu.dot_dimension_numbers<[1], [0], [0], [1], [0, 0, 1, 1], [], []>} : vector<16x128xbf16>, vector<128x384xbf16>, vector<16x384xf32> -> vector<16x384xf32>
    %c9 = arith.constant 9 : index
    %c0_50 = arith.constant 0 : index
    %117 = vector.load %arg9[%c9, %c0_50] : memref<24x384xf32, #tpu.memory_space<vmem>>, vector<1x384xf32>
    %118 = vector.broadcast %117 : vector<1x384xf32> to vector<16x384xf32>
    %119 = arith.addf %116, %118 : vector<16x384xf32>
    %c0_51 = arith.constant 0 : index
    %c0_52 = arith.constant 0 : index
    %120 = vector.load %arg6[%c0_51, %c0_52] : memref<128x16xbf16, #tpu.memory_space<vmem>>, vector<128x16xbf16>
    %121 = arith.truncf %119 : vector<16x384xf32> to vector<16x384xbf16>
    %cst_53 = arith.constant dense<0.000000e+00> : vector<128x384xf32>
    %122 = tpu.matmul %120, %121, %cst_53 {dimension_numbers = #tpu.dot_dimension_numbers<[1], [0], [0], [1], [0, 0, 1, 1], [], []>} : vector<128x16xbf16>, vector<16x384xbf16>, vector<128x384xf32> -> vector<128x384xf32>
    %123 = vector.extract_strided_slice %122 {offsets = [0, 0], sizes = [128, 128], strides = [1, 1]} : vector<128x384xf32> to vector<128x128xf32>
    %124 = vector.extract_strided_slice %122 {offsets = [0, 128], sizes = [128, 128], strides = [1, 1]} : vector<128x384xf32> to vector<128x128xf32>
    %c0_54 = arith.constant 0 : index
    %c0_55 = arith.constant 0 : index
    %125 = vector.load %arg5[%c0_54, %c0_55] : memref<128x128xf32, #tpu.memory_space<vmem>>, vector<128x128xf32>
    %126 = arith.mulf %124, %125 : vector<128x128xf32>
    %127 = vector.extract_strided_slice %122 {offsets = [0, 256], sizes = [128, 128], strides = [1, 1]} : vector<128x384xf32> to vector<128x128xf32>
    %c0_56 = arith.constant 0 : index
    %c0_57 = arith.constant 0 : index
    %128 = vector.load %arg5[%c0_56, %c0_57] : memref<128x128xf32, #tpu.memory_space<vmem>>, vector<128x128xf32>
    %129 = arith.mulf %127, %128 : vector<128x128xf32>
    %130 = arith.truncf %123 : vector<128x128xf32> to vector<128x128xbf16>
    %131 = arith.truncf %126 : vector<128x128xf32> to vector<128x128xbf16>
    %cst_58 = arith.constant dense<0.000000e+00> : vector<128x128xf32>
    %132 = tpu.matmul %130, %131, %cst_58 {dimension_numbers = #tpu.dot_dimension_numbers<[1], [1], [0], [0], [0, 0, 1, 0], [], []>} : vector<128x128xbf16>, vector<128x128xbf16>, vector<128x128xf32> -> vector<128x128xf32>
    %c0_59 = arith.constant 0 : index
    %c0_60 = arith.constant 0 : index
    %133 = vector.load %arg4[%c0_59, %c0_60] : memref<128x128xf32, #tpu.memory_space<vmem>>, vector<128x128xf32>
    %134 = arith.addf %132, %133 : vector<128x128xf32>
    %cst_61 = arith.constant dense<0xFF800000> : vector<128xf32>
    %135 = vector.multi_reduction <maximumf>, %134, %cst_61 [1] : vector<128x128xf32> to vector<128xf32>
    %136 = vector.shape_cast %135 : vector<128xf32> to vector<128x1xf32>
    %137 = vector.broadcast %136 : vector<128x1xf32> to vector<128x128xf32>
    %138 = arith.subf %134, %137 : vector<128x128xf32>
    %139 = math.exp %138 : vector<128x128xf32>
    %cst_62 = arith.constant dense<0.000000e+00> : vector<128xf32>
    %140 = vector.multi_reduction <add>, %139, %cst_62 [1] : vector<128x128xf32> to vector<128xf32>
    %141 = vector.shape_cast %140 : vector<128xf32> to vector<128x1xf32>
    %142 = tpu.reciprocal %141 {approx = true} : vector<128x1xf32> -> vector<128x1xf32>
    %143 = vector.broadcast %142 : vector<128x1xf32> to vector<128x128xf32>
    %144 = arith.mulf %139, %143 : vector<128x128xf32>
    %145 = arith.truncf %144 : vector<128x128xf32> to vector<128x128xbf16>
    %146 = arith.truncf %129 : vector<128x128xf32> to vector<128x128xbf16>
    %cst_63 = arith.constant dense<0.000000e+00> : vector<128x128xf32>
    %147 = tpu.matmul %145, %146, %cst_63 {dimension_numbers = #tpu.dot_dimension_numbers<[1], [0], [0], [1], [0, 0, 1, 1], [], []>} : vector<128x128xbf16>, vector<128x128xbf16>, vector<128x128xf32> -> vector<128x128xf32>
    %c0_64 = arith.constant 0 : index
    %c0_65 = arith.constant 0 : index
    %148 = vector.load %arg7[%c0_64, %c0_65] : memref<16x128xbf16, #tpu.memory_space<vmem>>, vector<16x128xbf16>
    %149 = arith.truncf %147 : vector<128x128xf32> to vector<128x128xbf16>
    %cst_66 = arith.constant dense<0.000000e+00> : vector<16x128xf32>
    %150 = tpu.matmul %148, %149, %cst_66 {dimension_numbers = #tpu.dot_dimension_numbers<[1], [0], [0], [1], [0, 0, 1, 1], [], []>} : vector<16x128xbf16>, vector<128x128xbf16>, vector<16x128xf32> -> vector<16x128xf32>
    %151 = arith.truncf %150 : vector<16x128xf32> to vector<16x128xbf16>
    %c688 = arith.constant 688 : index
    %c0_67 = arith.constant 0 : index
    %152 = vector.load %arg8[%c688, %c0_67] : memref<1712x384xbf16, #tpu.memory_space<vmem>>, vector<128x128xbf16>
    %cst_68 = arith.constant dense<0.000000e+00> : vector<16x128xf32>
    %153 = tpu.matmul %151, %152, %cst_68 {dimension_numbers = #tpu.dot_dimension_numbers<[1], [0], [0], [1], [0, 0, 1, 1], [], []>} : vector<16x128xbf16>, vector<128x128xbf16>, vector<16x128xf32> -> vector<16x128xf32>
    %c10 = arith.constant 10 : index
    %c0_69 = arith.constant 0 : index
    %154 = vector.load %arg9[%c10, %c0_69] : memref<24x384xf32, #tpu.memory_space<vmem>>, vector<1x128xf32>
    %155 = vector.broadcast %154 : vector<1x128xf32> to vector<16x128xf32>
    %156 = arith.addf %153, %155 : vector<16x128xf32>
    %157 = arith.addf %113, %156 : vector<16x128xf32>
    %c11 = arith.constant 11 : index
    %c0_70 = arith.constant 0 : index
    %158 = vector.load %arg9[%c11, %c0_70] : memref<24x384xf32, #tpu.memory_space<vmem>>, vector<1x128xf32>
    %c12 = arith.constant 12 : index
    %c0_71 = arith.constant 0 : index
    %159 = vector.load %arg9[%c12, %c0_71] : memref<24x384xf32, #tpu.memory_space<vmem>>, vector<1x128xf32>
    %cst_72 = arith.constant dense<0.000000e+00> : vector<16xf32>
    %160 = vector.multi_reduction <add>, %157, %cst_72 [1] : vector<16x128xf32> to vector<16xf32>
    %161 = vector.shape_cast %160 : vector<16xf32> to vector<16x1xf32>
    %cst_73 = arith.constant 1.280000e+02 : f32
    %162 = vector.broadcast %cst_73 : f32 to vector<16x1xf32>
    %163 = arith.divf %161, %162 : vector<16x1xf32>
    %164 = vector.broadcast %163 : vector<16x1xf32> to vector<16x128xf32>
    %165 = arith.subf %157, %164 : vector<16x128xf32>
    %166 = arith.mulf %165, %165 : vector<16x128xf32>
    %cst_74 = arith.constant dense<0.000000e+00> : vector<16xf32>
    %167 = vector.multi_reduction <add>, %166, %cst_74 [1] : vector<16x128xf32> to vector<16xf32>
    %168 = vector.shape_cast %167 : vector<16xf32> to vector<16x1xf32>
    %cst_75 = arith.constant 1.280000e+02 : f32
    %169 = vector.broadcast %cst_75 : f32 to vector<16x1xf32>
    %170 = arith.divf %168, %169 : vector<16x1xf32>
    %171 = vector.broadcast %163 : vector<16x1xf32> to vector<16x128xf32>
    %172 = arith.subf %157, %171 : vector<16x128xf32>
    %cst_76 = arith.constant 9.99999974E-6 : f32
    %173 = vector.broadcast %cst_76 : f32 to vector<16x1xf32>
    %174 = arith.addf %170, %173 : vector<16x1xf32>
    %175 = math.rsqrt %174 : vector<16x1xf32>
    %176 = vector.broadcast %175 : vector<16x1xf32> to vector<16x128xf32>
    %177 = arith.mulf %172, %176 : vector<16x128xf32>
    %178 = vector.broadcast %158 : vector<1x128xf32> to vector<16x128xf32>
    %179 = arith.mulf %177, %178 : vector<16x128xf32>
    %180 = vector.broadcast %159 : vector<1x128xf32> to vector<16x128xf32>
    %181 = arith.addf %179, %180 : vector<16x128xf32>
    %182 = arith.truncf %181 : vector<16x128xf32> to vector<16x128xbf16>
    %c816 = arith.constant 816 : index
    %c0_77 = arith.constant 0 : index
    %183 = vector.load %arg8[%c816, %c0_77] : memref<1712x384xbf16, #tpu.memory_space<vmem>>, vector<128x128xbf16>
    %cst_78 = arith.constant dense<0.000000e+00> : vector<16x128xf32>
    %184 = tpu.matmul %182, %183, %cst_78 {dimension_numbers = #tpu.dot_dimension_numbers<[1], [0], [0], [1], [0, 0, 1, 1], [], []>} : vector<16x128xbf16>, vector<128x128xbf16>, vector<16x128xf32> -> vector<16x128xf32>
    %c13 = arith.constant 13 : index
    %c0_79 = arith.constant 0 : index
    %185 = vector.load %arg9[%c13, %c0_79] : memref<24x384xf32, #tpu.memory_space<vmem>>, vector<1x128xf32>
    %186 = vector.broadcast %185 : vector<1x128xf32> to vector<16x128xf32>
    %187 = arith.addf %184, %186 : vector<16x128xf32>
    %cst_80 = arith.constant 0.000000e+00 : f32
    %188 = vector.broadcast %cst_80 : f32 to vector<16x128xf32>
    %189 = arith.maximumf %187, %188 : vector<16x128xf32>
    %190 = arith.truncf %189 : vector<16x128xf32> to vector<16x128xbf16>
    %c944 = arith.constant 944 : index
    %c0_81 = arith.constant 0 : index
    %191 = vector.load %arg8[%c944, %c0_81] : memref<1712x384xbf16, #tpu.memory_space<vmem>>, vector<128x128xbf16>
    %cst_82 = arith.constant dense<0.000000e+00> : vector<16x128xf32>
    %192 = tpu.matmul %190, %191, %cst_82 {dimension_numbers = #tpu.dot_dimension_numbers<[1], [0], [0], [1], [0, 0, 1, 1], [], []>} : vector<16x128xbf16>, vector<128x128xbf16>, vector<16x128xf32> -> vector<16x128xf32>
    %c14 = arith.constant 14 : index
    %c0_83 = arith.constant 0 : index
    %193 = vector.load %arg9[%c14, %c0_83] : memref<24x384xf32, #tpu.memory_space<vmem>>, vector<1x128xf32>
    %194 = vector.broadcast %193 : vector<1x128xf32> to vector<16x128xf32>
    %195 = arith.addf %192, %194 : vector<16x128xf32>
    %196 = arith.addf %181, %195 : vector<16x128xf32>
    %c15 = arith.constant 15 : index
    %c0_84 = arith.constant 0 : index
    %197 = vector.load %arg9[%c15, %c0_84] : memref<24x384xf32, #tpu.memory_space<vmem>>, vector<1x128xf32>
    %c16 = arith.constant 16 : index
    %c0_85 = arith.constant 0 : index
    %198 = vector.load %arg9[%c16, %c0_85] : memref<24x384xf32, #tpu.memory_space<vmem>>, vector<1x128xf32>
    %cst_86 = arith.constant dense<0.000000e+00> : vector<16xf32>
    %199 = vector.multi_reduction <add>, %196, %cst_86 [1] : vector<16x128xf32> to vector<16xf32>
    %200 = vector.shape_cast %199 : vector<16xf32> to vector<16x1xf32>
    %cst_87 = arith.constant 1.280000e+02 : f32
    %201 = vector.broadcast %cst_87 : f32 to vector<16x1xf32>
    %202 = arith.divf %200, %201 : vector<16x1xf32>
    %203 = vector.broadcast %202 : vector<16x1xf32> to vector<16x128xf32>
    %204 = arith.subf %196, %203 : vector<16x128xf32>
    %205 = arith.mulf %204, %204 : vector<16x128xf32>
    %cst_88 = arith.constant dense<0.000000e+00> : vector<16xf32>
    %206 = vector.multi_reduction <add>, %205, %cst_88 [1] : vector<16x128xf32> to vector<16xf32>
    %207 = vector.shape_cast %206 : vector<16xf32> to vector<16x1xf32>
    %cst_89 = arith.constant 1.280000e+02 : f32
    %208 = vector.broadcast %cst_89 : f32 to vector<16x1xf32>
    %209 = arith.divf %207, %208 : vector<16x1xf32>
    %210 = vector.broadcast %202 : vector<16x1xf32> to vector<16x128xf32>
    %211 = arith.subf %196, %210 : vector<16x128xf32>
    %cst_90 = arith.constant 9.99999974E-6 : f32
    %212 = vector.broadcast %cst_90 : f32 to vector<16x1xf32>
    %213 = arith.addf %209, %212 : vector<16x1xf32>
    %214 = math.rsqrt %213 : vector<16x1xf32>
    %215 = vector.broadcast %214 : vector<16x1xf32> to vector<16x128xf32>
    %216 = arith.mulf %211, %215 : vector<16x128xf32>
    %217 = vector.broadcast %197 : vector<1x128xf32> to vector<16x128xf32>
    %218 = arith.mulf %216, %217 : vector<16x128xf32>
    %219 = vector.broadcast %198 : vector<1x128xf32> to vector<16x128xf32>
    %220 = arith.addf %218, %219 : vector<16x128xf32>
    %221 = vector.extract_strided_slice %220 {offsets = [6, 0], sizes = [2, 128], strides = [1, 1]} : vector<16x128xf32> to vector<2x128xf32>
    %c0_91 = arith.constant 0 : index
    %c0_92 = arith.constant 0 : index
    %222 = vector.load %arg1[%c0_91, %c0_92] : memref<2x128xf32, #tpu.memory_space<vmem>>, vector<2x128xf32>
    %223 = arith.truncf %222 : vector<2x128xf32> to vector<2x128xbf16>
    %c1072 = arith.constant 1072 : index
    %c0_93 = arith.constant 0 : index
    %224 = vector.load %arg8[%c1072, %c0_93] : memref<1712x384xbf16, #tpu.memory_space<vmem>>, vector<128x128xbf16>
    %cst_94 = arith.constant dense<0.000000e+00> : vector<2x128xf32>
    %225 = tpu.matmul %223, %224, %cst_94 {dimension_numbers = #tpu.dot_dimension_numbers<[1], [0], [0], [1], [0, 0, 1, 1], [], []>} : vector<2x128xbf16>, vector<128x128xbf16>, vector<2x128xf32> -> vector<2x128xf32>
    %c17 = arith.constant 17 : index
    %c0_95 = arith.constant 0 : index
    %226 = vector.load %arg9[%c17, %c0_95] : memref<24x384xf32, #tpu.memory_space<vmem>>, vector<1x128xf32>
    %227 = vector.broadcast %226 : vector<1x128xf32> to vector<2x128xf32>
    %228 = arith.addf %225, %227 : vector<2x128xf32>
    %229 = arith.truncf %221 : vector<2x128xf32> to vector<2x128xbf16>
    %c1200 = arith.constant 1200 : index
    %c0_96 = arith.constant 0 : index
    %230 = vector.load %arg8[%c1200, %c0_96] : memref<1712x384xbf16, #tpu.memory_space<vmem>>, vector<128x256xbf16>
    %cst_97 = arith.constant dense<0.000000e+00> : vector<2x256xf32>
    %231 = tpu.matmul %229, %230, %cst_97 {dimension_numbers = #tpu.dot_dimension_numbers<[1], [0], [0], [1], [0, 0, 1, 1], [], []>} : vector<2x128xbf16>, vector<128x256xbf16>, vector<2x256xf32> -> vector<2x256xf32>
    %232 = arith.truncf %228 : vector<2x128xf32> to vector<2x128xbf16>
    %c1328 = arith.constant 1328 : index
    %c0_98 = arith.constant 0 : index
    %233 = vector.load %arg8[%c1328, %c0_98] : memref<1712x384xbf16, #tpu.memory_space<vmem>>, vector<128x256xbf16>
    %cst_99 = arith.constant dense<0.000000e+00> : vector<2x256xf32>
    %234 = tpu.matmul %232, %233, %cst_99 {dimension_numbers = #tpu.dot_dimension_numbers<[1], [0], [0], [1], [0, 0, 1, 1], [], []>} : vector<2x128xbf16>, vector<128x256xbf16>, vector<2x256xf32> -> vector<2x256xf32>
    %235 = arith.addf %231, %234 : vector<2x256xf32>
    %c0_100 = arith.constant 0 : index
    %c0_101 = arith.constant 0 : index
    %236 = vector.load %arg2[%c0_100, %c0_101] : memref<2x64xf32, #tpu.memory_space<vmem>>, vector<2x64xf32>
    %237 = arith.truncf %236 : vector<2x64xf32> to vector<2x64xbf16>
    %c1456 = arith.constant 1456 : index
    %c0_102 = arith.constant 0 : index
    %238 = vector.load %arg8[%c1456, %c0_102] : memref<1712x384xbf16, #tpu.memory_space<vmem>>, vector<64x256xbf16>
    %cst_103 = arith.constant dense<0.000000e+00> : vector<2x256xf32>
    %239 = tpu.matmul %237, %238, %cst_103 {dimension_numbers = #tpu.dot_dimension_numbers<[1], [0], [0], [1], [0, 0, 1, 1], [], []>} : vector<2x64xbf16>, vector<64x256xbf16>, vector<2x256xf32> -> vector<2x256xf32>
    %240 = arith.addf %235, %239 : vector<2x256xf32>
    %c18 = arith.constant 18 : index
    %c0_104 = arith.constant 0 : index
    %241 = vector.load %arg9[%c18, %c0_104] : memref<24x384xf32, #tpu.memory_space<vmem>>, vector<1x256xf32>
    %242 = vector.broadcast %241 : vector<1x256xf32> to vector<2x256xf32>
    %243 = arith.addf %240, %242 : vector<2x256xf32>
    %244 = vector.extract_strided_slice %243 {offsets = [0, 0], sizes = [2, 128], strides = [1, 1]} : vector<2x256xf32> to vector<2x128xf32>
    %245 = arith.negf %244 : vector<2x128xf32>
    %246 = math.exp %245 : vector<2x128xf32>
    %cst_105 = arith.constant 1.000000e+00 : f32
    %247 = vector.broadcast %cst_105 : f32 to vector<2x128xf32>
    %248 = arith.addf %247, %246 : vector<2x128xf32>
    %249 = arith.divf %247, %248 : vector<2x128xf32>
    %250 = vector.extract_strided_slice %243 {offsets = [0, 128], sizes = [2, 128], strides = [1, 1]} : vector<2x256xf32> to vector<2x128xf32>
    %c21 = arith.constant 21 : index
    %c0_106 = arith.constant 0 : index
    %251 = vector.load %arg9[%c21, %c0_106] : memref<24x384xf32, #tpu.memory_space<vmem>>, vector<1x128xf32>
    %cst_107 = arith.constant 5.000000e-01 : f32
    %252 = vector.broadcast %cst_107 : f32 to vector<1x128xf32>
    %253 = arith.cmpf ogt, %251, %252 : vector<1x128xf32>
    %254 = vector.shape_cast %253 : vector<1x128xi1> to vector<1x128xi1>
    %255 = vector.broadcast %254 : vector<1x128xi1> to vector<2x128xi1>
    %256 = math.tanh %250 : vector<2x128xf32>
    %257 = arith.negf %250 : vector<2x128xf32>
    %258 = math.exp %257 : vector<2x128xf32>
    %cst_108 = arith.constant 1.000000e+00 : f32
    %259 = vector.broadcast %cst_108 : f32 to vector<2x128xf32>
    %260 = arith.addf %259, %258 : vector<2x128xf32>
    %261 = arith.divf %259, %260 : vector<2x128xf32>
    %262 = arith.select %255, %256, %261 : vector<2x128xi1>, vector<2x128xf32>
    %263 = vector.extract_strided_slice %249 {offsets = [0, 0], sizes = [2, 64], strides = [1, 1]} : vector<2x128xf32> to vector<2x64xf32>
    %264 = vector.extract_strided_slice %249 {offsets = [0, 64], sizes = [2, 64], strides = [1, 1]} : vector<2x128xf32> to vector<2x64xf32>
    %265 = vector.extract_strided_slice %262 {offsets = [0, 0], sizes = [2, 64], strides = [1, 1]} : vector<2x128xf32> to vector<2x64xf32>
    %266 = vector.extract_strided_slice %262 {offsets = [0, 64], sizes = [2, 64], strides = [1, 1]} : vector<2x128xf32> to vector<2x64xf32>
    %c0_109 = arith.constant 0 : index
    %c0_110 = arith.constant 0 : index
    %267 = vector.load %arg3[%c0_109, %c0_110] : memref<2x64xf32, #tpu.memory_space<vmem>>, vector<2x64xf32>
    %268 = arith.mulf %264, %267 : vector<2x64xf32>
    %269 = arith.mulf %263, %265 : vector<2x64xf32>
    %270 = arith.addf %268, %269 : vector<2x64xf32>
    %271 = math.tanh %270 : vector<2x64xf32>
    %272 = arith.mulf %266, %271 : vector<2x64xf32>
    %273 = tpu.concatenate %272, %270 in 1 : vector<2x64xf32>, vector<2x64xf32> -> vector<2x128xf32>
    %c0_111 = arith.constant 0 : index
    %c0_112 = arith.constant 0 : index
    %274 = vector.load %arg11[%c0_111, %c0_112] : memref<2x128xf32, #tpu.memory_space<vmem>>, vector<2x128xf32>
    tpu.vector_store %arg11[%c0_111, %c0_112], %273 {strides = array<i32>} : memref<2x128xf32, #tpu.memory_space<vmem>>, vector<2x128xf32>,
    %275 = arith.truncf %272 : vector<2x64xf32> to vector<2x64xbf16>
    %c1520 = arith.constant 1520 : index
    %c0_113 = arith.constant 0 : index
    %276 = vector.load %arg8[%c1520, %c0_113] : memref<1712x384xbf16, #tpu.memory_space<vmem>>, vector<64x128xbf16>
    %cst_114 = arith.constant dense<0.000000e+00> : vector<2x128xf32>
    %277 = tpu.matmul %275, %276, %cst_114 {dimension_numbers = #tpu.dot_dimension_numbers<[1], [0], [0], [1], [0, 0, 1, 1], [], []>} : vector<2x64xbf16>, vector<64x128xbf16>, vector<2x128xf32> -> vector<2x128xf32>
    %c19 = arith.constant 19 : index
    %c0_115 = arith.constant 0 : index
    %278 = vector.load %arg9[%c19, %c0_115] : memref<24x384xf32, #tpu.memory_space<vmem>>, vector<1x128xf32>
    %279 = vector.broadcast %278 : vector<1x128xf32> to vector<2x128xf32>
    %280 = arith.addf %277, %279 : vector<2x128xf32>
    %cst_116 = arith.constant 0.000000e+00 : f32
    %281 = vector.broadcast %cst_116 : f32 to vector<2x128xf32>
    %282 = arith.maximumf %280, %281 : vector<2x128xf32>
    %283 = arith.truncf %282 : vector<2x128xf32> to vector<2x128xbf16>
    %c1584 = arith.constant 1584 : index
    %c0_117 = arith.constant 0 : index
    %284 = vector.load %arg8[%c1584, %c0_117] : memref<1712x384xbf16, #tpu.memory_space<vmem>>, vector<128x128xbf16>
    %cst_118 = arith.constant dense<0.000000e+00> : vector<2x128xf32>
    %285 = tpu.matmul %283, %284, %cst_118 {dimension_numbers = #tpu.dot_dimension_numbers<[1], [0], [0], [1], [0, 0, 1, 1], [], []>} : vector<2x128xbf16>, vector<128x128xbf16>, vector<2x128xf32> -> vector<2x128xf32>
    %c20 = arith.constant 20 : index
    %c0_119 = arith.constant 0 : index
    %286 = vector.load %arg9[%c20, %c0_119] : memref<24x384xf32, #tpu.memory_space<vmem>>, vector<1x128xf32>
    %287 = vector.broadcast %286 : vector<1x128xf32> to vector<2x128xf32>
    %288 = arith.addf %285, %287 : vector<2x128xf32>
    %cst_120 = arith.constant dense<0xFF800000> : vector<2xf32>
    %289 = vector.multi_reduction <maximumf>, %288, %cst_120 [1] : vector<2x128xf32> to vector<2xf32>
    %290 = vector.shape_cast %289 : vector<2xf32> to vector<2x1xf32>
    %291 = vector.broadcast %290 : vector<2x1xf32> to vector<2x128xf32>
    %292 = arith.subf %288, %291 : vector<2x128xf32>
    %293 = math.exp %292 : vector<2x128xf32>
    %cst_121 = arith.constant dense<0.000000e+00> : vector<2xf32>
    %294 = vector.multi_reduction <add>, %293, %cst_121 [1] : vector<2x128xf32> to vector<2xf32>
    %295 = vector.shape_cast %294 : vector<2xf32> to vector<2x1xf32>
    %296 = vector.broadcast %295 : vector<2x1xf32> to vector<2x128xf32>
    %297 = arith.divf %293, %296 : vector<2x128xf32>
    %c0_122 = arith.constant 0 : index
    %c0_123 = arith.constant 0 : index
    %298 = vector.load %arg10[%c0_122, %c0_123] : memref<2x128xf32, #tpu.memory_space<vmem>>, vector<2x128xf32>
    tpu.vector_store %arg10[%c0_122, %c0_123], %297 {strides = array<i32>} : memref<2x128xf32, #tpu.memory_space<vmem>>, vector<2x128xf32>,
    return
  }
}

</mosaic_0001>

<bundles_post_ra>
// kernel: tpu_custom_call.1
= control target key start
LH: loop header
LB: loop body
LE: loop exit
PB: predicated region body
PF: predicated region fallthrough
CT: control target
= control target key end

     0   :  { %17 = vsyncpa [#allocation3], 0  ;;  %s5148_s0 = inlined_call_operand.hbm [shape: f32[16,48], index: 0, kind: input, shape index: {}]   ;;  %s5149_s1 = inlined_call_operand.hbm [shape: f32[2,128], index: 1, kind: input, shape index: {}]   ;;  %s5150_s2 = inlined_call_operand.hbm [shape: f32[2,64], index: 2, kind: input, shape index: {}]   ;;  %s5151_s3 = inlined_call_operand.hbm [shape: f32[2,64], index: 3, kind: input, shape index: {}]   ;;  %s5152_s4 = inlined_call_operand.hbm [shape: f32[128,128], index: 4, kind: input, shape index: {}]   ;;  %s5153_s5 = inlined_call_operand.hbm [shape: f32[128,128], index: 5, kind: input, shape index: {}]   ;;  %s5154_s6 = inlined_call_operand.vmem [shape: bf16[128,16], index: 6, kind: input, shape index: {}]   ;;  %s5155_s7 = inlined_call_operand.hbm [shape: bf16[16,128], index: 7, kind: input, shape index: {}]   ;;  %s5156_s8 = inlined_call_operand.hbm [shape: bf16[1712,384], index: 8, kind: input, shape index: {}]   ;;  %s5157_s9 = inlined_call_operand.hbm [shape: f32[24,384], index: 9, kind: input, shape index: {}]   ;;  %s5158_s10 = inlined_call_operand.hbm [shape: f32[2,128], index: 10, kind: output, shape index: {0}]   ;;  %s5159_s11 = inlined_call_operand.hbm [shape: f32[2,128], index: 11, kind: output, shape index: {1}]  }
   0x1   :  { %18 = vsyncpa [#allocation6], 0 }
   0x2   :  { %19 = vsyncpa [#allocation9], 0 }
   0x3   :  { %20 = vsyncpa [#allocation12], 0 }
   0x4   :  { %21 = vsyncpa [#allocation15], 0 }
   0x5   :  { %22 = vsyncpa [#allocation4], 0  ;;  %s42_s19 = sshll.u32 %s5149_s1, 4  ;;  %s43_s19 = int_to_ptr.hbm [resolvable:$true] %s42_s19 }
   0x6   :  { %23 = vsyncpa [#allocation19], 0  ;;  %s4453_s20 = smov [#allocation5]   ;;  %s64_s24 = sshll.u32 %s5151_s3, 4  ;;  %s65_s24 = int_to_ptr.hbm [resolvable:$true] %s64_s24 }
   0x7   :  { %s44_s21 = sshll.u32 %s4453_s20, 4  ;;  %s4454_s25 = smov [#allocation8]   ;;  %s45_s21 = int_to_ptr.vmem [resolvable:$true] %s44_s21 }
   0x8   :  { %47 = dma.hbm_to_vmem [thread:$0]  %s43_s19, 32, %s45_s21, [#allocation6]  }
   0x9   :  { %s66_s26 = sshll.u32 %s4454_s25, 4  ;;  %s87_s29 = sshll.u32 %s5153_s5, 4  ;;  %s67_s26 = int_to_ptr.vmem [resolvable:$true] %s66_s26  ;;  %s88_s29 = int_to_ptr.hbm [resolvable:$true] %s87_s29 }
   0xa   :  { %69 = dma.hbm_to_vmem [thread:$0]  %s65_s24, 32, %s67_s26, [#allocation9]  }
   0xb   :  { %s4455_s1 = smov [#allocation11]   ;;  %s115_s14 = sshll.u32 %s5156_s8, 4  ;;  %s116_s14 = int_to_ptr.hbm [resolvable:$true] %s115_s14 }
   0xc   :  { %s89_s30 = sshll.u32 %s4455_s1, 4  ;;  %s4456_s15 = smov 128   ;;  %s90_s30 = int_to_ptr.vmem [resolvable:$true] %s89_s30 }
   0xd   :  { %s4457_s3 = smov 8   ;;  %s4458_s16 = smov [#allocation14]  }
   0xe   :  { %95 = dma.hbm_to_vmem [thread:$0]  %s88_s29, 2048, %s90_s30, [#allocation12], %s4456_s15, %s4456_s15, %s4457_s3  }
   0xf   :  { %s117_s17 = sshll.u32 %s4458_s16, 4  ;;  %s4459_s18 = smov 192   ;;  %s118_s17 = int_to_ptr.vmem [resolvable:$true] %s117_s17 }
  0x10   :  { %s4460_s5 = smov 12   ;;  %s28_s21 = sshll.u32 %s5148_s0, 4  ;;  %s29_s21 = int_to_ptr.hbm [resolvable:$true] %s28_s21 }
  0x11   :  { %123 = dma.hbm_to_vmem [thread:$0]  %s116_s14, 41088, %s118_s17, [#allocation15], %s4459_s18, %s4459_s18, %s4460_s5  }
  0x12   :  { %s4461_s22 = smov [#allocation2]   ;;  %s53_s25 = sshll.u32 %s5150_s2, 4  ;;  %s54_s25 = int_to_ptr.hbm [resolvable:$true] %s53_s25 }
  0x13   :  { %s30_s8 = sshll.u32 %s4461_s22, 4  ;;  %s4462_s26 = smov [#allocation7]   ;;  %s31_s8 = int_to_ptr.vmem [resolvable:$true] %s30_s8 }
  0x14   :  { %36 = dma.hbm_to_vmem [thread:$0]  %s29_s21, 256, %s31_s8, [#allocation3], %s4456_s15, %s4456_s15, %s4457_s3  }
  0x15   :  { %s55_s27 = sshll.u32 %s4462_s26, 4  ;;  %s74_s1 = sshll.u32 %s5152_s4, 4  ;;  %s56_s27 = int_to_ptr.vmem [resolvable:$true] %s55_s27  ;;  %s75_s1 = int_to_ptr.hbm [resolvable:$true] %s74_s1 }
  0x16   :  { %58 = dma.hbm_to_vmem [thread:$0]  %s54_s25, 32, %s56_s27, [#allocation6]  }
  0x17   :  { %s102_s12 = sshll.u32 %s5155_s7, 4  ;;  %s4463_s13 = smov [#allocation10]   ;;  %s103_s12 = int_to_ptr.hbm [resolvable:$true] %s102_s12 }
  0x18   :  { %s76_s2 = sshll.u32 %s4463_s13, 4  ;;  %s4464_s14 = smov [#allocation13]   ;;  %s77_s2 = int_to_ptr.vmem [resolvable:$true] %s76_s2 }
  0x19   :  { %82 = dma.hbm_to_vmem [thread:$0]  %s75_s1, 2048, %s77_s2, [#allocation9], %s4456_s15, %s4456_s15, %s4457_s3  }
  0x1a   :  { %s104_s16 = sshll.u32 %s4464_s14, 4  ;;  %s4465_s17 = smov 64   ;;  %s105_s16 = int_to_ptr.vmem [resolvable:$true] %s104_s16 }
  0x1b   :  { %s4466_s4 = smov 4   ;;  %s128_s7 = sshll.u32 %s5157_s9, 4  ;;  %s129_s7 = int_to_ptr.hbm [resolvable:$true] %s128_s7 }
  0x1c   :  { %110 = dma.hbm_to_vmem [thread:$0]  %s103_s12, 128, %s105_s16, [#allocation12], %s4465_s17, %s4465_s17, %s4466_s4  }
  0x1d   :  { %s4467_s19 = smov [#allocation16]   ;;  %s4468_s21 = smov 384  }
  0x1e   :  { %s130_s20 = sshll.u32 %s4467_s19, 4  ;;  %s4469_s22 = smov 24   ;;  %s131_s20 = int_to_ptr.vmem [resolvable:$true] %s130_s20 }
  0x1f   :  { %136 = dma.hbm_to_vmem [thread:$0]  %s129_s7, 1152, %s131_s20, [#allocation15], %s4468_s21, %s4468_s21, %s4469_s22  }
  0x20   :  { %4439 = dma.done.wait [#allocation3], 256  }
  0x21   :  { %4440 = vsyncadd [#allocation3], 4294967040 }
  0x22   :  { %4441 = dma.done.wait [#allocation6], 64  }
  0x23   :  { %4442 = vsyncadd [#allocation6], 4294967232 }
  0x24   :  { %4443 = dma.done.wait [#allocation9], 2080  }
  0x25   :  { %4444 = vsyncadd [#allocation9], 4294965216 }
  0x26   :  { %4445 = dma.done.wait [#allocation12], 2176  }
  0x27   :  { %4446 = vsyncadd [#allocation12], 4294965120 }
  0x28   :  { %4447 = dma.done.wait [#allocation15], 42240  }
  0x29   :  { %4448 = vsyncadd [#allocation15], 4294925056  ;;  %v3070_v0 = vld [vmem:[#allocation14 + $0x30] sm:$0xf]  ;;  %v3788_v1 = vld [vmem:[#allocation14 + $0x38] sm:$0xf0] }
  0x2a   :  { %v3066_v2 = vld [vmem:[#allocation14 + $0x18] sm:$0xf]  ;;  %v3071_v3 = vor.u32 %v3788_v1, %v3070_v0  ;;  %v3787_v4 = vld [vmem:[#allocation14 + $0x20] sm:$0xf0]  ;;  %v3062_v5 = vld [vmem:[#allocation14] sm:$0xf] }
  0x2b   :  { %v3786_v6 = vld [vmem:[#allocation14 + $0x8] sm:$0xf0]  ;;  %v3159_v7 = vld [vmem:[#allocation14 + $0xf0] sm:$0xf]  ;;  %v3067_v8 = vor.u32 %v3787_v4, %v3066_v2  ;;  %v3811_v9 = vld [vmem:[#allocation14 + $0xf8] sm:$0xf0] }
  0x2c   :  { %211 = vmatpush.bf16.msra.mxu0 %v3071_v3  ;;  %v3810_v10 = vld [vmem:[#allocation14 + $0xf4] sm:$0xf]  ;;  %v3161_v11 = vld [vmem:[#allocation14 + $0xfc] sm:$0xf0]  ;;  %v3160_v12 = vor.u32 %v3811_v9, %v3159_v7  ;;  %v3167_v14 = vld [vmem:[#allocation14 + $0xf8] sm:$0xf]  ;;  %v3063_v27 = vor.u32 %v3786_v6, %v3062_v5 }
  0x2d   :  { %v3164_v13 = vor.u32 %v3810_v10, %v3161_v11  ;;  %v3812_v15 = vld [vmem:[#allocation14 + $0x100] sm:$0xf0]  ;;  %v3147_v16 = vld [vmem:[#allocation14 + $0xd8] sm:$0xf]  ;;  %v3807_v20 = vld [vmem:[#allocation14 + $0xdc] sm:$0xf] }
  0x2e   :  { %v174_v17 = vld [vmem:[#allocation2] sm:$0xff]  ;;  %v3168_v18 = vor.u32 %v3812_v15, %v3167_v14  ;;  %v175_v22 = vld [vmem:[#allocation2 + $0x8] sm:$0xff]  ;;  %390 = vmatpush.bf16.msra.mxu1 %v3160_v12  ;;  %v3806_v34 = vld [vmem:[#allocation14 + $0xd0] sm:$0xf0]  ;;  %vm202_vm0 = vcmask 392192   ;;  %vm491_vm1 = vcmask 130048  }
  0x2f   :  { %v3808_v19 = vld [vmem:[#allocation14 + $0xe0] sm:$0xf0]  ;;  %v3149_v21 = vld [vmem:[#allocation14 + $0xe4] sm:$0xf0]  ;;  %404 = vmatpush.bf16.msra.mxu2 %v3164_v13  ;;  %v3155_v25 = vld [vmem:[#allocation14 + $0xe0] sm:$0xf]  ;;  %v176_v35 = vpack.c.bf16 %v175_v22, %v174_v17 }
  0x30   :  { %v3148_v23 = vor.u32 %v3808_v19, %v3147_v16  ;;  %v3152_v24 = vor.u32 %v3807_v20, %v3149_v21  ;;  %v3809_v26 = vld [vmem:[#allocation14 + $0xe8] sm:$0xf0]  ;;  %212 = vmatpush.bf16.msra.mxu0 %v3067_v8  ;;  %418 = vmatpush.bf16.msra.mxu3 %v3168_v18  ;;  %v3135_v29 = vld [vmem:[#allocation14 + $0xc0] sm:$0xf]  ;;  %v3804_v31 = vld [vmem:[#allocation14 + $0xc4] sm:$0xf] }
  0x31   :  { %v3156_v28 = vor.u32 %v3809_v26, %v3155_v25  ;;  %v3805_v30 = vld [vmem:[#allocation14 + $0xc8] sm:$0xf0]  ;;  %v3137_v32 = vld [vmem:[#allocation14 + $0xcc] sm:$0xf0]  ;;  %v3143_v33 = vld [vmem:[#allocation14 + $0xc8] sm:$0xf] }
  0x32   :  { %391 = vmatpush.bf16.msra.mxu1 %v3148_v23  ;;  %v3136_v36 = vor.u32 %v3805_v30, %v3135_v29  ;;  %v3140_v37 = vor.u32 %v3804_v31, %v3137_v32  ;;  %v3144_v38 = vor.u32 %v3806_v34, %v3143_v33  ;;  %v3123_v39 = vld [vmem:[#allocation14 + $0xa8] sm:$0xf]  ;;  %v3802_v40 = vld [vmem:[#allocation14 + $0xb0] sm:$0xf0]  ;;  %v3801_v41 = vld [vmem:[#allocation14 + $0xac] sm:$0xf] }
  0x33   :  { %405 = vmatpush.bf16.msra.mxu2 %v3152_v24  ;;  %v3125_v42 = vld [vmem:[#allocation14 + $0xb4] sm:$0xf0]  ;;  %v3131_v43 = vld [vmem:[#allocation14 + $0xb0] sm:$0xf]  ;;  %v3803_v44 = vld [vmem:[#allocation14 + $0xb8] sm:$0xf0]  ;;  %v3124_v45 = vor.u32 %v3802_v40, %v3123_v39 }
  0x34   :  { %213 = vmatpush.bf16.msra.mxu0 %v3063_v27  ;;  %419 = vmatpush.bf16.msra.mxu3 %v3156_v28  ;;  %v3128_v46 = vor.u32 %v3801_v41, %v3125_v42  ;;  %v3132_v47 = vor.u32 %v3803_v44, %v3131_v43  ;;  %v3111_v48 = vld [vmem:[#allocation14 + $0x90] sm:$0xf]  ;;  %v3799_v49 = vld [vmem:[#allocation14 + $0x98] sm:$0xf0]  ;;  %v3798_v50 = vld [vmem:[#allocation14 + $0x94] sm:$0xf] }
  0x35   :  { %v3113_v51 = vld [vmem:[#allocation14 + $0x9c] sm:$0xf0]  ;;  %v3119_v52 = vld [vmem:[#allocation14 + $0x98] sm:$0xf]  ;;  %v3800_v53 = vld [vmem:[#allocation14 + $0xa0] sm:$0xf0]  ;;  %v3112_v54 = vor.u32 %v3799_v49, %v3111_v48 }
  0x36   :  { %392 = vmatpush.bf16.msra.mxu1 %v3136_v36  ;;  %v3116_v55 = vor.u32 %v3798_v50, %v3113_v51  ;;  %v3120_v56 = vor.u32 %v3800_v53, %v3119_v52  ;;  %v3099_v57 = vld [vmem:[#allocation14 + $0x78] sm:$0xf]  ;;  %v3796_v58 = vld [vmem:[#allocation14 + $0x80] sm:$0xf0]  ;;  %v3795_v59 = vld [vmem:[#allocation14 + $0x7c] sm:$0xf] }
  0x37   :  { %3072 = vmatmul.msk.bf16.vlgmr.msra.gmra.mxu0 %vm202_vm0, %v176_v35  ;;  %406 = vmatpush.bf16.msra.mxu2 %v3140_v37  ;;  %v3100_v60 = vor.u32 %v3796_v58, %v3099_v57  ;;  %v3101_v61 = vld [vmem:[#allocation14 + $0x84] sm:$0xf0]  ;;  %v3107_v62 = vld [vmem:[#allocation14 + $0x80] sm:$0xf]  ;;  %v3797_v63 = vld [vmem:[#allocation14 + $0x88] sm:$0xf0] }
  0x38   :  { %420 = vmatpush.bf16.msra.mxu3 %v3144_v38  ;;  %v3104_v0 = vor.u32 %v3795_v59, %v3101_v61  ;;  %v3108_v1 = vor.u32 %v3797_v63, %v3107_v62  ;;  %v3087_v2 = vld [vmem:[#allocation14 + $0x60] sm:$0xf]  ;;  %v3793_v3 = vld [vmem:[#allocation14 + $0x68] sm:$0xf0]  ;;  %v3792_v4 = vld [vmem:[#allocation14 + $0x64] sm:$0xf] }
  0x39   :  { %v3088_v5 = vor.u32 %v3793_v3, %v3087_v2  ;;  %v3089_v6 = vld [vmem:[#allocation14 + $0x6c] sm:$0xf0]  ;;  %v3095_v7 = vld [vmem:[#allocation14 + $0x68] sm:$0xf]  ;;  %v3794_v8 = vld [vmem:[#allocation14 + $0x70] sm:$0xf0] }
  0x3a   :  { %393 = vmatpush.bf16.msra.mxu1 %v3124_v45  ;;  %v3092_v9 = vor.u32 %v3792_v4, %v3089_v6  ;;  %v3096_v10 = vor.u32 %v3794_v8, %v3095_v7  ;;  %v3075_v11 = vld [vmem:[#allocation14 + $0x48] sm:$0xf]  ;;  %v3790_v12 = vld [vmem:[#allocation14 + $0x50] sm:$0xf0]  ;;  %v3789_v13 = vld [vmem:[#allocation14 + $0x4c] sm:$0xf] }
  0x3b   :  { %407 = vmatpush.bf16.msra.mxu2 %v3128_v46  ;;  %v3076_v14 = vor.u32 %v3790_v12, %v3075_v11  ;;  %v3077_v15 = vld [vmem:[#allocation14 + $0x54] sm:$0xf0]  ;;  %v3083_v16 = vld [vmem:[#allocation14 + $0x50] sm:$0xf]  ;;  %v3791_v17 = vld [vmem:[#allocation14 + $0x58] sm:$0xf0] }
  0x3c   :  { %421 = vmatpush.bf16.msra.mxu3 %v3132_v47  ;;  %v3080_v18 = vor.u32 %v3789_v13, %v3077_v15  ;;  %v3084_v19 = vor.u32 %v3791_v17, %v3083_v16  ;;  %v183_v21 = vld [vmem:[#allocation16] ss:$0 sm:$0xff]  ;;  %v254_v27 = vld [vmem:[#allocation16 + $0x1] ss:$8 sm:$0x7]  ;;  %v3816_v48 = vld [vmem:[%s5154_s6 + $0x18] sm:$0xff] }
  0x3d   :  { %v256_v28 = vperm.slane %v254_v27, 0  ;;  %v257_v34 = vperm.slane %v254_v27, 1  ;;  %v258_v36 = vperm.slane %v254_v27, 2  ;;  %v3813_v38 = vld [vmem:[%s5154_s6] sm:$0xff]  ;;  %v3814_v46 = vld [vmem:[%s5154_s6 + $0x8] sm:$0xff]  ;;  %v3815_v47 = vld [vmem:[%s5154_s6 + $0x10] sm:$0xff] }
  0x3e   :  { %394 = vmatpush.bf16.msra.mxu1 %v3112_v54  ;;  %v3817_v49 = vld [vmem:[%s5154_s6 + $0x20] sm:$0xff]  ;;  %v3818_v50 = vld [vmem:[%s5154_s6 + $0x28] sm:$0xff]  ;;  %v3819_v51 = vld [vmem:[%s5154_s6 + $0x30] sm:$0xff]  ;;  %s3041_s26 = sshll.u32 %s5159_s11, 4  ;;  %s4472_s27 = smov [#allocation17]   ;;  %s3042_s26 = int_to_ptr.hbm [resolvable:$true] %s3041_s26 }
  0x3f   :  { %408 = vmatpush.bf16.msra.mxu2 %v3116_v55  ;;  %v3820_v52 = vld [vmem:[%s5154_s6 + $0x38] sm:$0xff]  ;;  %v4627_v4 = vld [vmem:[#allocation11 + $0x70] sm:$0xff]  ;;  %v4639_v15 = vld [vmem:[#allocation11 + $0x58] sm:$0xff]  ;;  %s3028_s28 = sshll.u32 %s4472_s27, 4  ;;  %s3030_s1 = sshll.u32 %s5158_s10, 4  ;;  %s3029_s28 = int_to_ptr.vmem [resolvable:$true] %s3028_s28  ;;  %s3031_s1 = int_to_ptr.hbm [resolvable:$true] %s3030_s1 }
  0x40   :  { %422 = vmatpush.bf16.msra.mxu3 %v3120_v56  ;;  %v4635_v11 = vld [vmem:[#allocation11 + $0x60] sm:$0xff]  ;;  %v4641_v16 = vld [vmem:[#allocation11 + $0x50] sm:$0xff]  ;;  %v4651_v27 = vld [vmem:[#allocation11 + $0x38] sm:$0xff] }
  0x42   :  { %395 = vmatpush.bf16.msra.mxu1 %v3100_v60 }
  0x43   :  { %409 = vmatpush.bf16.msra.mxu2 %v3104_v0 }
  0x44   :  { %423 = vmatpush.bf16.msra.mxu3 %v3108_v1 }
  0x46   :  { %396 = vmatpush.bf16.msra.mxu1 %v3088_v5  ;;  %v4629_v5 = vld [vmem:[#allocation11 + $0x78] sm:$0xff] }
  0x47   :  { %410 = vmatpush.bf16.msra.mxu2 %v3092_v9 }
  0x48   :  { %424 = vmatpush.bf16.msra.mxu3 %v3096_v10  ;;  %v4633_v10 = vld [vmem:[#allocation11 + $0x68] sm:$0xff] }
  0x4a   :  { %397 = vmatpush.bf16.msra.mxu1 %v3076_v14 }
  0x4b   :  { %411 = vmatpush.bf16.msra.mxu2 %v3080_v18 }
  0x4c   :  { %425 = vmatpush.bf16.msra.mxu3 %v3084_v19 }
  0xb4   :  { %v215_v20 = vpop.f32.mrf.mxu0 }
  0xb5   :  { %v4571_v23 = vadd.f32 %v215_v20, %v183_v21  ;;  %v4645_v20 = vld [vmem:[#allocation11 + $0x48] sm:$0xff] }
  0xbc   :  { %v217_v22 = vpop.f32.mrf.mxu0 }
  0xbd   :  { %v4573_v24 = vadd.f32 %v217_v22, %v183_v21  ;;  %v4647_v21 = vld [vmem:[#allocation11 + $0x40] sm:$0xff] }
  0xbf   :  { %v220_v25 = vpack.c.bf16 %v4573_v24, %v4571_v23 }
  0xc1   :  { %398 = vmatmul.bf16.vlgmr.msra.gmra.mxu1 %v220_v25  ;;  %412 = vmatmul.bf16.vlgmr.msra.gmra.mxu2 %v220_v25 }
  0xc2   :  { %426 = vmatmul.bf16.vlgmr.msra.gmra.mxu3 %v220_v25 }
 0x13e   :  { %v399_v26 = vpop.f32.mrf.mxu1 }
 0x13f   :  { %v400_v32 = vadd.f32 %v399_v26, %v256_v28 }
 0x144   :  { %v413_v29 = vpop.f32.mrf.mxu2 }
 0x145   :  { %v427_v30 = vpop.f32.mrf.mxu3  ;;  %v414_v39 = vadd.f32 %v413_v29, %v257_v34 }
 0x146   :  { %v401_v31 = vpop.f32.mrf.mxu1  ;;  %v428_v42 = vadd.f32 %v427_v30, %v258_v36 }
 0x147   :  { %v402_v33 = vadd.f32 %v401_v31, %v256_v28  ;;  %v4653_v28 = vld [vmem:[#allocation11 + $0x30] sm:$0xff] }
 0x149   :  { %v448_v35 = vpack.c.bf16 %v402_v33, %v400_v32  ;;  %v4657_v33 = vld [vmem:[#allocation11 + $0x28] sm:$0xff] }
 0x14b   :  { %523 = vmatpush.bf16.msrb.mxu0 %v448_v35 }
 0x14c   :  { %v415_v37 = vpop.f32.mrf.mxu2 }
 0x14d   :  { %v416_v40 = vadd.f32 %v415_v37, %v257_v34  ;;  %v429_v41 = vpop.f32.mrf.mxu3  ;;  %v4659_v34 = vld [vmem:[#allocation11 + $0x20] sm:$0xff] }
 0x14e   :  { %v430_v43 = vadd.f32 %v429_v41, %v258_v36  ;;  %3201 = vmatmul.msk.bf16.vlgmr.msrb.gmra.mxu0 %vm491_vm1, %v3813_v38 }
 0x14f   :  { %v449_v44 = vpack.c.bf16 %v416_v40, %v414_v39  ;;  %v4665_v40 = vld [vmem:[#allocation11 + $0x10] sm:$0xff] }
 0x150   :  { %v450_v45 = vpack.c.bf16 %v430_v43, %v428_v42 }
 0x151   :  { %572 = vmatpush.bf16.msrb.mxu1 %v449_v44  ;;  %v4669_v44 = vld [vmem:[#allocation11 + $0x8] sm:$0xff] }
 0x152   :  { %621 = vmatpush.bf16.msrb.mxu2 %v450_v45  ;;  %v4671_v45 = vld [vmem:[#allocation11] sm:$0xff] }
 0x154   :  { %3209 = vmatmul.msk.bf16.vlgmr.msrb.gmra.mxu1 %vm491_vm1, %v3813_v38 }
 0x155   :  { %3217 = vmatmul.msk.bf16.vlgmr.msrb.gmra.mxu2 %vm491_vm1, %v3813_v38  ;;  %v4663_v38 = vld [vmem:[#allocation11 + $0x18] sm:$0xff] }
 0x15e   :  { %3202 = vmatmul.msk.bf16.gmra.mxu0 %vm491_vm1, %v3814_v46 }
 0x164   :  { %3210 = vmatmul.msk.bf16.gmra.mxu1 %vm491_vm1, %v3814_v46 }
 0x165   :  { %3218 = vmatmul.msk.bf16.gmra.mxu2 %vm491_vm1, %v3814_v46 }
 0x16e   :  { %3203 = vmatmul.msk.bf16.gmra.mxu0 %vm491_vm1, %v3815_v47 }
 0x174   :  { %3211 = vmatmul.msk.bf16.gmra.mxu1 %vm491_vm1, %v3815_v47 }
 0x175   :  { %3219 = vmatmul.msk.bf16.gmra.mxu2 %vm491_vm1, %v3815_v47 }
 0x17e   :  { %3204 = vmatmul.msk.bf16.gmra.mxu0 %vm491_vm1, %v3816_v48 }
 0x184   :  { %3212 = vmatmul.msk.bf16.gmra.mxu1 %vm491_vm1, %v3816_v48 }
 0x185   :  { %3220 = vmatmul.msk.bf16.gmra.mxu2 %vm491_vm1, %v3816_v48 }
 0x18e   :  { %3205 = vmatmul.msk.bf16.gmra.mxu0 %vm491_vm1, %v3817_v49 }
 0x194   :  { %3213 = vmatmul.msk.bf16.gmra.mxu1 %vm491_vm1, %v3817_v49 }
 0x195   :  { %3221 = vmatmul.msk.bf16.gmra.mxu2 %vm491_vm1, %v3817_v49 }
 0x19e   :  { %3206 = vmatmul.msk.bf16.gmra.mxu0 %vm491_vm1, %v3818_v50 }
 0x1a4   :  { %3214 = vmatmul.msk.bf16.gmra.mxu1 %vm491_vm1, %v3818_v50 }
 0x1a5   :  { %3222 = vmatmul.msk.bf16.gmra.mxu2 %vm491_vm1, %v3818_v50 }
 0x1ae   :  { %3207 = vmatmul.msk.bf16.gmra.mxu0 %vm491_vm1, %v3819_v51 }
 0x1b4   :  { %3215 = vmatmul.msk.bf16.gmra.mxu1 %vm491_vm1, %v3819_v51 }
 0x1b5   :  { %3223 = vmatmul.msk.bf16.gmra.mxu2 %vm491_vm1, %v3819_v51 }
 0x1be   :  { %3208 = vmatmul.msk.bf16.gmra.mxu0 %vm491_vm1, %v3820_v52 }
 0x1c4   :  { %3216 = vmatmul.msk.bf16.gmra.mxu1 %vm491_vm1, %v3820_v52 }
 0x1c5   :  { %3224 = vmatmul.msk.bf16.gmra.mxu2 %vm491_vm1, %v3820_v52 }
 0x1cb   :  { %v525_v32 = vpop.f32.mrf.mxu0 }
 0x1d1   :  { %v4625_v53 = vpop.f32.mrf.mxu1 }
 0x1d2   :  { %v679_v48 = vmul.f32 %v4671_v45, %v4625_v53 }
 0x1d3   :  { %v527_v39 = vpop.f32.mrf.mxu0 }
 0x1d4   :  { %v711_v51 = vpack.c.bf16 %v527_v39, %v525_v32 }
 0x1d9   :  { %v576_v54 = vpop.f32.mrf.mxu1 }
 0x1da   :  { %v680_v46 = vmul.f32 %v4669_v44, %v576_v54 }
 0x1db   :  { %v530_v47 = vpop.f32.mrf.mxu0 }
 0x1dc   :  { %v719_v49 = vpack.c.bf16 %v680_v46, %v679_v48 }
 0x1e1   :  { %v579_v55 = vpop.f32.mrf.mxu1 }
 0x1e2   :  { %v681_v42 = vmul.f32 %v4665_v40, %v579_v55 }
 0x1e3   :  { %v532_v50 = vpop.f32.mrf.mxu0 }
 0x1e9   :  { %v581_v56 = vpop.f32.mrf.mxu1 }
 0x1ea   :  { %v682_v41 = vmul.f32 %v4663_v38, %v581_v56  ;;  %v712_v56 = vpack.c.bf16 %v532_v50, %v530_v47  ;;  %v732_v47 = vld [vmem:[#allocation10 + $0x28] sm:$0xff] }
 0x1eb   :  { %v535_v52 = vpop.f32.mrf.mxu0 }
 0x1ec   :  { %v720_v43 = vpack.c.bf16 %v682_v41, %v681_v42  ;;  %v731_v41 = vld [vmem:[#allocation10 + $0x20] sm:$0xff] }
 0x1f1   :  { %v584_v57 = vpop.f32.mrf.mxu1 }
 0x1f2   :  { %v683_v36 = vmul.f32 %v4659_v34, %v584_v57 }
 0x1f3   :  { %v537_v55 = vpop.f32.mrf.mxu0 }
 0x1f9   :  { %v586_v58 = vpop.f32.mrf.mxu1 }
 0x1fa   :  { %v684_v35 = vmul.f32 %v4657_v33, %v586_v58  ;;  %v713_v58 = vpack.c.bf16 %v537_v55, %v535_v52 }
 0x1fb   :  { %v540_v57 = vpop.f32.mrf.mxu0 }
 0x1fc   :  { %v721_v37 = vpack.c.bf16 %v684_v35, %v683_v36  ;;  %v730_v35 = vld [vmem:[#allocation10 + $0x18] sm:$0xff] }
 0x201   :  { %v589_v59 = vpop.f32.mrf.mxu1 }
 0x202   :  { %v685_v30 = vmul.f32 %v4653_v28, %v589_v59 }
 0x203   :  { %v542_v59 = vpop.f32.mrf.mxu0 }
 0x209   :  { %v591_v60 = vpop.f32.mrf.mxu1 }
 0x20a   :  { %v686_v29 = vmul.f32 %v4651_v27, %v591_v60 }
 0x20b   :  { %v545_v60 = vpop.f32.mrf.mxu0 }
 0x20c   :  { %v722_v31 = vpack.c.bf16 %v686_v29, %v685_v30  ;;  %v729_v29 = vld [vmem:[#allocation10 + $0x10] sm:$0xff] }
 0x211   :  { %v594_v61 = vpop.f32.mrf.mxu1 }
 0x212   :  { %v687_v25 = vmul.f32 %v4647_v21, %v594_v61  ;;  %v714_v61 = vpack.c.bf16 %v542_v59, %v540_v57  ;;  %v734_v57 = vld [vmem:[#allocation10 + $0x38] sm:$0xff] }
 0x213   :  { %v547_v54 = vpop.f32.mrf.mxu0 }
 0x219   :  { %v596_v62 = vpop.f32.mrf.mxu1 }
 0x21a   :  { %v688_v22 = vmul.f32 %v4645_v20, %v596_v62  ;;  %v715_v62 = vpack.c.bf16 %v547_v54, %v545_v60 }
 0x21c   :  { %v723_v26 = vpack.c.bf16 %v688_v22, %v687_v25 }
 0x221   :  { %v599_v63 = vpop.f32.mrf.mxu1 }
 0x222   :  { %v689_v18 = vmul.f32 %v4641_v16, %v599_v63  ;;  %v550_v63 = vpop.f32.mrf.mxu0 }
 0x229   :  { %v601_v0 = vpop.f32.mrf.mxu1 }
 0x22a   :  { %v690_v17 = vmul.f32 %v4639_v15, %v601_v0  ;;  %v552_v53 = vpop.f32.mrf.mxu0 }
 0x22b   :  { %v716_v0 = vpack.c.bf16 %v552_v53, %v550_v63 }
 0x22c   :  { %v724_v19 = vpack.c.bf16 %v690_v17, %v689_v18 }
 0x231   :  { %v604_v1 = vpop.f32.mrf.mxu1 }
 0x232   :  { %v691_v13 = vmul.f32 %v4635_v11, %v604_v1  ;;  %v555_v1 = vpop.f32.mrf.mxu0 }
 0x239   :  { %v606_v2 = vpop.f32.mrf.mxu1 }
 0x23a   :  { %v692_v12 = vmul.f32 %v4633_v10, %v606_v2  ;;  %v557_v2 = vpop.f32.mrf.mxu0 }
 0x23c   :  { %v725_v14 = vpack.c.bf16 %v692_v12, %v691_v13  ;;  %v727_v13 = vld [vmem:[#allocation10] sm:$0xff] }
 0x241   :  { %v609_v3 = vpop.f32.mrf.mxu1 }
 0x242   :  { %v693_v7 = vmul.f32 %v4627_v4, %v609_v3  ;;  %v717_v3 = vpack.c.bf16 %v557_v2, %v555_v1 }
 0x249   :  { %v611_v6 = vpop.f32.mrf.mxu1 }
 0x24a   :  { %v694_v8 = vmul.f32 %v4629_v5, %v611_v6  ;;  %v560_v6 = vpop.f32.mrf.mxu0 }
 0x24c   :  { %v726_v9 = vpack.c.bf16 %v694_v8, %v693_v7  ;;  %v4676_v7 = vpop.f32.mrf.mxu2 }
 0x24e   :  { %743 = vmatpush.bf16.xpose.msrb.mxu3 %v726_v9 }
 0x252   :  { %v562_v8 = vpop.f32.mrf.mxu0 }
 0x253   :  { %v718_v9 = vpack.c.bf16 %v562_v8, %v560_v6 }
 0x254   :  { %v4678_v12 = vpop.f32.mrf.mxu2 }
 0x256   :  { %744 = vmatpush.bf16.xpose.msrb.mxu3 %v725_v14 }
 0x25c   :  { %v4680_v18 = vpop.f32.mrf.mxu2 }
 0x25e   :  { %745 = vmatpush.bf16.xpose.msrb.mxu3 %v724_v19  ;;  %v728_v19 = vld [vmem:[#allocation10 + $0x8] sm:$0xff] }
 0x266   :  { %746 = vmatpush.bf16.xpose.msrb.mxu3 %v723_v26  ;;  %v4685_v26 = vpop.f32.mrf.mxu2 }
 0x26e   :  { %747 = vmatpush.bf16.xpose.msrb.mxu3 %v722_v31  ;;  %v4690_v32 = vpop.f32.mrf.mxu2 }
 0x276   :  { %748 = vmatpush.bf16.xpose.msrb.mxu3 %v721_v37  ;;  %v635_v39 = vpop.f32.mrf.mxu2 }
 0x27e   :  { %749 = vmatpush.bf16.xpose.msrb.mxu3 %v720_v43  ;;  %v638_v46 = vpop.f32.mrf.mxu2 }
 0x286   :  { %750 = vmatpush.bf16.xpose.msrb.mxu3 %v719_v49  ;;  %v640_v50 = vpop.f32.mrf.mxu2 }
 0x28d   :  { %751 = vmatmul.bf16.vlgmr.msrb.gmra.mxu3 %v711_v51  ;;  %v733_v51 = vld [vmem:[#allocation10 + $0x30] sm:$0xff] }
 0x28e   :  { %v643_v55 = vpop.f32.mrf.mxu2 }
 0x296   :  { %v645_v60 = vpop.f32.mrf.mxu2 }
 0x29d   :  { %756 = vmatmul.bf16.gmra.mxu3 %v712_v56 }
 0x29e   :  { %v648_v63 = vpop.f32.mrf.mxu2 }
 0x2a6   :  { %v650_v53 = vpop.f32.mrf.mxu2 }
 0x2ad   :  { %761 = vmatmul.bf16.gmra.mxu3 %v713_v58 }
 0x2bd   :  { %766 = vmatmul.bf16.gmra.mxu3 %v714_v61  ;;  %v735_v61 = vld [vmem:[#allocation10 + $0x40] sm:$0xff] }
 0x2cd   :  { %771 = vmatmul.bf16.gmra.mxu3 %v715_v62 }
 0x2dd   :  { %776 = vmatmul.bf16.gmra.mxu3 %v716_v0  ;;  %v653_v0 = vpop.f32.mrf.mxu2 }
 0x2de   :  { %v707_v8 = vmul.f32 %v4635_v11, %v653_v0  ;;  %v739_v0 = vld [vmem:[#allocation10 + $0x60] sm:$0xff] }
 0x2e5   :  { %v655_v1 = vpop.f32.mrf.mxu2 }
 0x2ed   :  { %781 = vmatmul.bf16.gmra.mxu3 %v717_v3  ;;  %v658_v2 = vpop.f32.mrf.mxu2 }
 0x2ee   :  { %v709_v3 = vmul.f32 %v4627_v4, %v658_v2  ;;  %v703_v4 = vmul.f32 %v4647_v21, %v643_v55  ;;  %v700_v21 = vmul.f32 %v4657_v33, %v635_v39  ;;  %v695_v33 = vmul.f32 %v4671_v45, %v4676_v7 }
 0x2f5   :  { %v660_v6 = vpop.f32.mrf.mxu2 }
 0x2fd   :  { %786 = vmatmul.bf16.gmra.mxu3 %v718_v9  ;;  %v708_v9 = vmul.f32 %v4633_v10, %v655_v1  ;;  %v702_v10 = vmul.f32 %v4651_v27, %v640_v50  ;;  %v736_v27 = vld [vmem:[#allocation10 + $0x48] sm:$0xff]  ;;  %v698_v50 = vmul.f32 %v4663_v38, %v4685_v26  ;;  %v737_v38 = vld [vmem:[#allocation10 + $0x50] sm:$0xff] }
 0x310   :  { %v752_v14 = vpop.f32.mrf.mxu3 }
 0x311   :  { %v753_v17 = vadd.f32 %v752_v14, %v727_v13  ;;  %v710_v13 = vmul.f32 %v4629_v5, %v660_v6  ;;  %v701_v5 = vmul.f32 %v4653_v28, %v638_v46 }
 0x313   :  { %792 = vmax.xlane.f32.xlu0 %v753_v17  ;;  %v951_v14 = vpack.c.bf16 %v710_v13, %v709_v3 }
 0x315   :  { %952 = vmatpush.bf16.msra.mxu0 %v951_v14 }
 0x318   :  { %v754_v22 = vpop.f32.mrf.mxu3 }
 0x319   :  { %v4682_v25 = vadd.f32 %v754_v22, %v728_v19  ;;  %v705_v19 = vmul.f32 %v4641_v16, %v648_v63  ;;  %v706_v22 = vmul.f32 %v4639_v15, %v650_v53 }
 0x31b   :  { %794 = vmax.xlane.f32.xlu0 %v4682_v25  ;;  %v949_v11 = vpack.c.bf16 %v706_v22, %v705_v19 }
 0x320   :  { %v757_v30 = vpop.f32.mrf.mxu3 }
 0x321   :  { %v4687_v31 = vadd.f32 %v757_v30, %v729_v29  ;;  %v950_v30 = vpack.c.bf16 %v708_v9, %v707_v8  ;;  %v740_v9 = vld [vmem:[#allocation10 + $0x68] sm:$0xff] }
 0x323   :  { %796 = vmax.xlane.f32.xlu1 %v4687_v31  ;;  %953 = vmatpush.bf16.msra.mxu0 %v950_v30  ;;  %v741_v30 = vld [vmem:[#allocation10 + $0x70] sm:$0xff] }
 0x327   :  { %954 = vmatpush.bf16.msra.mxu0 %v949_v11  ;;  %v742_v11 = vld [vmem:[#allocation10 + $0x78] sm:$0xff] }
 0x328   :  { %v759_v36 = vpop.f32.mrf.mxu3 }
 0x329   :  { %v4692_v37 = vadd.f32 %v759_v36, %v730_v35 }
 0x32b   :  { %798 = vmax.xlane.f32.xlu1 %v4692_v37 }
 0x330   :  { %v762_v42 = vpop.f32.mrf.mxu3 }
 0x331   :  { %v4695_v43 = vadd.f32 %v762_v42, %v731_v41  ;;  %v704_v42 = vmul.f32 %v4645_v20, %v645_v60  ;;  %v699_v20 = vmul.f32 %v4659_v34, %v4690_v32 }
 0x333   :  { %800 = vmax.xlane.f32.xlu2 %v4695_v43  ;;  %v948_v16 = vpack.c.bf16 %v704_v42, %v703_v4 }
 0x335   :  { %955 = vmatpush.bf16.msra.mxu0 %v948_v16 }
 0x338   :  { %v764_v48 = vpop.f32.mrf.mxu3 }
 0x339   :  { %v4698_v49 = vadd.f32 %v764_v48, %v732_v47 }
 0x33b   :  { %802 = vmax.xlane.f32.xlu2 %v4698_v49 }
 0x340   :  { %v767_v52 = vpop.f32.mrf.mxu3 }
 0x341   :  { %v4701_v56 = vadd.f32 %v767_v52, %v733_v51  ;;  %v947_v51 = vpack.c.bf16 %v702_v10, %v701_v5  ;;  %v946_v52 = vpack.c.bf16 %v700_v21, %v699_v20 }
 0x343   :  { %804 = vmax.xlane.f32.xlu0 %v4701_v56  ;;  %956 = vmatpush.bf16.msra.mxu0 %v947_v51 }
 0x347   :  { %957 = vmatpush.bf16.msra.mxu0 %v946_v52 }
 0x348   :  { %v769_v58 = vpop.f32.mrf.mxu3 }
 0x349   :  { %v4704_v59 = vadd.f32 %v769_v58, %v734_v57 }
 0x34b   :  { %806 = vmax.xlane.f32.xlu1 %v4704_v59 }
 0x350   :  { %v772_v54 = vpop.f32.mrf.mxu3 }
 0x351   :  { %v4707_v62 = vadd.f32 %v772_v54, %v735_v61 }
 0x353   :  { %808 = vmax.xlane.f32.xlu1 %v4707_v62 }
 0x358   :  { %v774_v41 = vpop.f32.mrf.mxu3 }
 0x359   :  { %v4732_v57 = vadd.f32 %v774_v41, %v736_v27 }
 0x360   :  { %v777_v28 = vpop.f32.mrf.mxu3 }
 0x361   :  { %v4743_v60 = vadd.f32 %v777_v28, %v737_v38 }
 0x368   :  { %v779_v26 = vpop.f32.mrf.mxu3 }
 0x370   :  { %v782_v7 = vpop.f32.mrf.mxu3 }
 0x371   :  { %v4757_v3 = vadd.f32 %v782_v7, %v739_v0 }
 0x378   :  { %v784_v8 = vpop.f32.mrf.mxu3 }
 0x379   :  { %v4764_v19 = vadd.f32 %v784_v8, %v740_v9 }
 0x386   :  { %v793_v29 = vpop.xlane.xlu0 %792 }
 0x387   :  { %v824_v35 = vsub.f32 %v753_v17, %v793_v29  ;;  %v787_v29 = vpop.f32.mrf.mxu3 }
 0x388   :  { %v4771_v41 = vadd.f32 %v787_v29, %v741_v30 }
 0x389   :  { %v840_v36 = vmul.f32 1.442695, %v824_v35 }
 0x38b   :  { %3974 = vpow2.f32 %v840_v36 }
 0x38e   :  { %v795_v47 = vpop.xlane.xlu0 %794 }
 0x38f   :  { %v825_v15 = vsub.f32 %v4682_v25, %v795_v47  ;;  %v697_v25 = vmul.f32 %v4665_v40, %v4680_v18  ;;  %v696_v40 = vmul.f32 %v4669_v44, %v4678_v12  ;;  %v738_v44 = vld [vmem:[#allocation10 + $0x58] sm:$0xff]  ;;  %v789_v42 = vpop.f32.mrf.mxu3 }
 0x390   :  { %v4750_v63 = vadd.f32 %v779_v26, %v738_v44  ;;  %v4778_v16 = vadd.f32 %v789_v42, %v742_v11 }
 0x391   :  { %v4721_v48 = vpop.eup %3974  ;;  %v842_v17 = vmul.f32 1.442695, %v825_v15  ;;  %v945_v18 = vpack.c.bf16 %v698_v50, %v697_v25  ;;  %v944_v32 = vpack.c.bf16 %v696_v40, %v695_v33 }
 0x392   :  { %872 = vadd.xlane.f32.xlu2 %v4721_v48 }
 0x393   :  { %3976 = vpow2.f32 %v842_v17  ;;  %958 = vmatpush.bf16.msra.mxu0 %v945_v18 }
 0x396   :  { %v797_v46 = vpop.xlane.xlu1 %796 }
 0x397   :  { %v826_v55 = vsub.f32 %v4687_v31, %v797_v46  ;;  %959 = vmatpush.bf16.msra.mxu0 %v944_v32 }
 0x399   :  { %v4734_v58 = vpop.eup %3976  ;;  %v844_v34 = vmul.f32 1.442695, %v826_v55 }
 0x39a   :  { %874 = vadd.xlane.f32.xlu0 %v4734_v58  ;;  %810 = vmax.xlane.f32.xlu2 %v4732_v57 }
 0x39b   :  { %3978 = vpow2.f32 %v844_v34 }
 0x39e   :  { %v799_v31 = vpop.xlane.xlu1 %798 }
 0x39f   :  { %v827_v39 = vsub.f32 %v4692_v37, %v799_v31 }
 0x3a1   :  { %v4745_v61 = vpop.eup %3978  ;;  %v846_v54 = vmul.f32 1.442695, %v827_v39 }
 0x3a2   :  { %876 = vadd.xlane.f32.xlu0 %v4745_v61  ;;  %812 = vmax.xlane.f32.xlu2 %v4743_v60 }
 0x3a3   :  { %3980 = vpow2.f32 %v846_v54 }
 0x3a6   :  { %v801_v45 = vpop.xlane.xlu2 %800 }
 0x3a7   :  { %v828_v12 = vsub.f32 %v4695_v43, %v801_v45 }
 0x3a9   :  { %v4752_v37 = vpop.eup %3980  ;;  %v848_v53 = vmul.f32 1.442695, %v828_v12 }
 0x3aa   :  { %878 = vadd.xlane.f32.xlu1 %v4752_v37  ;;  %814 = vmax.xlane.f32.xlu0 %v4750_v63 }
 0x3ab   :  { %3982 = vpow2.f32 %v848_v53 }
 0x3ae   :  { %v803_v1 = vpop.xlane.xlu2 %802 }
 0x3af   :  { %v829_v2 = vsub.f32 %v4698_v49, %v803_v1 }
 0x3b1   :  { %v4759_v6 = vpop.eup %3982  ;;  %v850_v43 = vmul.f32 1.442695, %v829_v2 }
 0x3b2   :  { %880 = vadd.xlane.f32.xlu1 %v4759_v6  ;;  %816 = vmax.xlane.f32.xlu0 %v4757_v3 }
 0x3b3   :  { %3984 = vpow2.f32 %v850_v43 }
 0x3b6   :  { %v805_v13 = vpop.xlane.xlu0 %804 }
 0x3b7   :  { %v830_v14 = vsub.f32 %v4701_v56, %v805_v13 }
 0x3b9   :  { %v4766_v22 = vpop.eup %3984  ;;  %v852_v49 = vmul.f32 1.442695, %v830_v14 }
 0x3ba   :  { %882 = vadd.xlane.f32.xlu2 %v4766_v22  ;;  %818 = vmax.xlane.f32.xlu1 %v4764_v19 }
 0x3bb   :  { %3986 = vpow2.f32 %v852_v49 }
 0x3be   :  { %v807_v35 = vpop.xlane.xlu1 %806 }
 0x3bf   :  { %v831_v36 = vsub.f32 %v4704_v59, %v807_v35 }
 0x3c1   :  { %v4773_v4 = vpop.eup %3986  ;;  %v854_v56 = vmul.f32 1.442695, %v831_v36 }
 0x3c2   :  { %884 = vadd.xlane.f32.xlu2 %v4773_v4  ;;  %820 = vmax.xlane.f32.xlu1 %v4771_v41 }
 0x3c3   :  { %3988 = vpow2.f32 %v854_v56 }
 0x3c6   :  { %v809_v5 = vpop.xlane.xlu1 %808 }
 0x3c7   :  { %v832_v10 = vsub.f32 %v4707_v62, %v809_v5 }
 0x3c9   :  { %v4780_v47 = vpop.eup %3988  ;;  %v856_v59 = vmul.f32 1.442695, %v832_v10 }
 0x3ca   :  { %886 = vadd.xlane.f32.xlu0 %v4780_v47  ;;  %822 = vmax.xlane.f32.xlu2 %v4778_v16 }
 0x3cb   :  { %3990 = vpow2.f32 %v856_v59 }
 0x3d1   :  { %v4784_v15 = vpop.eup %3990 }
 0x3d2   :  { %888 = vadd.xlane.f32.xlu0 %v4784_v15 }
 0x405   :  { %v873_v17 = vpop.xlane.xlu2 %872 }
 0x406   :  { %3992 = vrcp.f32 %v873_v17 }
 0x40c   :  { %v3993_v28 = vpop.eup %3992 }
 0x40d   :  { %v875_v51 = vpop.xlane.xlu0 %874  ;;  %v811_v20 = vpop.xlane.xlu2 %810  ;;  %v920_v46 = vmul.f32 %v3993_v28, %v4721_v48 }
 0x40e   :  { %3994 = vrcp.f32 %v875_v51  ;;  %v833_v62 = vsub.f32 %v4732_v57, %v811_v20 }
 0x410   :  { %v858_v21 = vmul.f32 1.442695, %v833_v62 }
 0x412   :  { %3996 = vpow2.f32 %v858_v21 }
 0x414   :  { %v3995_v27 = vpop.eup %3994 }
 0x415   :  { %v921_v25 = vmul.f32 %v3995_v27, %v4734_v58  ;;  %v877_v50 = vpop.xlane.xlu0 %876  ;;  %v813_v52 = vpop.xlane.xlu2 %812 }
 0x416   :  { %v834_v55 = vsub.f32 %v4743_v60, %v813_v52 }
 0x417   :  { %v936_v34 = vpack.c.bf16 %v921_v25, %v920_v46 }
 0x418   :  { %v4791_v33 = vpop.eup %3996  ;;  %v860_v40 = vmul.f32 1.442695, %v834_v55 }
 0x419   :  { %960 = vmatmul.bf16.vlgmr.msra.gmra.mxu0 %v936_v34  ;;  %890 = vadd.xlane.f32.xlu1 %v4791_v33 }
 0x41a   :  { %3998 = vpow2.f32 %v860_v40 }
 0x41b   :  { %4000 = vrcp.f32 %v877_v50 }
 0x41d   :  { %v879_v57 = vpop.xlane.xlu1 %878  ;;  %v815_v18 = vpop.xlane.xlu0 %814 }
 0x41e   :  { %4002 = vrcp.f32 %v879_v57  ;;  %v835_v48 = vsub.f32 %v4750_v63, %v815_v18 }
 0x420   :  { %v4795_v38 = vpop.eup %3998  ;;  %v862_v58 = vmul.f32 1.442695, %v835_v48 }
 0x421   :  { %892 = vadd.xlane.f32.xlu2 %v4795_v38  ;;  %v4001_v26 = vpop.eup %4000 }
 0x422   :  { %4004 = vpow2.f32 %v862_v58  ;;  %v922_v60 = vmul.f32 %v4001_v26, %v4745_v61 }
 0x424   :  { %v4003_v31 = vpop.eup %4002 }
 0x425   :  { %v881_v32 = vpop.xlane.xlu1 %880  ;;  %v817_v39 = vpop.xlane.xlu0 %816  ;;  %v923_v54 = vmul.f32 %v4003_v31, %v4752_v37 }
 0x426   :  { %v836_v44 = vsub.f32 %v4757_v3, %v817_v39 }
 0x427   :  { %v937_v45 = vpack.c.bf16 %v923_v54, %v922_v60 }
 0x428   :  { %v4005_v7 = vpop.eup %4004  ;;  %v864_v12 = vmul.f32 1.442695, %v836_v44 }
 0x429   :  { %965 = vmatmul.bf16.gmra.mxu0 %v937_v45  ;;  %894 = vadd.xlane.f32.xlu0 %v4005_v7 }
 0x42a   :  { %4006 = vpow2.f32 %v864_v12 }
 0x42b   :  { %4008 = vrcp.f32 %v881_v32 }
 0x42d   :  { %v883_v63 = vpop.xlane.xlu2 %882  ;;  %v819_v53 = vpop.xlane.xlu1 %818 }
 0x42e   :  { %4010 = vrcp.f32 %v883_v63  ;;  %v837_v0 = vsub.f32 %v4764_v19, %v819_v53 }
 0x430   :  { %v4007_v1 = vpop.eup %4006  ;;  %v866_v2 = vmul.f32 1.442695, %v837_v0 }
 0x431   :  { %896 = vadd.xlane.f32.xlu1 %v4007_v1  ;;  %v4009_v61 = vpop.eup %4008 }
 0x432   :  { %4012 = vpow2.f32 %v866_v2  ;;  %v924_v43 = vmul.f32 %v4009_v61, %v4759_v6 }
 0x434   :  { %v4011_v37 = vpop.eup %4010 }
 0x435   :  { %v885_v8 = vpop.xlane.xlu2 %884  ;;  %v821_v3 = vpop.xlane.xlu1 %820  ;;  %v925_v9 = vmul.f32 %v4011_v37, %v4766_v22 }
 0x436   :  { %v838_v13 = vsub.f32 %v4771_v41, %v821_v3 }
 0x437   :  { %v938_v14 = vpack.c.bf16 %v925_v9, %v924_v43  ;;  %v3259_v43 = vld [vmem:[#allocation14 + $0x1b0] sm:$0xf]  ;;  %v3829_v9 = vld [vmem:[#allocation14 + $0x1b8] sm:$0xf0] }
 0x438   :  { %v4013_v49 = vpop.eup %4012  ;;  %v868_v29 = vmul.f32 1.442695, %v838_v13  ;;  %v3255_v13 = vld [vmem:[#allocation14 + $0x198] sm:$0xf] }
 0x439   :  { %970 = vmatmul.bf16.gmra.mxu0 %v938_v14  ;;  %898 = vadd.xlane.f32.xlu2 %v4013_v49  ;;  %v3260_v14 = vor.u32 %v3829_v9, %v3259_v43  ;;  %v3835_v43 = vld [vmem:[#allocation14 + $0x248] sm:$0xf0] }
 0x43a   :  { %4014 = vpow2.f32 %v868_v29 }
 0x43b   :  { %4016 = vrcp.f32 %v885_v8  ;;  %1097 = vmatpush.bf16.msra.mxu2 %v3260_v14  ;;  %v3834_v14 = vld [vmem:[#allocation14 + $0x230] sm:$0xf0] }
 0x43d   :  { %v887_v19 = vpop.xlane.xlu0 %886  ;;  %v823_v30 = vpop.xlane.xlu2 %822 }
 0x43e   :  { %4018 = vrcp.f32 %v887_v19  ;;  %v839_v35 = vsub.f32 %v4778_v16, %v823_v30  ;;  %v3251_v30 = vld [vmem:[#allocation14 + $0x180] sm:$0xf] }
 0x440   :  { %v4015_v36 = vpop.eup %4014  ;;  %v870_v56 = vmul.f32 1.442695, %v839_v35  ;;  %v3827_v35 = vld [vmem:[#allocation14 + $0x188] sm:$0xf0] }
 0x441   :  { %900 = vadd.xlane.f32.xlu0 %v4015_v36  ;;  %v4017_v6 = vpop.eup %4016 }
 0x442   :  { %4020 = vpow2.f32 %v870_v56  ;;  %v926_v41 = vmul.f32 %v4017_v6, %v4773_v4  ;;  %v3252_v56 = vor.u32 %v3827_v35, %v3251_v30  ;;  %v3247_v6 = vld [vmem:[#allocation14 + $0x168] sm:$0xf]  ;;  %v3271_v35 = vld [vmem:[#allocation14 + $0x1f8] sm:$0xf] }
 0x444   :  { %v4019_v22 = vpop.eup %4018 }
 0x445   :  { %v927_v42 = vmul.f32 %v4019_v22, %v4780_v47  ;;  %v889_v10 = vpop.xlane.xlu0 %888  ;;  %v3826_v22 = vld [vmem:[#allocation14 + $0x170] sm:$0xf0] }
 0x446   :  { %4022 = vrcp.f32 %v889_v10 }
 0x447   :  { %v939_v11 = vpack.c.bf16 %v927_v42, %v926_v41  ;;  %v3248_v42 = vor.u32 %v3826_v22, %v3247_v6  ;;  %v3267_v6 = vld [vmem:[#allocation14 + $0x1e0] sm:$0xf]  ;;  %v3831_v22 = vld [vmem:[#allocation14 + $0x1e8] sm:$0xf0] }
 0x448   :  { %v4021_v5 = vpop.eup %4020 }
 0x449   :  { %975 = vmatmul.bf16.gmra.mxu0 %v939_v11  ;;  %902 = vadd.xlane.f32.xlu1 %v4021_v5  ;;  %v3243_v11 = vld [vmem:[#allocation14 + $0x150] sm:$0xf] }
 0x44c   :  { %v4023_v17 = vpop.eup %4022 }
 0x44d   :  { %v928_v51 = vmul.f32 %v4023_v17, %v4784_v15 }
 0x48c   :  { %v891_v59 = vpop.xlane.xlu1 %890 }
 0x48d   :  { %4024 = vrcp.f32 %v891_v59 }
 0x493   :  { %v4025_v16 = vpop.eup %4024 }
 0x494   :  { %v929_v20 = vmul.f32 %v4025_v16, %v4791_v33  ;;  %v893_v21 = vpop.xlane.xlu2 %892 }
 0x495   :  { %4026 = vrcp.f32 %v893_v21  ;;  %v3824_v21 = vld [vmem:[#allocation14 + $0x140] sm:$0xf0] }
 0x496   :  { %v940_v62 = vpack.c.bf16 %v929_v20, %v928_v51  ;;  %v961_v32 = vpop.f32.mrf.mxu0  ;;  %v3821_v20 = vld [vmem:[#allocation13] sm:$0xff] }
 0x498   :  { %980 = vmatmul.bf16.gmra.mxu0 %v940_v62  ;;  %v3239_v62 = vld [vmem:[#allocation14 + $0x138] sm:$0xf] }
 0x49b   :  { %v4027_v47 = vpop.eup %4026 }
 0x49c   :  { %v895_v4 = vpop.xlane.xlu0 %894  ;;  %v930_v27 = vmul.f32 %v4027_v47, %v4795_v38  ;;  %v3235_v47 = vld [vmem:[#allocation14 + $0x120] sm:$0xf] }
 0x49d   :  { %4028 = vrcp.f32 %v895_v4  ;;  %v3240_v4 = vor.u32 %v3824_v21, %v3239_v62 }
 0x49e   :  { %v963_v39 = vpop.f32.mrf.mxu0 }
 0x49f   :  { %v1003_v51 = vpack.c.bf16 %v963_v39, %v961_v32 }
 0x4a3   :  { %v4029_v28 = vpop.eup %4028 }
 0x4a4   :  { %v931_v46 = vmul.f32 %v4029_v28, %v4005_v7  ;;  %v897_v50 = vpop.xlane.xlu1 %896  ;;  %v3823_v28 = vld [vmem:[#allocation14 + $0x128] sm:$0xf0] }
 0x4a5   :  { %4030 = vrcp.f32 %v897_v50 }
 0x4a6   :  { %v941_v25 = vpack.c.bf16 %v931_v46, %v930_v27  ;;  %v966_v60 = vpop.f32.mrf.mxu0  ;;  %v3236_v27 = vor.u32 %v3823_v28, %v3235_v47  ;;  %v3231_v46 = vld [vmem:[#allocation14 + $0x108] sm:$0xf] }
 0x4a8   :  { %985 = vmatmul.bf16.gmra.mxu0 %v941_v25  ;;  %v3822_v25 = vld [vmem:[#allocation14 + $0x110] sm:$0xf0] }
 0x4a9   :  { %v3232_v50 = vor.u32 %v3822_v25, %v3231_v46  ;;  %v3315_v25 = vld [vmem:[#allocation14 + $0x300] sm:$0xf] }
 0x4ab   :  { %v4031_v15 = vpop.eup %4030 }
 0x4ac   :  { %v899_v52 = vpop.xlane.xlu2 %898  ;;  %v932_v34 = vmul.f32 %v4031_v15, %v4007_v1 }
 0x4ad   :  { %4032 = vrcp.f32 %v899_v52 }
 0x4ae   :  { %v968_v54 = vpop.f32.mrf.mxu0 }
 0x4af   :  { %v1004_v16 = vpack.c.bf16 %v968_v54, %v966_v60 }
 0x4b3   :  { %v4033_v55 = vpop.eup %4032 }
 0x4b4   :  { %v933_v33 = vmul.f32 %v4033_v55, %v4013_v49  ;;  %v901_v57 = vpop.xlane.xlu0 %900  ;;  %v3828_v49 = vld [vmem:[#allocation14 + $0x1a0] sm:$0xf0] }
 0x4b5   :  { %4034 = vrcp.f32 %v901_v57  ;;  %v3256_v19 = vor.u32 %v3828_v49, %v3255_v13  ;;  %v3279_v13 = vld [vmem:[#allocation14 + $0x228] sm:$0xf] }
 0x4b6   :  { %v942_v40 = vpack.c.bf16 %v933_v33, %v932_v34  ;;  %v971_v44 = vpop.f32.mrf.mxu0  ;;  %v1048_v34 = vld [vmem:[#allocation16 + $0x2] ss:$0 sm:$0xff]  ;;  %v3280_v49 = vor.u32 %v3834_v14, %v3279_v13  ;;  %v3299_v13 = vld [vmem:[#allocation14 + $0x2a0] sm:$0xf]  ;;  %v3839_v14 = vld [vmem:[#allocation14 + $0x2a8] sm:$0xf0] }
 0x4b7   :  { %1098 = vmatpush.bf16.msra.mxu2 %v3256_v19  ;;  %v3833_v19 = vld [vmem:[#allocation14 + $0x218] sm:$0xf0] }
 0x4b8   :  { %990 = vmatmul.bf16.gmra.mxu0 %v942_v40 }
 0x4bb   :  { %v4035_v48 = vpop.eup %4034  ;;  %1099 = vmatpush.bf16.msra.mxu2 %v3252_v56 }
 0x4bc   :  { %v903_v18 = vpop.xlane.xlu1 %902  ;;  %v934_v38 = vmul.f32 %v4035_v48, %v4015_v36 }
 0x4bd   :  { %4036 = vrcp.f32 %v903_v18 }
 0x4be   :  { %v973_v45 = vpop.f32.mrf.mxu0 }
 0x4bf   :  { %1100 = vmatpush.bf16.msra.mxu2 %v3248_v42  ;;  %v1005_v17 = vpack.c.bf16 %v973_v45, %v971_v44  ;;  %v3263_v42 = vld [vmem:[#allocation14 + $0x1c8] sm:$0xf] }
 0x4c3   :  { %v4037_v58 = vpop.eup %4036 }
 0x4c4   :  { %v935_v26 = vmul.f32 %v4037_v58, %v4021_v5  ;;  %v3825_v5 = vld [vmem:[#allocation14 + $0x158] sm:$0xf0] }
 0x4c5   :  { %v3244_v59 = vor.u32 %v3825_v5, %v3243_v11  ;;  %v3830_v11 = vld [vmem:[#allocation14 + $0x1d0] sm:$0xf0] }
 0x4c6   :  { %v943_v31 = vpack.c.bf16 %v935_v26, %v934_v38  ;;  %v976_v7 = vpop.f32.mrf.mxu0  ;;  %v4470_v38 = vmov 128.0  }
 0x4c7   :  { %1101 = vmatpush.bf16.msra.mxu2 %v3244_v59  ;;  %4038 = vrcp.f32 %v4470_v38  ;;  %v3264_v59 = vor.u32 %v3830_v11, %v3263_v42  ;;  %v1265_v11 = vld [vmem:[#allocation16 + $0x6] ss:$0 sm:$0xff] }
 0x4c8   :  { %995 = vmatmul.bf16.gmra.mxu0 %v943_v31 }
 0x4cb   :  { %1102 = vmatpush.bf16.msra.mxu2 %v3240_v4  ;;  %v3844_v4 = vld [vmem:[#allocation14 + $0x320] sm:$0xf0] }
 0x4cd   :  { %v4039_v26 = vpop.eup %4038 }
 0x4ce   :  { %v978_v12 = vpop.f32.mrf.mxu0  ;;  %v1120_v31 = vmul.f32 128.0, %v4039_v26  ;;  %vm1124_vm2 = vweird.f32 %v4039_v26 }
 0x4cf   :  { %v1006_v10 = vpack.c.bf16 %v978_v12, %v976_v7  ;;  %1103 = vmatpush.bf16.msra.mxu2 %v3236_v27 }
 0x4d0   :  { %v1121_v32 = vsub.f32 1.0, %v1120_v31 }
 0x4d2   :  { %v1122_v39 = vmul.f32 %v4039_v26, %v1121_v32 }
 0x4d3   :  { %1104 = vmatpush.bf16.msra.mxu2 %v3232_v50  ;;  %v3843_v50 = vld [vmem:[#allocation14 + $0x308] sm:$0xf0] }
 0x4d4   :  { %v1123_v60 = vadd.f32 %v4039_v26, %v1122_v39 }
 0x4d6   :  { %v4813_v54 = vsel %vm1124_vm2, %v4039_v26, %v1123_v60 }
 0x515   :  { %v981_v63 = vpop.f32.mrf.mxu0 }
 0x51d   :  { %v983_v53 = vpop.f32.mrf.mxu0 }
 0x51e   :  { %v1007_v41 = vpack.c.bf16 %v983_v53, %v981_v63 }
 0x525   :  { %v986_v0 = vpop.f32.mrf.mxu0 }
 0x52d   :  { %v988_v1 = vpop.f32.mrf.mxu0 }
 0x52e   :  { %v1008_v36 = vpack.c.bf16 %v988_v1, %v986_v0  ;;  %v3291_v0 = vld [vmem:[#allocation14 + $0x270] sm:$0xf]  ;;  %v3837_v1 = vld [vmem:[#allocation14 + $0x278] sm:$0xf0] }
 0x535   :  { %v991_v2 = vpop.f32.mrf.mxu0 }
 0x53d   :  { %v993_v61 = vpop.f32.mrf.mxu0 }
 0x53e   :  { %v1009_v29 = vpack.c.bf16 %v993_v61, %v991_v2  ;;  %v3292_v2 = vor.u32 %v3837_v1, %v3291_v0  ;;  %v3287_v61 = vld [vmem:[#allocation14 + $0x258] sm:$0xf] }
 0x545   :  { %v996_v37 = vpop.f32.mrf.mxu0 }
 0x54d   :  { %v998_v8 = vpop.f32.mrf.mxu0 }
 0x54e   :  { %v1010_v3 = vpack.c.bf16 %v998_v8, %v996_v37  ;;  %v3836_v37 = vld [vmem:[#allocation14 + $0x260] sm:$0xf0] }
 0x54f   :  { %v3288_v8 = vor.u32 %v3836_v37, %v3287_v61  ;;  %v3307_v37 = vld [vmem:[#allocation14 + $0x2d0] sm:$0xf] }
 0x550   :  { %1017 = vmatpush.bf16.msra.mxu1 %v1010_v3  ;;  %v3283_v3 = vld [vmem:[#allocation14 + $0x240] sm:$0xf] }
 0x551   :  { %v3284_v9 = vor.u32 %v3835_v43, %v3283_v3  ;;  %v3303_v43 = vld [vmem:[#allocation14 + $0x2b8] sm:$0xf] }
 0x554   :  { %1018 = vmatpush.bf16.msra.mxu1 %v1009_v29  ;;  %v3275_v29 = vld [vmem:[#allocation14 + $0x210] sm:$0xf] }
 0x555   :  { %v3276_v30 = vor.u32 %v3833_v19, %v3275_v29  ;;  %v3838_v29 = vld [vmem:[#allocation14 + $0x290] sm:$0xf0] }
 0x558   :  { %1019 = vmatpush.bf16.msra.mxu1 %v1008_v36  ;;  %v3832_v36 = vld [vmem:[#allocation14 + $0x200] sm:$0xf0] }
 0x559   :  { %v3272_v56 = vor.u32 %v3832_v36, %v3271_v35  ;;  %v1183_v35 = vld [vmem:[#allocation16 + $0x5] ss:$0 sm:$0xff] }
 0x55c   :  { %1020 = vmatpush.bf16.msra.mxu1 %v1007_v41  ;;  %v3268_v41 = vor.u32 %v3831_v22, %v3267_v6 }
 0x560   :  { %1021 = vmatpush.bf16.msra.mxu1 %v1006_v10 }
 0x564   :  { %1022 = vmatpush.bf16.msra.mxu1 %v1005_v17 }
 0x568   :  { %1023 = vmatpush.bf16.msra.mxu1 %v1004_v16  ;;  %v3323_v16 = vld [vmem:[#allocation14 + $0x330] sm:$0xf] }
 0x56c   :  { %1024 = vmatpush.bf16.msra.mxu1 %v1003_v51  ;;  %v3845_v51 = vld [vmem:[#allocation14 + $0x338] sm:$0xf0] }
 0x56d   :  { %v3324_v21 = vor.u32 %v3845_v51, %v3323_v16 }
 0x56f   :  { %1025 = vmatmul.bf16.vlgmr.msra.gmra.mxu1 %v3821_v20  ;;  %v3319_v20 = vld [vmem:[#allocation14 + $0x318] sm:$0xf]  ;;  %1314 = vmatpush.bf16.msrb.mxu2 %v3324_v21 }
 0x570   :  { %1232 = vmatpush.bf16.msrb.mxu1 %v3292_v2  ;;  %v3320_v28 = vor.u32 %v3844_v4, %v3319_v20 }
 0x573   :  { %1315 = vmatpush.bf16.msrb.mxu2 %v3320_v28 }
 0x574   :  { %1233 = vmatpush.bf16.msrb.mxu1 %v3288_v8  ;;  %v3841_v8 = vld [vmem:[#allocation14 + $0x2d8] sm:$0xf0] }
 0x575   :  { %v3308_v3 = vor.u32 %v3841_v8, %v3307_v37  ;;  %v3859_v37 = vld [vmem:[#allocation14 + $0x3b0] sm:$0xf0]  ;;  %v3858_v8 = vld [vmem:[#allocation14 + $0x3ac] sm:$0xf] }
 0x578   :  { %1234 = vmatpush.bf16.msrb.mxu1 %v3284_v9 }
 0x57c   :  { %1235 = vmatpush.bf16.msrb.mxu1 %v3280_v49  ;;  %v3300_v49 = vor.u32 %v3839_v14, %v3299_v13 }
 0x580   :  { %1236 = vmatpush.bf16.msrb.mxu1 %v3276_v30 }
 0x584   :  { %1237 = vmatpush.bf16.msrb.mxu1 %v3272_v56 }
 0x588   :  { %1238 = vmatpush.bf16.msrb.mxu1 %v3268_v41 }
 0x58c   :  { %1239 = vmatpush.bf16.msrb.mxu1 %v3264_v59 }
 0x5ec   :  { %v1026_v52 = vpop.f32.mrf.mxu1 }
 0x5f4   :  { %v1028_v15 = vpop.f32.mrf.mxu1 }
 0x5f5   :  { %v1031_v55 = vpack.c.bf16 %v1028_v15, %v1026_v52 }
 0x5f7   :  { %1105 = vmatmul.bf16.vlgmr.msra.gmra.mxu2 %v1031_v55  ;;  %v3316_v55 = vor.u32 %v3843_v50, %v3315_v25  ;;  %v3411_v25 = vld [vmem:[#allocation14 + $0x3f0] sm:$0xf]  ;;  %v3868_v50 = vld [vmem:[#allocation14 + $0x3f8] sm:$0xf0] }
 0x5f9   :  { %1316 = vmatpush.bf16.msrb.mxu2 %v3316_v55  ;;  %v3413_v55 = vld [vmem:[#allocation14 + $0x3fc] sm:$0xf0] }
 0x67a   :  { %v1106_v33 = vpop.f32.mrf.mxu2 }
 0x67b   :  { %v1107_v40 = vadd.f32 %v1106_v33, %v1048_v34  ;;  %v3842_v33 = vld [vmem:[#allocation14 + $0x2f0] sm:$0xf0] }
 0x67d   :  { %v1111_v57 = vadd.f32 %v1107_v40, %v4571_v23 }
 0x67f   :  { %1115 = vadd.xlane.f32.xlu2 %v1111_v57 }
 0x682   :  { %v1108_v18 = vpop.f32.mrf.mxu2 }
 0x683   :  { %v1109_v48 = vadd.f32 %v1108_v18, %v1048_v34  ;;  %v3311_v34 = vld [vmem:[#allocation14 + $0x2e8] sm:$0xf] }
 0x684   :  { %v3312_v18 = vor.u32 %v3842_v33, %v3311_v34  ;;  %v3419_v34 = vld [vmem:[#allocation14 + $0x3f8] sm:$0xf]  ;;  %v3869_v33 = vld [vmem:[#allocation14 + $0x400] sm:$0xf0] }
 0x685   :  { %v1112_v58 = vadd.f32 %v1109_v48, %v4573_v24 }
 0x686   :  { %1317 = vmatpush.bf16.msrb.mxu2 %v3312_v18  ;;  %v3399_v18 = vld [vmem:[#allocation14 + $0x3d8] sm:$0xf] }
 0x687   :  { %1117 = vadd.xlane.f32.xlu0 %v1112_v58 }
 0x68a   :  { %1318 = vmatpush.bf16.msrb.mxu2 %v3308_v3 }
 0x6f2   :  { %v1116_v44 = vpop.xlane.xlu2 %1115 }
 0x6f3   :  { %v1126_v45 = vmul.f32 %v4813_v54, %v1116_v44 }
 0x6f5   :  { %v4816_v23 = vsub.f32 %v1111_v57, %v1126_v45  ;;  %v1113_v45 = vld [vmem:[#allocation16 + $0x3] ss:$0 sm:$0xff] }
 0x6f7   :  { %v1130_v7 = vmul.f32 %v4816_v23, %v4816_v23 }
 0x6f9   :  { %1132 = vadd.xlane.f32.xlu1 %v1130_v7 }
 0x6fa   :  { %v1118_v24 = vpop.xlane.xlu0 %1117 }
 0x6fb   :  { %v1127_v12 = vmul.f32 %v4813_v54, %v1118_v24 }
 0x6fd   :  { %v4821_v63 = vsub.f32 %v1112_v58, %v1127_v12 }
 0x6ff   :  { %v1131_v53 = vmul.f32 %v4821_v63, %v4821_v63 }
 0x701   :  { %1134 = vadd.xlane.f32.xlu2 %v1131_v53  ;;  %v1114_v53 = vld [vmem:[#allocation16 + $0x4] ss:$0 sm:$0xff] }
 0x76c   :  { %v1133_v5 = vpop.xlane.xlu1 %1132 }
 0x76d   :  { %v1136_v10 = vmul.f32 %v1133_v5, %v4813_v54 }
 0x76f   :  { %v1138_v17 = vadd.f32 1e-05, %v1136_v10 }
 0x771   :  { %4040 = vrsqrt.f32 %v1138_v17  ;;  %vm1146_vm4 = vweird.f32 %v1138_v17 }
 0x774   :  { %v1135_v62 = vpop.xlane.xlu2 %1134 }
 0x775   :  { %v1137_v47 = vmul.f32 %v1135_v62, %v4813_v54 }
 0x777   :  { %v4041_v27 = vpop.eup %4040  ;;  %v1139_v46 = vadd.f32 1e-05, %v1137_v47 }
 0x778   :  { %v1141_v52 = vmul.f32 %v4041_v27, %v1138_v17  ;;  %vm1147_vm3 = vweird.f32 %v4041_v27 }
 0x779   :  { %4042 = vrsqrt.f32 %v1139_v46  ;;  %vm1148_vm5 = vmor %vm1146_vm4, %vm1147_vm3  ;;  %vm1156_vm7 = vweird.f32 %v1139_v46 }
 0x77a   :  { %v1142_v15 = vmul.f32 %v4041_v27, %v1141_v52  ;;  %v3867_v52 = vld [vmem:[#allocation14 + $0x3f4] sm:$0xf] }
 0x77c   :  { %v1143_v40 = vmul.f32 0.5, %v1142_v15  ;;  %v3412_v15 = vor.u32 %v3868_v50, %v3411_v25 }
 0x77e   :  { %v1144_v57 = vsub.f32 1.5, %v1143_v40  ;;  %v3416_v40 = vor.u32 %v3867_v52, %v3413_v55  ;;  %1546 = vmatpush.bf16.msra.mxu3 %v3412_v15  ;;  %v3327_v15 = vld [vmem:[#allocation14 + $0x348] sm:$0xf]  ;;  %v3847_v55 = vld [vmem:[#allocation14 + $0x350] sm:$0xf0] }
 0x77f   :  { %v4043_v48 = vpop.eup %4042 }
 0x780   :  { %v1145_v58 = vmul.f32 %v4041_v27, %v1144_v57  ;;  %v1151_v38 = vmul.f32 %v4043_v48, %v1139_v46  ;;  %vm1157_vm6 = vweird.f32 %v4043_v48  ;;  %v3420_v57 = vor.u32 %v3869_v33, %v3419_v34  ;;  %1560 = vmatpush.bf16.msra.mxu1 %v3416_v40  ;;  %v3846_v34 = vld [vmem:[#allocation14 + $0x34c] sm:$0xf] }
 0x781   :  { %vm1158_vm8 = vmor %vm1156_vm7, %vm1157_vm6  ;;  %v3328_v40 = vor.u32 %v3847_v55, %v3327_v15  ;;  %v4141_v15 = vld [vmem:[%s5154_s6 + $0x38] sm:$0xff] }
 0x782   :  { %v1152_v26 = vmul.f32 %v4043_v48, %v1151_v38  ;;  %v1149_v31 = vsel %vm1148_vm5, %v4041_v27, %v1145_v58  ;;  %v3864_v58 = vld [vmem:[#allocation14 + $0x3dc] sm:$0xf]  ;;  %vm2759_vm5 = vcmask 523264  }
 0x783   :  { %v1160_v60 = vmul.f32 %v1149_v31, %v4816_v23  ;;  %v3840_v23 = vld [vmem:[#allocation14 + $0x2c0] sm:$0xf0]  ;;  %v3407_v31 = vld [vmem:[#allocation14 + $0x3e0] sm:$0xf] }
 0x784   :  { %v1153_v32 = vmul.f32 0.5, %v1152_v26  ;;  %v3304_v9 = vor.u32 %v3840_v23, %v3303_v43  ;;  %v3401_v26 = vld [vmem:[#allocation14 + $0x3e4] sm:$0xf0]  ;;  %v3377_v43 = vld [vmem:[#allocation14 + $0x3b4] sm:$0xf0] }
 0x785   :  { %v1162_v12 = vmul.f32 %v1160_v60, %v1113_v45  ;;  %v3383_v23 = vld [vmem:[#allocation14 + $0x3b0] sm:$0xf]  ;;  %v3380_v13 = vor.u32 %v3858_v8, %v3377_v43  ;;  %v1330_v43 = vld [vmem:[#allocation16 + $0x7] ss:$0 sm:$0xff] }
 0x786   :  { %v1154_v39 = vsub.f32 1.5, %v1153_v32  ;;  %1319 = vmatpush.bf16.msrb.mxu2 %v3304_v9  ;;  %v3866_v32 = vld [vmem:[#allocation14 + $0x3e8] sm:$0xf0]  ;;  %v3860_v9 = vld [vmem:[#allocation14 + $0x3b8] sm:$0xf0] }
 0x787   :  { %v1164_v1 = vadd.f32 %v1162_v12, %v1114_v53  ;;  %v3408_v60 = vor.u32 %v3866_v32, %v3407_v31  ;;  %v3389_v12 = vld [vmem:[#allocation14 + $0x3cc] sm:$0xf0]  ;;  %v3384_v14 = vor.u32 %v3860_v9, %v3383_v23 }
 0x788   :  { %v1155_v44 = vmul.f32 %v4043_v48, %v1154_v39  ;;  %v3404_v39 = vor.u32 %v3864_v58, %v3401_v26 }
 0x78a   :  { %v1159_v7 = vsel %vm1158_vm8, %v4043_v48, %v1155_v44  ;;  %1320 = vmatpush.bf16.msrb.mxu2 %v3300_v49  ;;  %v3865_v48 = vld [vmem:[#allocation14 + $0x3e0] sm:$0xf0]  ;;  %1561 = vmatpush.bf16.msra.mxu1 %v3404_v39  ;;  %v3387_v44 = vld [vmem:[#allocation14 + $0x3c0] sm:$0xf]  ;;  %v3363_v49 = vld [vmem:[#allocation14 + $0x390] sm:$0xf] }
 0x78b   :  { %v1161_v24 = vmul.f32 %v1159_v7, %v4821_v63  ;;  %v3295_v63 = vld [vmem:[#allocation14 + $0x288] sm:$0xf]  ;;  %v3400_v38 = vor.u32 %v3865_v48, %v3399_v18  ;;  %v3861_v7 = vld [vmem:[#allocation14 + $0x3c4] sm:$0xf]  ;;  %v3335_v18 = vld [vmem:[#allocation14 + $0x350] sm:$0xf] }
 0x78c   :  { %v3296_v19 = vor.u32 %v3838_v29, %v3295_v63  ;;  %v3856_v63 = vld [vmem:[#allocation14 + $0x398] sm:$0xf0]  ;;  %v3855_v29 = vld [vmem:[#allocation14 + $0x394] sm:$0xf] }
 0x78d   :  { %v1163_v0 = vmul.f32 %v1161_v24, %v1113_v45  ;;  %1547 = vmatpush.bf16.msra.mxu3 %v3400_v38  ;;  %v3862_v45 = vld [vmem:[#allocation14 + $0x3c8] sm:$0xf0]  ;;  %v3848_v48 = vld [vmem:[#allocation14 + $0x358] sm:$0xf0] }
 0x78e   :  { %1321 = vmatpush.bf16.msrb.mxu2 %v3296_v19  ;;  %v3388_v24 = vor.u32 %v3862_v45, %v3387_v44  ;;  %v3364_v19 = vor.u32 %v3856_v63, %v3363_v49  ;;  %v3336_v38 = vor.u32 %v3848_v48, %v3335_v18  ;;  %v4902_v48 = vld [vmem:[#allocation11 + $0x18] sm:$0xff] }
 0x78f   :  { %v1165_v2 = vadd.f32 %v1163_v0, %v1114_v53  ;;  %v3395_v53 = vld [vmem:[#allocation14 + $0x3c8] sm:$0xf]  ;;  %v3863_v0 = vld [vmem:[#allocation14 + $0x3d0] sm:$0xf0] }
 0x791   :  { %v1166_v61 = vpack.c.bf16 %v1165_v2, %v1164_v1  ;;  %1548 = vmatpush.bf16.msra.mxu3 %v3388_v24 }
 0x792   :  { %1574 = vmatpush.bf16.msra.mxu2 %v3420_v57  ;;  %v3329_v57 = vld [vmem:[#allocation14 + $0x354] sm:$0xf0] }
 0x793   :  { %1240 = vmatmul.bf16.vlgmr.msrb.gmra.mxu1 %v1166_v61  ;;  %v3375_v61 = vld [vmem:[#allocation14 + $0x3a8] sm:$0xf]  ;;  %v3332_v58 = vor.u32 %v3846_v34, %v3329_v57 }
 0x794   :  { %v3376_v3 = vor.u32 %v3859_v37, %v3375_v61  ;;  %v4899_v57 = vld [vmem:[#allocation11 + $0x10] sm:$0xff] }
 0x796   :  { %1575 = vmatpush.bf16.msra.mxu2 %v3408_v60  ;;  %1549 = vmatpush.bf16.msra.mxu3 %v3376_v3 }
 0x79a   :  { %1550 = vmatpush.bf16.msra.mxu3 %v3364_v19 }
 0x810   :  { %v1241_v30 = vpop.f32.mrf.mxu1 }
 0x811   :  { %v1242_v36 = vadd.f32 %v1241_v30, %v1183_v35  ;;  %v3365_v30 = vld [vmem:[#allocation14 + $0x39c] sm:$0xf0] }
 0x813   :  { %v1246_v22 = vmax.f32 %v1242_v36, 0.0  ;;  %v3857_v36 = vld [vmem:[#allocation14 + $0x3a0] sm:$0xf0] }
 0x818   :  { %v1243_v56 = vpop.f32.mrf.mxu1 }
 0x819   :  { %v1244_v6 = vadd.f32 %v1243_v56, %v1183_v35  ;;  %v3371_v35 = vld [vmem:[#allocation14 + $0x398] sm:$0xf]  ;;  %v3368_v56 = vor.u32 %v3855_v29, %v3365_v30  ;;  %v1410_v30 = vld [vmem:[#allocation16 + $0x19] ss:$8 sm:$0x7] }
 0x81b   :  { %v1247_v41 = vmax.f32 %v1244_v6, 0.0  ;;  %v3372_v6 = vor.u32 %v3857_v36, %v3371_v35  ;;  %v1413_v35 = vperm.slane %v1410_v30, 1 }
 0x81d   :  { %v1248_v42 = vpack.c.bf16 %v1247_v41, %v1246_v22  ;;  %v3351_v22 = vld [vmem:[#allocation14 + $0x378] sm:$0xf]  ;;  %v3853_v41 = vld [vmem:[#allocation14 + $0x380] sm:$0xf0] }
 0x81f   :  { %1322 = vmatmul.bf16.vlgmr.msrb.gmra.mxu2 %v1248_v42  ;;  %v3852_v42 = vld [vmem:[#allocation14 + $0x37c] sm:$0xf] }
 0x8a2   :  { %v1323_v5 = vpop.f32.mrf.mxu2 }
 0x8a3   :  { %v1324_v10 = vadd.f32 %v1323_v5, %v1265_v11  ;;  %v3353_v5 = vld [vmem:[#allocation14 + $0x384] sm:$0xf0] }
 0x8a5   :  { %v1328_v59 = vadd.f32 %v1324_v10, %v1164_v1  ;;  %v3392_v1 = vor.u32 %v3861_v7, %v3389_v12  ;;  %v3359_v10 = vld [vmem:[#allocation14 + $0x380] sm:$0xf] }
 0x8a7   :  { %1332 = vadd.xlane.f32.xlu0 %v1328_v59  ;;  %1562 = vmatpush.bf16.msra.mxu1 %v3392_v1 }
 0x8aa   :  { %v1325_v17 = vpop.f32.mrf.mxu2 }
 0x8ab   :  { %v1326_v16 = vadd.f32 %v1325_v17, %v1265_v11  ;;  %1563 = vmatpush.bf16.msra.mxu1 %v3380_v13  ;;  %v3352_v11 = vor.u32 %v3853_v41, %v3351_v22  ;;  %v3356_v17 = vor.u32 %v3852_v42, %v3353_v5  ;;  %v1412_v41 = vperm.slane %v1410_v30, 0 }
 0x8ad   :  { %v1329_v51 = vadd.f32 %v1326_v16, %v1165_v2  ;;  %v3396_v2 = vor.u32 %v3863_v0, %v3395_v53  ;;  %1551 = vmatpush.bf16.msra.mxu3 %v3352_v11  ;;  %v1414_v11 = vperm.slane %v1410_v30, 2 }
 0x8af   :  { %1334 = vadd.xlane.f32.xlu1 %v1329_v51  ;;  %1576 = vmatpush.bf16.msra.mxu2 %v3396_v2 }
 0x8b0   :  { %1564 = vmatpush.bf16.msra.mxu1 %v3368_v56 }
 0x8b3   :  { %1577 = vmatpush.bf16.msra.mxu2 %v3384_v14  ;;  %v1331_v14 = vld [vmem:[#allocation16 + $0x18] ss:$0 sm:$0xff] }
 0x8b4   :  { %1565 = vmatpush.bf16.msra.mxu1 %v3356_v17 }
 0x8b7   :  { %1578 = vmatpush.bf16.msra.mxu2 %v3372_v6 }
 0x91a   :  { %v1333_v20 = vpop.xlane.xlu0 %1332 }
 0x91b   :  { %v1336_v62 = vmul.f32 %v1333_v20, %v4813_v54  ;;  %v3850_v20 = vld [vmem:[#allocation14 + $0x368] sm:$0xf0] }
 0x91d   :  { %v4830_v21 = vsub.f32 %v1328_v59, %v1336_v62  ;;  %v3854_v59 = vld [vmem:[#allocation14 + $0x388] sm:$0xf0]  ;;  %v3849_v62 = vld [vmem:[#allocation14 + $0x364] sm:$0xf] }
 0x91e   :  { %v3360_v16 = vor.u32 %v3854_v59, %v3359_v10 }
 0x91f   :  { %v1340_v4 = vmul.f32 %v4830_v21, %v4830_v21 }
 0x920   :  { %1579 = vmatpush.bf16.msra.mxu2 %v3360_v16 }
 0x921   :  { %1342 = vadd.xlane.f32.xlu2 %v1340_v4 }
 0x922   :  { %v1335_v47 = vpop.xlane.xlu1 %1334 }
 0x923   :  { %v1337_v28 = vmul.f32 %v1335_v47, %v4813_v54  ;;  %v3341_v47 = vld [vmem:[#allocation14 + $0x36c] sm:$0xf0] }
 0x924   :  { %v3344_v50 = vor.u32 %v3849_v62, %v3341_v47  ;;  %v4135_v47 = vld [vmem:[%s5154_s6 + $0x8] sm:$0xff] }
 0x925   :  { %v4835_v27 = vsub.f32 %v1329_v51, %v1337_v28  ;;  %v3339_v51 = vld [vmem:[#allocation14 + $0x360] sm:$0xf]  ;;  %v3347_v28 = vld [vmem:[#allocation14 + $0x368] sm:$0xf] }
 0x926   :  { %v3340_v4 = vor.u32 %v3850_v20, %v3339_v51  ;;  %1566 = vmatpush.bf16.msra.mxu1 %v3344_v50  ;;  %v4134_v20 = vld [vmem:[%s5154_s6] sm:$0xff]  ;;  %v4139_v50 = vld [vmem:[%s5154_s6 + $0x28] sm:$0xff] }
 0x927   :  { %v1341_v46 = vmul.f32 %v4835_v27, %v4835_v27 }
 0x928   :  { %1552 = vmatpush.bf16.msra.mxu3 %v3340_v4 }
 0x929   :  { %1344 = vadd.xlane.f32.xlu0 %v1341_v46  ;;  %v3851_v46 = vld [vmem:[#allocation14 + $0x370] sm:$0xf0] }
 0x92a   :  { %v3348_v52 = vor.u32 %v3851_v46, %v3347_v28  ;;  %1567 = vmatpush.bf16.msra.mxu1 %v3332_v58  ;;  %v4136_v28 = vld [vmem:[%s5154_s6 + $0x10] sm:$0xff]  ;;  %v4137_v46 = vld [vmem:[%s5154_s6 + $0x18] sm:$0xff] }
 0x92c   :  { %1580 = vmatpush.bf16.msra.mxu2 %v3348_v52  ;;  %1553 = vmatpush.bf16.msra.mxu3 %v3328_v40  ;;  %v4140_v52 = vld [vmem:[%s5154_s6 + $0x30] sm:$0xff] }
 0x930   :  { %1581 = vmatpush.bf16.msra.mxu2 %v3336_v38 }
 0x994   :  { %v1343_v25 = vpop.xlane.xlu2 %1342 }
 0x995   :  { %v1346_v33 = vmul.f32 %v1343_v25, %v4813_v54  ;;  %v4138_v25 = vld [vmem:[%s5154_s6 + $0x20] sm:$0xff]  ;;  %s4471_s6 = smov [#allocation18]  }
 0x997   :  { %v1348_v26 = vadd.f32 1e-05, %v1346_v33 }
 0x999   :  { %4044 = vrsqrt.f32 %v1348_v26  ;;  %vm1356_vm10 = vweird.f32 %v1348_v26 }
 0x99c   :  { %v1345_v31 = vpop.xlane.xlu0 %1344 }
 0x99d   :  { %v1347_v32 = vmul.f32 %v1345_v31, %v4813_v54 }
 0x99f   :  { %v4045_v39 = vpop.eup %4044  ;;  %v1349_v60 = vadd.f32 1e-05, %v1347_v32  ;;  %v4905_v32 = vld [vmem:[#allocation11 + $0x20] sm:$0xff] }
 0x9a0   :  { %v1351_v44 = vmul.f32 %v4045_v39, %v1348_v26  ;;  %vm1357_vm9 = vweird.f32 %v4045_v39 }
 0x9a1   :  { %4046 = vrsqrt.f32 %v1349_v60  ;;  %vm1358_vm11 = vmor %vm1356_vm10, %vm1357_vm9  ;;  %vm1366_vm13 = vweird.f32 %v1349_v60 }
 0x9a2   :  { %v1352_v45 = vmul.f32 %v4045_v39, %v1351_v44 }
 0x9a4   :  { %v1353_v7 = vmul.f32 0.5, %v1352_v45 }
 0x9a6   :  { %v1354_v24 = vsub.f32 1.5, %v1353_v7 }
 0x9a7   :  { %v4047_v12 = vpop.eup %4046 }
 0x9a8   :  { %v1355_v53 = vmul.f32 %v4045_v39, %v1354_v24  ;;  %v1361_v0 = vmul.f32 %v4047_v12, %v1349_v60  ;;  %vm1367_vm12 = vweird.f32 %v4047_v12  ;;  %v4908_v60 = vld [vmem:[#allocation11 + $0x28] sm:$0xff] }
 0x9a9   :  { %vm1368_vm14 = vmor %vm1366_vm13, %vm1367_vm12 }
 0x9aa   :  { %v1362_v1 = vmul.f32 %v4047_v12, %v1361_v0  ;;  %v1359_v2 = vsel %vm1358_vm11, %v4045_v39, %v1355_v53  ;;  %v4914_v0 = vld [vmem:[#allocation11 + $0x38] sm:$0xff] }
 0x9ab   :  { %v1370_v8 = vmul.f32 %v1359_v2, %v4830_v21 }
 0x9ac   :  { %v1363_v61 = vmul.f32 0.5, %v1362_v1 }
 0x9ad   :  { %v1372_v13 = vmul.f32 %v1370_v8, %v1330_v43  ;;  %v4917_v8 = vld [vmem:[#allocation11 + $0x40] sm:$0xff] }
 0x9ae   :  { %v1364_v37 = vsub.f32 1.5, %v1363_v61 }
 0x9af   :  { %v4843_v63 = vadd.f32 %v1372_v13, %v1331_v14 }
 0x9b0   :  { %v1365_v3 = vmul.f32 %v4047_v12, %v1364_v37 }
 0x9b2   :  { %v1369_v23 = vsel %vm1368_vm14, %v4047_v12, %v1365_v3  ;;  %v4911_v12 = vld [vmem:[#allocation11 + $0x30] sm:$0xff] }
 0x9b3   :  { %v1371_v9 = vmul.f32 %v1369_v23, %v4835_v27 }
 0x9b5   :  { %v1373_v49 = vmul.f32 %v1371_v9, %v1330_v43  ;;  %v4920_v43 = vld [vmem:[#allocation11 + $0x48] sm:$0xff] }
 0x9b7   :  { %v4845_v29 = vadd.f32 %v1373_v49, %v1331_v14 }
 0x9b9   :  { %v1376_v19 = vpack.c.bf16 %v4845_v29, %v4843_v63 }
 0x9bb   :  { %1554 = vmatmul.bf16.vlgmr.msra.gmra.mxu3 %v1376_v19  ;;  %1568 = vmatmul.bf16.vlgmr.msra.gmra.mxu1 %v1376_v19 }
 0x9bc   :  { %1582 = vmatmul.bf16.vlgmr.msra.gmra.mxu2 %v1376_v19 }
 0xa38   :  { %v1569_v21 = vpop.f32.mrf.mxu1 }
 0xa39   :  { %v1570_v27 = vadd.f32 %v1569_v21, %v1413_v35 }
 0xa3e   :  { %v1555_v36 = vpop.f32.mrf.mxu3 }
 0xa3f   :  { %v1583_v56 = vpop.f32.mrf.mxu2  ;;  %v1556_v10 = vadd.f32 %v1555_v36, %v1412_v41 }
 0xa40   :  { %v1571_v6 = vpop.f32.mrf.mxu1  ;;  %v1584_v16 = vadd.f32 %v1583_v56, %v1414_v11  ;;  %v4926_v56 = vld [vmem:[#allocation11 + $0x78] sm:$0xff] }
 0xa41   :  { %v1572_v22 = vadd.f32 %v1571_v6, %v1413_v35  ;;  %v4923_v35 = vld [vmem:[#allocation11 + $0x70] sm:$0xff] }
 0xa43   :  { %v1589_v42 = vpack.c.bf16 %v1572_v22, %v1570_v27  ;;  %v4929_v22 = vld [vmem:[#allocation11 + $0x68] sm:$0xff] }
 0xa45   :  { %1647 = vmatpush.bf16.msrb.mxu1 %v1589_v42  ;;  %v4932_v42 = vld [vmem:[#allocation11 + $0x60] sm:$0xff] }
 0xa46   :  { %v1557_v5 = vpop.f32.mrf.mxu3 }
 0xa47   :  { %v1558_v59 = vadd.f32 %v1557_v5, %v1412_v41  ;;  %v1585_v17 = vpop.f32.mrf.mxu2 }
 0xa48   :  { %v1586_v51 = vadd.f32 %v1585_v17, %v1414_v11  ;;  %3429 = vmatmul.msk.bf16.vlgmr.msrb.gmra.mxu1 %vm491_vm1, %v4134_v20  ;;  %v4938_v17 = vld [vmem:[#allocation11 + $0x50] sm:$0xff] }
 0xa49   :  { %v1588_v62 = vpack.c.bf16 %v1558_v59, %v1556_v10  ;;  %v4935_v10 = vld [vmem:[#allocation11 + $0x58] sm:$0xff] }
 0xa4a   :  { %v1590_v4 = vpack.c.bf16 %v1586_v51, %v1584_v16 }
 0xa4b   :  { %1598 = vmatpush.bf16.msrb.mxu3 %v1588_v62 }
 0xa4c   :  { %1696 = vmatpush.bf16.msrb.mxu2 %v1590_v4  ;;  %v4156_v4 = vld [vmem:[#allocation11 + $0x8] sm:$0xff] }
 0xa4e   :  { %3421 = vmatmul.msk.bf16.vlgmr.msrb.gmra.mxu3 %vm491_vm1, %v4134_v20 }
 0xa4f   :  { %3437 = vmatmul.msk.bf16.vlgmr.msrb.gmra.mxu2 %vm491_vm1, %v4134_v20 }
 0xa58   :  { %3430 = vmatmul.msk.bf16.gmra.mxu1 %vm491_vm1, %v4135_v47 }
 0xa5e   :  { %3422 = vmatmul.msk.bf16.gmra.mxu3 %vm491_vm1, %v4135_v47 }
 0xa5f   :  { %3438 = vmatmul.msk.bf16.gmra.mxu2 %vm491_vm1, %v4135_v47 }
 0xa68   :  { %3431 = vmatmul.msk.bf16.gmra.mxu1 %vm491_vm1, %v4136_v28 }
 0xa6e   :  { %3423 = vmatmul.msk.bf16.gmra.mxu3 %vm491_vm1, %v4136_v28 }
 0xa6f   :  { %3439 = vmatmul.msk.bf16.gmra.mxu2 %vm491_vm1, %v4136_v28 }
 0xa78   :  { %3432 = vmatmul.msk.bf16.gmra.mxu1 %vm491_vm1, %v4137_v46 }
 0xa7e   :  { %3424 = vmatmul.msk.bf16.gmra.mxu3 %vm491_vm1, %v4137_v46 }
 0xa7f   :  { %3440 = vmatmul.msk.bf16.gmra.mxu2 %vm491_vm1, %v4137_v46  ;;  %v4157_v46 = vld [vmem:[#allocation11] sm:$0xff] }
 0xa88   :  { %3433 = vmatmul.msk.bf16.gmra.mxu1 %vm491_vm1, %v4138_v25 }
 0xa8e   :  { %3425 = vmatmul.msk.bf16.gmra.mxu3 %vm491_vm1, %v4138_v25 }
 0xa8f   :  { %3441 = vmatmul.msk.bf16.gmra.mxu2 %vm491_vm1, %v4138_v25 }
 0xa98   :  { %3434 = vmatmul.msk.bf16.gmra.mxu1 %vm491_vm1, %v4139_v50 }
 0xa9e   :  { %3426 = vmatmul.msk.bf16.gmra.mxu3 %vm491_vm1, %v4139_v50 }
 0xa9f   :  { %3442 = vmatmul.msk.bf16.gmra.mxu2 %vm491_vm1, %v4139_v50 }
 0xaa8   :  { %3435 = vmatmul.msk.bf16.gmra.mxu1 %vm491_vm1, %v4140_v52 }
 0xaae   :  { %3427 = vmatmul.msk.bf16.gmra.mxu3 %vm491_vm1, %v4140_v52 }
 0xaaf   :  { %3443 = vmatmul.msk.bf16.gmra.mxu2 %vm491_vm1, %v4140_v52 }
 0xab8   :  { %3436 = vmatmul.msk.bf16.gmra.mxu1 %vm491_vm1, %v4141_v15 }
 0xabe   :  { %3428 = vmatmul.msk.bf16.gmra.mxu3 %vm491_vm1, %v4141_v15 }
 0xabf   :  { %3444 = vmatmul.msk.bf16.gmra.mxu2 %vm491_vm1, %v4141_v15 }
 0xac5   :  { %v4897_v55 = vpop.f32.mrf.mxu1 }
 0xac6   :  { %v1738_v25 = vmul.f32 %v4157_v46, %v4897_v55 }
 0xacd   :  { %v1651_v34 = vpop.f32.mrf.mxu1 }
 0xace   :  { %v1739_v47 = vmul.f32 %v4156_v4, %v1651_v34 }
 0xad0   :  { %v1778_v50 = vpack.c.bf16 %v1739_v47, %v1738_v25  ;;  %v4161_v47 = vld [vmem:[#allocation10 + $0x18] sm:$0xff] }
 0xad1   :  { %v1600_v20 = vpop.f32.mrf.mxu3 }
 0xad5   :  { %v1654_v33 = vpop.f32.mrf.mxu1 }
 0xad6   :  { %v1740_v18 = vmul.f32 %v4899_v57, %v1654_v33 }
 0xad9   :  { %v1602_v62 = vpop.f32.mrf.mxu3 }
 0xada   :  { %v1770_v15 = vpack.c.bf16 %v1602_v62, %v1600_v20 }
 0xadd   :  { %v1656_v40 = vpop.f32.mrf.mxu1 }
 0xade   :  { %v1741_v58 = vmul.f32 %v4902_v48, %v1656_v40 }
 0xae0   :  { %v1779_v38 = vpack.c.bf16 %v1741_v58, %v1740_v18 }
 0xae1   :  { %v1605_v28 = vpop.f32.mrf.mxu3 }
 0xae5   :  { %v1659_v26 = vpop.f32.mrf.mxu1 }
 0xae6   :  { %v1742_v39 = vmul.f32 %v4905_v32, %v1659_v26 }
 0xae9   :  { %v1607_v52 = vpop.f32.mrf.mxu3 }
 0xaea   :  { %v1771_v40 = vpack.c.bf16 %v1607_v52, %v1605_v28  ;;  %v4162_v52 = vld [vmem:[#allocation10 + $0x20] sm:$0xff] }
 0xaed   :  { %v1661_v31 = vpop.f32.mrf.mxu1 }
 0xaee   :  { %v1743_v44 = vmul.f32 %v4908_v60, %v1661_v31 }
 0xaf0   :  { %v1780_v45 = vpack.c.bf16 %v1743_v44, %v1742_v39 }
 0xaf1   :  { %v1610_v33 = vpop.f32.mrf.mxu3 }
 0xaf5   :  { %v1664_v7 = vpop.f32.mrf.mxu1 }
 0xaf6   :  { %v1744_v53 = vmul.f32 %v4911_v12, %v1664_v7 }
 0xaf9   :  { %v1612_v18 = vpop.f32.mrf.mxu3 }
 0xafa   :  { %v1772_v26 = vpack.c.bf16 %v1612_v18, %v1610_v33  ;;  %v4163_v18 = vld [vmem:[#allocation10 + $0x28] sm:$0xff] }
 0xafd   :  { %v1666_v24 = vpop.f32.mrf.mxu1 }
 0xafe   :  { %v1745_v1 = vmul.f32 %v4914_v0, %v1666_v24 }
 0xb00   :  { %v1781_v2 = vpack.c.bf16 %v1745_v1, %v1744_v53 }
 0xb01   :  { %v1615_v58 = vpop.f32.mrf.mxu3 }
 0xb05   :  { %v1669_v61 = vpop.f32.mrf.mxu1 }
 0xb06   :  { %v1746_v3 = vmul.f32 %v4917_v8, %v1669_v61  ;;  %v1698_v61 = vpop.f32.mrf.mxu2 }
 0xb09   :  { %v1617_v31 = vpop.f32.mrf.mxu3 }
 0xb0a   :  { %v1773_v39 = vpack.c.bf16 %v1617_v31, %v1615_v58 }
 0xb0d   :  { %v1671_v37 = vpop.f32.mrf.mxu1 }
 0xb0e   :  { %v1747_v23 = vmul.f32 %v4920_v43, %v1671_v37  ;;  %v4942_v37 = vmul.f32 %v4157_v46, %v1698_v61 }
 0xb10   :  { %v1782_v9 = vpack.c.bf16 %v1747_v23, %v1746_v3  ;;  %v1700_v23 = vpop.f32.mrf.mxu2 }
 0xb15   :  { %v1674_v13 = vpop.f32.mrf.mxu1 }
 0xb16   :  { %v1748_v16 = vmul.f32 %v4938_v17, %v1674_v13  ;;  %v4944_v13 = vmul.f32 %v4156_v4, %v1700_v23 }
 0xb1d   :  { %v1676_v14 = vpop.f32.mrf.mxu1 }
 0xb1e   :  { %v1749_v59 = vmul.f32 %v4935_v10, %v1676_v14  ;;  %v1987_v14 = vpack.c.bf16 %v4944_v13, %v4942_v37  ;;  %v4170_v37 = vld [vmem:[#allocation10 + $0x60] sm:$0xff] }
 0xb20   :  { %v1783_v51 = vpack.c.bf16 %v1749_v59, %v1748_v16 }
 0xb25   :  { %v1679_v49 = vpop.f32.mrf.mxu1 }
 0xb26   :  { %v1750_v11 = vmul.f32 %v4932_v42, %v1679_v49 }
 0xb2d   :  { %v1681_v19 = vpop.f32.mrf.mxu1 }
 0xb2e   :  { %v1751_v41 = vmul.f32 %v4929_v22, %v1681_v19  ;;  %v4158_v19 = vld [vmem:[#allocation10] sm:$0xff] }
 0xb30   :  { %v1784_v5 = vpack.c.bf16 %v1751_v41, %v1750_v11 }
 0xb35   :  { %v1684_v21 = vpop.f32.mrf.mxu1 }
 0xb36   :  { %v1752_v36 = vmul.f32 %v4923_v35, %v1684_v21 }
 0xb3d   :  { %v1686_v30 = vpop.f32.mrf.mxu1 }
 0xb3e   :  { %v1753_v6 = vmul.f32 %v4926_v56, %v1686_v30  ;;  %v1703_v30 = vpop.f32.mrf.mxu2 }
 0xb3f   :  { %v4954_v41 = vmul.f32 %v4899_v57, %v1703_v30 }
 0xb40   :  { %v1785_v27 = vpack.c.bf16 %v1753_v6, %v1752_v36  ;;  %v4159_v6 = vld [vmem:[#allocation10 + $0x8] sm:$0xff] }
 0xb42   :  { %1786 = vmatpush.bf16.xpose.msrb.mxu0 %v1785_v27 }
 0xb46   :  { %v1705_v11 = vpop.f32.mrf.mxu2 }
 0xb4a   :  { %1787 = vmatpush.bf16.xpose.msrb.mxu0 %v1784_v5  ;;  %v4958_v5 = vmul.f32 %v4902_v48, %v1705_v11 }
 0xb4c   :  { %v1988_v59 = vpack.c.bf16 %v4958_v5, %v4954_v41  ;;  %v4169_v5 = vld [vmem:[#allocation10 + $0x58] sm:$0xff] }
 0xb4e   :  { %v1708_v62 = vpop.f32.mrf.mxu2 }
 0xb4f   :  { %v4968_v28 = vmul.f32 %v4905_v32, %v1708_v62 }
 0xb52   :  { %1788 = vmatpush.bf16.xpose.msrb.mxu0 %v1783_v51  ;;  %v4160_v51 = vld [vmem:[#allocation10 + $0x10] sm:$0xff] }
 0xb56   :  { %v1710_v48 = vpop.f32.mrf.mxu2 }
 0xb57   :  { %v4972_v46 = vmul.f32 %v4908_v60, %v1710_v48 }
 0xb59   :  { %v1989_v25 = vpack.c.bf16 %v4972_v46, %v4968_v28 }
 0xb5a   :  { %1789 = vmatpush.bf16.xpose.msrb.mxu0 %v1782_v9 }
 0xb5e   :  { %v1713_v33 = vpop.f32.mrf.mxu2 }
 0xb5f   :  { %v1760_v58 = vmul.f32 %v4911_v12, %v1713_v33 }
 0xb62   :  { %1790 = vmatpush.bf16.xpose.msrb.mxu0 %v1781_v2 }
 0xb66   :  { %v1715_v60 = vpop.f32.mrf.mxu2 }
 0xb6a   :  { %1791 = vmatpush.bf16.xpose.msrb.mxu0 %v1780_v45 }
 0xb72   :  { %1792 = vmatpush.bf16.xpose.msrb.mxu0 %v1779_v38  ;;  %v1620_v38 = vpop.f32.mrf.mxu3 }
 0xb7a   :  { %1793 = vmatpush.bf16.xpose.msrb.mxu0 %v1778_v50  ;;  %v1622_v34 = vpop.f32.mrf.mxu3 }
 0xb7b   :  { %v1774_v44 = vpack.c.bf16 %v1622_v34, %v1620_v38 }
 0xb81   :  { %1794 = vmatmul.bf16.vlgmr.msrb.gmra.mxu0 %v1770_v15 }
 0xb82   :  { %v1625_v45 = vpop.f32.mrf.mxu3 }
 0xb8a   :  { %v1627_v55 = vpop.f32.mrf.mxu3 }
 0xb8b   :  { %v1775_v7 = vpack.c.bf16 %v1627_v55, %v1625_v45  ;;  %v4165_v55 = vld [vmem:[#allocation10 + $0x38] sm:$0xff] }
 0xb91   :  { %1799 = vmatmul.bf16.gmra.mxu0 %v1771_v40 }
 0xb92   :  { %v1630_v24 = vpop.f32.mrf.mxu3 }
 0xb9a   :  { %v1632_v53 = vpop.f32.mrf.mxu3 }
 0xb9b   :  { %v1776_v1 = vpack.c.bf16 %v1632_v53, %v1630_v24  ;;  %v4166_v53 = vld [vmem:[#allocation10 + $0x40] sm:$0xff] }
 0xba1   :  { %1804 = vmatmul.bf16.gmra.mxu0 %v1772_v26  ;;  %v1761_v26 = vmul.f32 %v4914_v0, %v1715_v60 }
 0xba2   :  { %v1635_v2 = vpop.f32.mrf.mxu3 }
 0xba3   :  { %v1990_v31 = vpack.c.bf16 %v1761_v26, %v1760_v58 }
 0xbaa   :  { %v1637_v3 = vpop.f32.mrf.mxu3 }
 0xbab   :  { %v1777_v9 = vpack.c.bf16 %v1637_v3, %v1635_v2 }
 0xbb1   :  { %1809 = vmatmul.bf16.gmra.mxu0 %v1773_v39  ;;  %v4164_v39 = vld [vmem:[#allocation10 + $0x30] sm:$0xff] }
 0xbc1   :  { %1814 = vmatmul.bf16.gmra.mxu0 %v1774_v44  ;;  %v1718_v44 = vpop.f32.mrf.mxu2 }
 0xbc9   :  { %v1720_v12 = vpop.f32.mrf.mxu2 }
 0xbd1   :  { %1819 = vmatmul.bf16.gmra.mxu0 %v1775_v7  ;;  %v1723_v0 = vpop.f32.mrf.mxu2 }
 0xbd2   :  { %v1764_v11 = vmul.f32 %v4938_v17, %v1723_v0 }
 0xbd9   :  { %v1725_v2 = vpop.f32.mrf.mxu2 }
 0xbe1   :  { %1824 = vmatmul.bf16.gmra.mxu0 %v1776_v1  ;;  %v1728_v61 = vpop.f32.mrf.mxu2 }
 0xbe9   :  { %v1730_v3 = vpop.f32.mrf.mxu2 }
 0xbea   :  { %v1767_v30 = vmul.f32 %v4929_v22, %v1730_v3 }
 0xbf1   :  { %1829 = vmatmul.bf16.gmra.mxu0 %v1777_v9  ;;  %v1733_v23 = vpop.f32.mrf.mxu2 }
 0xbf2   :  { %v1768_v9 = vmul.f32 %v4923_v35, %v1733_v23  ;;  %v1762_v35 = vmul.f32 %v4917_v8, %v1718_v44 }
 0xbfe   :  { %v1795_v49 = vpop.f32.mrf.mxu0 }
 0xbff   :  { %v4948_v21 = vadd.f32 %v4158_v19, %v1795_v49  ;;  %v1735_v49 = vpop.f32.mrf.mxu2  ;;  %v1766_v19 = vmul.f32 %v4932_v42, %v1728_v61  ;;  %v1763_v42 = vmul.f32 %v4920_v43, %v1720_v12  ;;  %v4167_v43 = vld [vmem:[#allocation10 + $0x48] sm:$0xff] }
 0xc01   :  { %1835 = vmax.xlane.f32.xlu1 %v4948_v21  ;;  %v1993_v62 = vpack.c.bf16 %v1767_v30, %v1766_v19 }
 0xc06   :  { %v1797_v36 = vpop.f32.mrf.mxu0 }
 0xc07   :  { %v4951_v27 = vadd.f32 %v4159_v6, %v1797_v36  ;;  %v1769_v36 = vmul.f32 %v4926_v56, %v1735_v49  ;;  %v1991_v56 = vpack.c.bf16 %v1763_v42, %v1762_v35 }
 0xc09   :  { %1837 = vmax.xlane.f32.xlu2 %v4951_v27  ;;  %v1994_v6 = vpack.c.bf16 %v1769_v36, %v1768_v9  ;;  %v4172_v9 = vld [vmem:[#allocation10 + $0x70] sm:$0xff] }
 0xc0b   :  { %1995 = vmatpush.bf16.msra.mxu3 %v1994_v6 }
 0xc0e   :  { %v1800_v16 = vpop.f32.mrf.mxu0 }
 0xc0f   :  { %v4962_v20 = vadd.f32 %v4160_v51, %v1800_v16  ;;  %v1765_v16 = vmul.f32 %v4935_v10, %v1725_v2  ;;  %1996 = vmatpush.bf16.msra.mxu3 %v1993_v62 }
 0xc11   :  { %1839 = vmax.xlane.f32.xlu0 %v4962_v20 }
 0xc16   :  { %v1802_v4 = vpop.f32.mrf.mxu0 }
 0xc17   :  { %v4965_v57 = vadd.f32 %v4161_v47, %v1802_v4 }
 0xc19   :  { %1841 = vmax.xlane.f32.xlu1 %v4965_v57 }
 0xc1e   :  { %v1805_v50 = vpop.f32.mrf.mxu0 }
 0xc1f   :  { %v4976_v15 = vadd.f32 %v4162_v52, %v1805_v50  ;;  %v1992_v50 = vpack.c.bf16 %v1765_v16, %v1764_v11  ;;  %v4173_v11 = vld [vmem:[#allocation10 + $0x78] sm:$0xff] }
 0xc21   :  { %1843 = vmax.xlane.f32.xlu2 %v4976_v15  ;;  %1997 = vmatpush.bf16.msra.mxu3 %v1992_v50 }
 0xc25   :  { %1998 = vmatpush.bf16.msra.mxu3 %v1991_v56 }
 0xc26   :  { %v1807_v40 = vpop.f32.mrf.mxu0 }
 0xc27   :  { %v4979_v32 = vadd.f32 %v4163_v18, %v1807_v40 }
 0xc29   :  { %1845 = vmax.xlane.f32.xlu0 %v4979_v32  ;;  %1999 = vmatpush.bf16.msra.mxu3 %v1990_v31 }
 0xc2d   :  { %2000 = vmatpush.bf16.msra.mxu3 %v1989_v25 }
 0xc2e   :  { %v1810_v38 = vpop.f32.mrf.mxu0 }
 0xc2f   :  { %v4984_v34 = vadd.f32 %v4164_v39, %v1810_v38 }
 0xc31   :  { %1847 = vmax.xlane.f32.xlu1 %v4984_v34  ;;  %2001 = vmatpush.bf16.msra.mxu3 %v1988_v59 }
 0xc35   :  { %2002 = vmatpush.bf16.msra.mxu3 %v1987_v14 }
 0xc36   :  { %v1812_v45 = vpop.f32.mrf.mxu0 }
 0xc37   :  { %v4987_v7 = vadd.f32 %v4165_v55, %v1812_v45 }
 0xc39   :  { %1849 = vmax.xlane.f32.xlu2 %v4987_v7 }
 0xc3e   :  { %v1815_v24 = vpop.f32.mrf.mxu0 }
 0xc3f   :  { %v4990_v1 = vadd.f32 %v4166_v53, %v1815_v24  ;;  %v4171_v53 = vld [vmem:[#allocation10 + $0x68] sm:$0xff] }
 0xc41   :  { %1851 = vmax.xlane.f32.xlu2 %v4990_v1 }
 0xc46   :  { %v1817_v48 = vpop.f32.mrf.mxu0 }
 0xc47   :  { %v5007_v40 = vadd.f32 %v4167_v43, %v1817_v48 }
 0xc74   :  { %v1836_v51 = vpop.xlane.xlu1 %1835 }
 0xc75   :  { %v1867_v4 = vsub.f32 %v4948_v21, %v1836_v51  ;;  %v1820_v21 = vpop.f32.mrf.mxu0 }
 0xc77   :  { %v1883_v47 = vmul.f32 1.442695, %v1867_v4 }
 0xc79   :  { %4048 = vpow2.f32 %v1883_v47 }
 0xc7c   :  { %v1838_v22 = vpop.xlane.xlu2 %1837 }
 0xc7d   :  { %v1868_v17 = vsub.f32 %v4951_v27, %v1838_v22  ;;  %v1822_v27 = vpop.f32.mrf.mxu0 }
 0xc7e   :  { %v5030_v59 = vadd.f32 %v4169_v5, %v1822_v27 }
 0xc7f   :  { %v5003_v10 = vpop.eup %4048  ;;  %v1885_v52 = vmul.f32 1.442695, %v1868_v17 }
 0xc80   :  { %1915 = vadd.xlane.f32.xlu0 %v5003_v10 }
 0xc81   :  { %4050 = vpow2.f32 %v1885_v52 }
 0xc84   :  { %v1840_v33 = vpop.xlane.xlu0 %1839 }
 0xc85   :  { %v1869_v8 = vsub.f32 %v4962_v20, %v1840_v33  ;;  %v4168_v20 = vld [vmem:[#allocation10 + $0x50] sm:$0xff]  ;;  %v1825_v28 = vpop.f32.mrf.mxu0 }
 0xc86   :  { %v5020_v31 = vadd.f32 %v4168_v20, %v1820_v21  ;;  %v5037_v13 = vadd.f32 %v4170_v37, %v1825_v28 }
 0xc87   :  { %v5009_v18 = vpop.eup %4050  ;;  %v1887_v58 = vmul.f32 1.442695, %v1869_v8 }
 0xc88   :  { %1917 = vadd.xlane.f32.xlu1 %v5009_v18  ;;  %1853 = vmax.xlane.f32.xlu0 %v5007_v40 }
 0xc89   :  { %4052 = vpow2.f32 %v1887_v58 }
 0xc8c   :  { %v1842_v60 = vpop.xlane.xlu1 %1841 }
 0xc8d   :  { %v1870_v26 = vsub.f32 %v4965_v57, %v1842_v60 }
 0xc8f   :  { %v5022_v38 = vpop.eup %4052  ;;  %v1889_v39 = vmul.f32 1.442695, %v1870_v26 }
 0xc90   :  { %1919 = vadd.xlane.f32.xlu1 %v5022_v38  ;;  %1855 = vmax.xlane.f32.xlu0 %v5020_v31 }
 0xc91   :  { %4054 = vpow2.f32 %v1889_v39 }
 0xc94   :  { %v1844_v57 = vpop.xlane.xlu2 %1843 }
 0xc95   :  { %v1871_v41 = vsub.f32 %v4976_v15, %v1844_v57  ;;  %v1827_v15 = vpop.f32.mrf.mxu0 }
 0xc96   :  { %v5044_v0 = vadd.f32 %v4171_v53, %v1827_v15 }
 0xc97   :  { %v5032_v46 = vpop.eup %4054  ;;  %v1891_v25 = vmul.f32 1.442695, %v1871_v41 }
 0xc98   :  { %1921 = vadd.xlane.f32.xlu2 %v5032_v46  ;;  %1857 = vmax.xlane.f32.xlu1 %v5030_v59 }
 0xc99   :  { %4056 = vpow2.f32 %v1891_v25 }
 0xc9c   :  { %v1846_v44 = vpop.xlane.xlu0 %1845 }
 0xc9d   :  { %v1872_v45 = vsub.f32 %v4979_v32, %v1846_v44  ;;  %v1830_v61 = vpop.f32.mrf.mxu0 }
 0xc9e   :  { %v5051_v49 = vadd.f32 %v4172_v9, %v1830_v61 }
 0xc9f   :  { %v5039_v14 = vpop.eup %4056  ;;  %v1893_v55 = vmul.f32 1.442695, %v1872_v45 }
 0xca0   :  { %1923 = vadd.xlane.f32.xlu2 %v5039_v14  ;;  %1859 = vmax.xlane.f32.xlu1 %v5037_v13 }
 0xca1   :  { %4058 = vpow2.f32 %v1893_v55 }
 0xca4   :  { %v1848_v12 = vpop.xlane.xlu1 %1847 }
 0xca5   :  { %v1873_v24 = vsub.f32 %v4984_v34, %v1848_v12  ;;  %v1832_v30 = vpop.f32.mrf.mxu0 }
 0xca6   :  { %v5058_v16 = vadd.f32 %v4173_v11, %v1832_v30 }
 0xca7   :  { %v5046_v2 = vpop.eup %4058  ;;  %v1895_v32 = vmul.f32 1.442695, %v1873_v24 }
 0xca8   :  { %1925 = vadd.xlane.f32.xlu0 %v5046_v2  ;;  %1861 = vmax.xlane.f32.xlu2 %v5044_v0 }
 0xca9   :  { %4060 = vpow2.f32 %v1895_v32 }
 0xcac   :  { %v1850_v3 = vpop.xlane.xlu2 %1849 }
 0xcad   :  { %v1874_v23 = vsub.f32 %v4987_v7, %v1850_v3 }
 0xcaf   :  { %v5053_v19 = vpop.eup %4060  ;;  %v1897_v34 = vmul.f32 1.442695, %v1874_v23 }
 0xcb0   :  { %1927 = vadd.xlane.f32.xlu0 %v5053_v19  ;;  %1863 = vmax.xlane.f32.xlu2 %v5051_v49 }
 0xcb1   :  { %4062 = vpow2.f32 %v1897_v34 }
 0xcb4   :  { %v1852_v36 = vpop.xlane.xlu2 %1851 }
 0xcb5   :  { %v1875_v6 = vsub.f32 %v4990_v1, %v1852_v36 }
 0xcb7   :  { %v5060_v51 = vpop.eup %4062  ;;  %v1899_v7 = vmul.f32 1.442695, %v1875_v6 }
 0xcb8   :  { %1929 = vadd.xlane.f32.xlu1 %v5060_v51  ;;  %1865 = vmax.xlane.f32.xlu0 %v5058_v16 }
 0xcb9   :  { %4064 = vpow2.f32 %v1899_v7 }
 0xcbf   :  { %v5064_v62 = vpop.eup %4064 }
 0xcc0   :  { %1931 = vadd.xlane.f32.xlu1 %v5064_v62 }
 0xcf3   :  { %v1916_v4 = vpop.xlane.xlu0 %1915 }
 0xcf4   :  { %4066 = vrcp.f32 %v1916_v4 }
 0xcfa   :  { %v4067_v42 = vpop.eup %4066 }
 0xcfb   :  { %v1918_v47 = vpop.xlane.xlu1 %1917  ;;  %v1854_v48 = vpop.xlane.xlu0 %1853  ;;  %v1963_v56 = vmul.f32 %v4067_v42, %v5003_v10 }
 0xcfc   :  { %4068 = vrcp.f32 %v1918_v47  ;;  %v1876_v1 = vsub.f32 %v5007_v40, %v1854_v48 }
 0xcfe   :  { %v1901_v35 = vmul.f32 1.442695, %v1876_v1 }
 0xd00   :  { %4070 = vpow2.f32 %v1901_v35 }
 0xd02   :  { %v4069_v50 = vpop.eup %4068 }
 0xd03   :  { %v1964_v22 = vmul.f32 %v4069_v50, %v5009_v18  ;;  %v1920_v17 = vpop.xlane.xlu1 %1919  ;;  %v1856_v52 = vpop.xlane.xlu0 %1855 }
 0xd04   :  { %v1877_v21 = vsub.f32 %v5020_v31, %v1856_v52 }
 0xd05   :  { %v1979_v33 = vpack.c.bf16 %v1964_v22, %v1963_v56 }
 0xd06   :  { %v5071_v8 = vpop.eup %4070  ;;  %v1903_v43 = vmul.f32 1.442695, %v1877_v21 }
 0xd07   :  { %2003 = vmatmul.bf16.vlgmr.msra.gmra.mxu3 %v1979_v33  ;;  %1933 = vadd.xlane.f32.xlu2 %v5071_v8 }
 0xd08   :  { %4072 = vpow2.f32 %v1903_v43 }
 0xd09   :  { %4074 = vrcp.f32 %v1920_v17 }
 0xd0b   :  { %v1922_v40 = vpop.xlane.xlu2 %1921  ;;  %v1858_v58 = vpop.xlane.xlu1 %1857 }
 0xd0c   :  { %4076 = vrcp.f32 %v1922_v40  ;;  %v1878_v10 = vsub.f32 %v5030_v59, %v1858_v58 }
 0xd0e   :  { %v5075_v27 = vpop.eup %4072  ;;  %v1905_v18 = vmul.f32 1.442695, %v1878_v10 }
 0xd0f   :  { %1935 = vadd.xlane.f32.xlu0 %v5075_v27  ;;  %v4075_v60 = vpop.eup %4074 }
 0xd10   :  { %4078 = vpow2.f32 %v1905_v18  ;;  %v1965_v39 = vmul.f32 %v4075_v60, %v5022_v38 }
 0xd12   :  { %v4077_v26 = vpop.eup %4076 }
 0xd13   :  { %v1924_v20 = vpop.xlane.xlu2 %1923  ;;  %v1860_v31 = vpop.xlane.xlu1 %1859  ;;  %v1966_v57 = vmul.f32 %v4077_v26, %v5032_v46 }
 0xd14   :  { %v1879_v28 = vsub.f32 %v5037_v13, %v1860_v31 }
 0xd15   :  { %v1980_v41 = vpack.c.bf16 %v1966_v57, %v1965_v39 }
 0xd16   :  { %v5081_v5 = vpop.eup %4078  ;;  %v1907_v59 = vmul.f32 1.442695, %v1879_v28 }
 0xd17   :  { %2008 = vmatmul.bf16.gmra.mxu3 %v1980_v41  ;;  %1937 = vadd.xlane.f32.xlu1 %v5081_v5 }
 0xd18   :  { %4080 = vpow2.f32 %v1907_v59 }
 0xd19   :  { %4082 = vrcp.f32 %v1924_v20 }
 0xd1b   :  { %v1926_v25 = vpop.xlane.xlu0 %1925  ;;  %v1862_v44 = vpop.xlane.xlu2 %1861 }
 0xd1c   :  { %4084 = vrcp.f32 %v1926_v25  ;;  %v1880_v45 = vsub.f32 %v5044_v0, %v1862_v44 }
 0xd1e   :  { %v5085_v37 = vpop.eup %4080  ;;  %v1909_v38 = vmul.f32 1.442695, %v1880_v45 }
 0xd1f   :  { %1939 = vadd.xlane.f32.xlu2 %v5085_v37  ;;  %v4083_v46 = vpop.eup %4082 }
 0xd20   :  { %4086 = vpow2.f32 %v1909_v38  ;;  %v1967_v12 = vmul.f32 %v4083_v46, %v5039_v14 }
 0xd22   :  { %v4085_v13 = vpop.eup %4084 }
 0xd23   :  { %v1928_v15 = vpop.xlane.xlu0 %1927  ;;  %v1864_v55 = vpop.xlane.xlu2 %1863  ;;  %v1968_v24 = vmul.f32 %v4085_v13, %v5046_v2 }
 0xd24   :  { %v1881_v53 = vsub.f32 %v5051_v49, %v1864_v55 }
 0xd25   :  { %v1981_v32 = vpack.c.bf16 %v1968_v24, %v1967_v12 }
 0xd26   :  { %v4087_v61 = vpop.eup %4086  ;;  %v1911_v3 = vmul.f32 1.442695, %v1881_v53 }
 0xd27   :  { %2013 = vmatmul.bf16.gmra.mxu3 %v1981_v32  ;;  %1941 = vadd.xlane.f32.xlu0 %v4087_v61 }
 0xd28   :  { %4088 = vpow2.f32 %v1911_v3  ;;  %v3877_v3 = vld [vmem:[#allocation14 + $0x4b8] sm:$0xf0] }
 0xd29   :  { %4090 = vrcp.f32 %v1928_v15 }
 0xd2b   :  { %v1930_v0 = vpop.xlane.xlu1 %1929  ;;  %v1866_v23 = vpop.xlane.xlu0 %1865 }
 0xd2c   :  { %4092 = vrcp.f32 %v1930_v0  ;;  %v1882_v9 = vsub.f32 %v5058_v16, %v1866_v23  ;;  %v3471_v0 = vld [vmem:[#allocation14 + $0x498] sm:$0xf] }
 0xd2e   :  { %v4089_v34 = vpop.eup %4088  ;;  %v1913_v30 = vmul.f32 1.442695, %v1882_v9  ;;  %v3876_v9 = vld [vmem:[#allocation14 + $0x4a0] sm:$0xf0] }
 0xd2f   :  { %1943 = vadd.xlane.f32.xlu1 %v4089_v34  ;;  %v4091_v14 = vpop.eup %4090 }
 0xd30   :  { %4094 = vpow2.f32 %v1913_v30  ;;  %v1969_v49 = vmul.f32 %v4091_v14, %v5053_v19  ;;  %v3472_v30 = vor.u32 %v3876_v9, %v3471_v0  ;;  %v3467_v14 = vld [vmem:[#allocation14 + $0x480] sm:$0xf] }
 0xd31   :  { %v3483_v0 = vld [vmem:[#allocation14 + $0x4e0] sm:$0xf] }
 0xd32   :  { %v4093_v2 = vpop.eup %4092 }
 0xd33   :  { %v1970_v36 = vmul.f32 %v4093_v2, %v5060_v51  ;;  %v1932_v7 = vpop.xlane.xlu1 %1931  ;;  %v3875_v2 = vld [vmem:[#allocation14 + $0x488] sm:$0xf0] }
 0xd34   :  { %4096 = vrcp.f32 %v1932_v7 }
 0xd35   :  { %v1982_v6 = vpack.c.bf16 %v1970_v36, %v1969_v49  ;;  %v3468_v36 = vor.u32 %v3875_v2, %v3467_v14  ;;  %v3479_v14 = vld [vmem:[#allocation14 + $0x4c8] sm:$0xf]  ;;  %v3878_v2 = vld [vmem:[#allocation14 + $0x4d0] sm:$0xf0] }
 0xd36   :  { %v4095_v11 = vpop.eup %4094 }
 0xd37   :  { %2018 = vmatmul.bf16.gmra.mxu3 %v1982_v6  ;;  %1945 = vadd.xlane.f32.xlu2 %v4095_v11  ;;  %v3463_v6 = vld [vmem:[#allocation14 + $0x468] sm:$0xf] }
 0xd3a   :  { %v4097_v47 = vpop.eup %4096 }
 0xd3b   :  { %v1971_v48 = vmul.f32 %v4097_v47, %v5064_v62  ;;  %v3459_v47 = vld [vmem:[#allocation14 + $0x450] sm:$0xf] }
 0xd7a   :  { %v1934_v4 = vpop.xlane.xlu2 %1933 }
 0xd7b   :  { %4098 = vrcp.f32 %v1934_v4 }
 0xd81   :  { %v4099_v16 = vpop.eup %4098 }
 0xd82   :  { %v1972_v1 = vmul.f32 %v4099_v16, %v5071_v8  ;;  %v1936_v42 = vpop.xlane.xlu0 %1935  ;;  %v3873_v16 = vld [vmem:[#allocation14 + $0x458] sm:$0xf0] }
 0xd83   :  { %4100 = vrcp.f32 %v1936_v42  ;;  %v3455_v42 = vld [vmem:[#allocation14 + $0x438] sm:$0xf] }
 0xd84   :  { %v1983_v35 = vpack.c.bf16 %v1972_v1, %v1971_v48  ;;  %v3460_v1 = vor.u32 %v3873_v16, %v3459_v47  ;;  %v3892_v16 = vld [vmem:[#allocation14 + $0x620] sm:$0xf0] }
 0xd86   :  { %2023 = vmatmul.bf16.gmra.mxu3 %v1983_v35  ;;  %v4174_v35 = vld [vmem:[#allocation13] sm:$0xff] }
 0xd89   :  { %v4101_v50 = vpop.eup %4100 }
 0xd8a   :  { %v1938_v19 = vpop.xlane.xlu1 %1937  ;;  %v5096_v51 = vpop.f32.mrf.mxu3  ;;  %v1973_v17 = vmul.f32 %v4101_v50, %v5075_v27 }
 0xd8b   :  { %4102 = vrcp.f32 %v1938_v19  ;;  %v3872_v19 = vld [vmem:[#allocation14 + $0x440] sm:$0xf0] }
 0xd8c   :  { %v3456_v50 = vor.u32 %v3872_v19, %v3455_v42  ;;  %v3531_v19 = vld [vmem:[#allocation14 + $0x600] sm:$0xf] }
 0xd91   :  { %v4103_v56 = vpop.eup %4102 }
 0xd92   :  { %v5098_v22 = vpop.f32.mrf.mxu3  ;;  %v1974_v52 = vmul.f32 %v4103_v56, %v5081_v5  ;;  %v1940_v33 = vpop.xlane.xlu2 %1939  ;;  %v3451_v56 = vld [vmem:[#allocation14 + $0x420] sm:$0xf] }
 0xd93   :  { %v2044_v62 = vpack.c.bf16 %v5098_v22, %v5096_v51  ;;  %4104 = vrcp.f32 %v1940_v33  ;;  %v3870_v33 = vld [vmem:[#allocation14 + $0x410] sm:$0xf0]  ;;  %v2083_v51 = vld [vmem:[#allocation16 + $0x1a] ss:$0 sm:$0xff] }
 0xd94   :  { %v1984_v21 = vpack.c.bf16 %v1974_v52, %v1973_v17  ;;  %v3871_v17 = vld [vmem:[#allocation14 + $0x428] sm:$0xf0] }
 0xd95   :  { %v3452_v52 = vor.u32 %v3871_v17, %v3451_v56 }
 0xd96   :  { %2028 = vmatmul.bf16.gmra.mxu3 %v1984_v21  ;;  %v3447_v21 = vld [vmem:[#allocation14 + $0x408] sm:$0xf] }
 0xd99   :  { %v4105_v40 = vpop.eup %4104 }
 0xd9a   :  { %v5104_v8 = vpop.f32.mrf.mxu3  ;;  %v1942_v43 = vpop.xlane.xlu0 %1941  ;;  %v1975_v18 = vmul.f32 %v4105_v40, %v5085_v37 }
 0xd9b   :  { %4106 = vrcp.f32 %v1942_v43 }
 0xda1   :  { %v4107_v58 = vpop.eup %4106 }
 0xda2   :  { %v2011_v10 = vpop.f32.mrf.mxu3  ;;  %v1976_v60 = vmul.f32 %v4107_v58, %v4087_v61  ;;  %v1944_v20 = vpop.xlane.xlu1 %1943  ;;  %v3475_v61 = vld [vmem:[#allocation14 + $0x4b0] sm:$0xf] }
 0xda3   :  { %v2045_v27 = vpack.c.bf16 %v2011_v10, %v5104_v8  ;;  %4108 = vrcp.f32 %v1944_v20  ;;  %v3476_v23 = vor.u32 %v3877_v3, %v3475_v61  ;;  %v3448_v8 = vor.u32 %v3870_v33, %v3447_v21  ;;  %v3880_v61 = vld [vmem:[#allocation14 + $0x500] sm:$0xf0]  ;;  %v3527_v21 = vld [vmem:[#allocation14 + $0x5e8] sm:$0xf]  ;;  %v3890_v33 = vld [vmem:[#allocation14 + $0x5f0] sm:$0xf0] }
 0xda4   :  { %v1985_v26 = vpack.c.bf16 %v1976_v60, %v1975_v18 }
 0xda5   :  { %2132 = vmatpush.bf16.msra.mxu2 %v3476_v23  ;;  %v3879_v23 = vld [vmem:[#allocation14 + $0x4e8] sm:$0xf0] }
 0xda6   :  { %2033 = vmatmul.bf16.gmra.mxu3 %v1985_v26  ;;  %v3484_v9 = vor.u32 %v3879_v23, %v3483_v0 }
 0xda9   :  { %v4109_v57 = vpop.eup %4108  ;;  %2133 = vmatpush.bf16.msra.mxu2 %v3472_v30 }
 0xdaa   :  { %v2014_v31 = vpop.f32.mrf.mxu3  ;;  %v1946_v39 = vpop.xlane.xlu2 %1945  ;;  %v1977_v5 = vmul.f32 %v4109_v57, %v4089_v34 }
 0xdab   :  { %4110 = vrcp.f32 %v1946_v39 }
 0xdad   :  { %2134 = vmatpush.bf16.msra.mxu2 %v3468_v36  ;;  %v3480_v36 = vor.u32 %v3878_v2, %v3479_v14  ;;  %v3901_v14 = vld [vmem:[#allocation14 + $0x6f8] sm:$0xf0]  ;;  %v3567_v2 = vld [vmem:[#allocation14 + $0x6d8] sm:$0xf] }
 0xdb1   :  { %v4111_v28 = vpop.eup %4110 }
 0xdb2   :  { %v2016_v41 = vpop.f32.mrf.mxu3  ;;  %v1978_v59 = vmul.f32 %v4111_v28, %v4095_v11  ;;  %v3874_v11 = vld [vmem:[#allocation14 + $0x470] sm:$0xf0] }
 0xdb3   :  { %v2046_v25 = vpack.c.bf16 %v2016_v41, %v2014_v31  ;;  %v3464_v4 = vor.u32 %v3874_v11, %v3463_v6  ;;  %v3539_v6 = vld [vmem:[#allocation14 + $0x630] sm:$0xf]  ;;  %v3893_v11 = vld [vmem:[#allocation14 + $0x638] sm:$0xf0] }
 0xdb4   :  { %v1986_v44 = vpack.c.bf16 %v1978_v59, %v1977_v5  ;;  %v3885_v5 = vld [vmem:[#allocation14 + $0x578] sm:$0xf0]  ;;  %v3540_v47 = vor.u32 %v3893_v11, %v3539_v6  ;;  %v3563_v11 = vld [vmem:[#allocation14 + $0x6c0] sm:$0xf] }
 0xdb5   :  { %2135 = vmatpush.bf16.msra.mxu2 %v3464_v4 }
 0xdb6   :  { %2038 = vmatmul.bf16.gmra.mxu3 %v1986_v44  ;;  %v3884_v44 = vld [vmem:[#allocation14 + $0x560] sm:$0xf0] }
 0xdb9   :  { %2136 = vmatpush.bf16.msra.mxu2 %v3460_v1 }
 0xdba   :  { %v2019_v45 = vpop.f32.mrf.mxu3 }
 0xdbd   :  { %2137 = vmatpush.bf16.msra.mxu2 %v3456_v50  ;;  %v3891_v50 = vld [vmem:[#allocation14 + $0x608] sm:$0xf0] }
 0xdc1   :  { %2138 = vmatpush.bf16.msra.mxu2 %v3452_v52  ;;  %v3532_v52 = vor.u32 %v3891_v50, %v3531_v19  ;;  %v3551_v19 = vld [vmem:[#allocation14 + $0x678] sm:$0xf]  ;;  %v3896_v50 = vld [vmem:[#allocation14 + $0x680] sm:$0xf0] }
 0xdc2   :  { %v2021_v37 = vpop.f32.mrf.mxu3 }
 0xdc3   :  { %v2047_v48 = vpack.c.bf16 %v2021_v37, %v2019_v45  ;;  %v3499_v37 = vld [vmem:[#allocation14 + $0x540] sm:$0xf] }
 0xdc5   :  { %2139 = vmatpush.bf16.msra.mxu2 %v3448_v8 }
 0xe09   :  { %v2024_v38 = vpop.f32.mrf.mxu3 }
 0xe11   :  { %v2026_v46 = vpop.f32.mrf.mxu3 }
 0xe12   :  { %v2048_v7 = vpack.c.bf16 %v2026_v46, %v2024_v38  ;;  %v3883_v38 = vld [vmem:[#allocation14 + $0x548] sm:$0xf0] }
 0xe13   :  { %v3500_v46 = vor.u32 %v3883_v38, %v3499_v37  ;;  %v3519_v38 = vld [vmem:[#allocation14 + $0x5b8] sm:$0xf] }
 0xe19   :  { %v2029_v13 = vpop.f32.mrf.mxu3 }
 0xe21   :  { %v2031_v15 = vpop.f32.mrf.mxu3 }
 0xe22   :  { %v2049_v49 = vpack.c.bf16 %v2031_v15, %v2029_v13  ;;  %v3495_v13 = vld [vmem:[#allocation14 + $0x528] sm:$0xf]  ;;  %v3882_v15 = vld [vmem:[#allocation14 + $0x530] sm:$0xf0] }
 0xe29   :  { %v2034_v55 = vpop.f32.mrf.mxu3 }
 0xe31   :  { %v2036_v12 = vpop.f32.mrf.mxu3 }
 0xe32   :  { %v2050_v34 = vpack.c.bf16 %v2036_v12, %v2034_v55  ;;  %v3496_v55 = vor.u32 %v3882_v15, %v3495_v13  ;;  %v3491_v12 = vld [vmem:[#allocation14 + $0x510] sm:$0xf]  ;;  %v3515_v13 = vld [vmem:[#allocation14 + $0x5a0] sm:$0xf]  ;;  %v3887_v15 = vld [vmem:[#allocation14 + $0x5a8] sm:$0xf0] }
 0xe39   :  { %v2039_v24 = vpop.f32.mrf.mxu3 }
 0xe41   :  { %v2041_v53 = vpop.f32.mrf.mxu3 }
 0xe42   :  { %v2051_v32 = vpack.c.bf16 %v2041_v53, %v2039_v24  ;;  %v3881_v24 = vld [vmem:[#allocation14 + $0x518] sm:$0xf0] }
 0xe43   :  { %v3492_v53 = vor.u32 %v3881_v24, %v3491_v12  ;;  %v3511_v12 = vld [vmem:[#allocation14 + $0x588] sm:$0xf] }
 0xe44   :  { %2052 = vmatpush.bf16.msra.mxu1 %v2051_v32  ;;  %v3487_v32 = vld [vmem:[#allocation14 + $0x4f8] sm:$0xf] }
 0xe45   :  { %v3488_v3 = vor.u32 %v3880_v61, %v3487_v32  ;;  %v2211_v32 = vld [vmem:[#allocation16 + $0x1d] ss:$0 sm:$0xff] }
 0xe48   :  { %2053 = vmatpush.bf16.msra.mxu1 %v2050_v34 }
 0xe4c   :  { %2054 = vmatpush.bf16.msra.mxu1 %v2049_v49 }
 0xe50   :  { %2055 = vmatpush.bf16.msra.mxu1 %v2048_v7  ;;  %v3535_v7 = vld [vmem:[#allocation14 + $0x618] sm:$0xf] }
 0xe51   :  { %v3536_v1 = vor.u32 %v3892_v16, %v3535_v7  ;;  %v3899_v7 = vld [vmem:[#allocation14 + $0x6c8] sm:$0xf0]  ;;  %v3898_v16 = vld [vmem:[#allocation14 + $0x6b0] sm:$0xf0] }
 0xe54   :  { %2056 = vmatpush.bf16.msra.mxu1 %v2047_v48 }
 0xe58   :  { %2057 = vmatpush.bf16.msra.mxu1 %v2046_v25  ;;  %v3503_v25 = vld [vmem:[#allocation14 + $0x558] sm:$0xf] }
 0xe59   :  { %v3504_v45 = vor.u32 %v3884_v44, %v3503_v25  ;;  %v3523_v44 = vld [vmem:[#allocation14 + $0x5d0] sm:$0xf] }
 0xe5c   :  { %2058 = vmatpush.bf16.msra.mxu1 %v2045_v27 }
 0xe60   :  { %2059 = vmatpush.bf16.msra.mxu1 %v2044_v62 }
 0xe63   :  { %2060 = vmatmul.bf16.vlgmr.msra.gmra.mxu1 %v4174_v35 }
 0xe64   :  { %2342 = vmatpush.bf16.msrb.mxu1 %v3540_v47  ;;  %v3559_v47 = vld [vmem:[#allocation14 + $0x6a8] sm:$0xf] }
 0xe68   :  { %2343 = vmatpush.bf16.msrb.mxu1 %v3536_v1  ;;  %v3555_v1 = vld [vmem:[#allocation14 + $0x690] sm:$0xf] }
 0xe6c   :  { %2344 = vmatpush.bf16.msrb.mxu1 %v3532_v52  ;;  %v3895_v52 = vld [vmem:[#allocation14 + $0x668] sm:$0xf0] }
 0xee0   :  { %v2061_v43 = vpop.f32.mrf.mxu1 }
 0xee8   :  { %v2063_v40 = vpop.f32.mrf.mxu1 }
 0xee9   :  { %v2066_v58 = vpack.c.bf16 %v2063_v40, %v2061_v43  ;;  %v3528_v40 = vor.u32 %v3890_v33, %v3527_v21  ;;  %v2293_v21 = vld [vmem:[#allocation16 + $0x1e] ss:$0 sm:$0xff] }
 0xeeb   :  { %2140 = vmatmul.bf16.vlgmr.msra.gmra.mxu2 %v2066_v58  ;;  %2345 = vmatpush.bf16.msrb.mxu1 %v3528_v40  ;;  %v3894_v40 = vld [vmem:[#allocation14 + $0x650] sm:$0xf0] }
 0xf6e   :  { %v2141_v22 = vpop.f32.mrf.mxu2 }
 0xf6f   :  { %v2142_v62 = vadd.f32 %v2141_v22, %v2083_v51 }
 0xf71   :  { %v2146_v10 = vadd.f32 %v2142_v62, %v4843_v63 }
 0xf73   :  { %2150 = vadd.xlane.f32.xlu0 %v2146_v10 }
 0xf76   :  { %v2143_v18 = vpop.f32.mrf.mxu2 }
 0xf77   :  { %v2144_v60 = vadd.f32 %v2143_v18, %v2083_v51 }
 0xf79   :  { %v2147_v27 = vadd.f32 %v2144_v60, %v4845_v29  ;;  %v3507_v29 = vld [vmem:[#allocation14 + $0x570] sm:$0xf] }
 0xf7a   :  { %v3508_v59 = vor.u32 %v3885_v5, %v3507_v29 }
 0xf7b   :  { %2152 = vadd.xlane.f32.xlu1 %v2147_v27 }
 0xf7c   :  { %2260 = vmatpush.bf16.msra.mxu0 %v3508_v59 }
 0xf80   :  { %2261 = vmatpush.bf16.msra.mxu0 %v3504_v45  ;;  %v3889_v45 = vld [vmem:[#allocation14 + $0x5d8] sm:$0xf0] }
 0xf81   :  { %v3524_v37 = vor.u32 %v3889_v45, %v3523_v44  ;;  %v3625_v44 = vld [vmem:[#allocation14 + $0x864] sm:$0xf0] }
 0xf83   :  { %2346 = vmatpush.bf16.msrb.mxu1 %v3524_v37 }
 0xf84   :  { %2262 = vmatpush.bf16.msra.mxu0 %v3500_v46 }
 0xf88   :  { %2263 = vmatpush.bf16.msra.mxu0 %v3496_v55  ;;  %v3516_v55 = vor.u32 %v3887_v15, %v3515_v13  ;;  %v3599_v13 = vld [vmem:[#allocation14 + $0x810] sm:$0xf]  ;;  %v3925_v15 = vld [vmem:[#allocation14 + $0x818] sm:$0xf0] }
 0xf8c   :  { %2264 = vmatpush.bf16.msra.mxu0 %v3492_v53 }
 0xf90   :  { %2265 = vmatpush.bf16.msra.mxu0 %v3488_v3 }
 0xf94   :  { %2266 = vmatpush.bf16.msra.mxu0 %v3484_v9 }
 0xf98   :  { %2267 = vmatpush.bf16.msra.mxu0 %v3480_v36  ;;  %v3900_v36 = vld [vmem:[#allocation14 + $0x6e0] sm:$0xf0] }
 0xf99   :  { %v3568_v6 = vor.u32 %v3900_v36, %v3567_v2  ;;  %v3926_v2 = vld [vmem:[#allocation14 + $0x82c] sm:$0xf] }
 0xfe6   :  { %v2151_v26 = vpop.xlane.xlu0 %2150 }
 0xfe7   :  { %v2154_v20 = vmul.f32 %v2151_v26, %v4813_v54  ;;  %v2148_v26 = vld [vmem:[#allocation16 + $0x1b] ss:$0 sm:$0xff] }
 0xfe9   :  { %v5114_v31 = vsub.f32 %v2146_v10, %v2154_v20 }
 0xfeb   :  { %v2158_v39 = vmul.f32 %v5114_v31, %v5114_v31 }
 0xfed   :  { %2160 = vadd.xlane.f32.xlu2 %v2158_v39 }
 0xfee   :  { %v2153_v57 = vpop.xlane.xlu1 %2152 }
 0xfef   :  { %v2155_v28 = vmul.f32 %v2153_v57, %v4813_v54 }
 0xff1   :  { %v5119_v41 = vsub.f32 %v2147_v27, %v2155_v28 }
 0xff3   :  { %v2159_v63 = vmul.f32 %v5119_v41, %v5119_v41 }
 0xff5   :  { %2162 = vadd.xlane.f32.xlu0 %v2159_v63  ;;  %v2149_v63 = vld [vmem:[#allocation16 + $0x1c] ss:$0 sm:$0xff] }
0x1060   :  { %v2161_v34 = vpop.xlane.xlu2 %2160 }
0x1061   :  { %v2164_v30 = vmul.f32 %v2161_v34, %v4813_v54 }
0x1063   :  { %v2166_v49 = vadd.f32 1e-05, %v2164_v30  ;;  %v3571_v30 = vld [vmem:[#allocation14 + $0x6f0] sm:$0xf] }
0x1065   :  { %4112 = vrsqrt.f32 %v2166_v49  ;;  %vm2174_vm0 = vweird.f32 %v2166_v49 }
0x1068   :  { %v2163_v4 = vpop.xlane.xlu0 %2162 }
0x1069   :  { %v2165_v48 = vmul.f32 %v2163_v4, %v4813_v54  ;;  %v3564_v4 = vor.u32 %v3899_v7, %v3563_v11  ;;  %v3601_v11 = vld [vmem:[#allocation14 + $0x81c] sm:$0xf0] }
0x106b   :  { %v4113_v35 = vpop.eup %4112  ;;  %v2167_v42 = vadd.f32 1e-05, %v2165_v48  ;;  %v3560_v48 = vor.u32 %v3898_v16, %v3559_v47  ;;  %v3593_v47 = vld [vmem:[#allocation14 + $0x804] sm:$0xf0] }
0x106c   :  { %v2169_v56 = vmul.f32 %v4113_v35, %v2166_v49  ;;  %vm2175_vm15 = vweird.f32 %v4113_v35  ;;  %v3572_v49 = vor.u32 %v3901_v14, %v3571_v30  ;;  %v3617_v30 = vld [vmem:[#allocation14 + $0x84c] sm:$0xf0] }
0x106d   :  { %4114 = vrsqrt.f32 %v2167_v42  ;;  %vm2176_vm1 = vmor %vm2174_vm0, %vm2175_vm15  ;;  %vm2184_vm3 = vweird.f32 %v2167_v42 }
0x106e   :  { %v2170_v17 = vmul.f32 %v4113_v35, %v2169_v56  ;;  %2447 = vmatpush.bf16.msrb.mxu2 %v3572_v49  ;;  %v3552_v56 = vor.u32 %v3896_v50, %v3551_v19  ;;  %v3609_v49 = vld [vmem:[#allocation14 + $0x834] sm:$0xf0]  ;;  %v3917_v19 = vld [vmem:[#allocation14 + $0x7b8] sm:$0xf0]  ;;  %v3916_v50 = vld [vmem:[#allocation14 + $0x7b4] sm:$0xf] }
0x106f   :  { %v3612_v36 = vor.u32 %v3926_v2, %v3609_v49  ;;  %v3649_v49 = vld [vmem:[#allocation14 + $0x72c] sm:$0xf0] }
0x1070   :  { %v2171_v8 = vmul.f32 0.5, %v2170_v17  ;;  %v3547_v17 = vld [vmem:[#allocation14 + $0x660] sm:$0xf] }
0x1071   :  { %v3548_v33 = vor.u32 %v3895_v52, %v3547_v17  ;;  %v3697_v17 = vld [vmem:[#allocation14 + $0x7bc] sm:$0xf0]  ;;  %v3920_v52 = vld [vmem:[#allocation14 + $0x7e4] sm:$0xf] }
0x1072   :  { %v2172_v43 = vsub.f32 1.5, %v2171_v8  ;;  %2448 = vmatpush.bf16.msrb.mxu2 %v3568_v6  ;;  %v3924_v6 = vld [vmem:[#allocation14 + $0x814] sm:$0xf] }
0x1073   :  { %v4115_v58 = vpop.eup %4114  ;;  %v3604_v7 = vor.u32 %v3924_v6, %v3601_v11  ;;  %v3941_v6 = vld [vmem:[#allocation14 + $0x8d8] sm:$0xf0] }
0x1074   :  { %v2173_v51 = vmul.f32 %v4113_v35, %v2172_v43  ;;  %v2179_v22 = vmul.f32 %v4115_v58, %v2167_v42  ;;  %vm2185_vm2 = vweird.f32 %v4115_v58  ;;  %v3543_v43 = vld [vmem:[#allocation14 + $0x648] sm:$0xf] }
0x1075   :  { %vm2186_vm4 = vmor %vm2184_vm3, %vm2185_vm2  ;;  %vm2997_vm2 = vcmask 1041408  }
0x1076   :  { %v2180_v62 = vmul.f32 %v4115_v58, %v2179_v22  ;;  %v2177_v10 = vsel %vm2176_vm1, %v4113_v35, %v2173_v51  ;;  %2449 = vmatpush.bf16.msrb.mxu2 %v3564_v4  ;;  %v3897_v35 = vld [vmem:[#allocation14 + $0x698] sm:$0xf0]  ;;  %v3544_v22 = vor.u32 %v3894_v40, %v3543_v43  ;;  %v3687_v43 = vld [vmem:[#allocation14 + $0x798] sm:$0xf]  ;;  %v3915_v40 = vld [vmem:[#allocation14 + $0x7a0] sm:$0xf0] }
0x1077   :  { %v2188_v27 = vmul.f32 %v2177_v10, %v5114_v31  ;;  %v3888_v31 = vld [vmem:[#allocation14 + $0x5c0] sm:$0xf0]  ;;  %v3556_v42 = vor.u32 %v3897_v35, %v3555_v1  ;;  %v2380_v10 = vld [vmem:[#allocation5] sm:$0x3]  ;;  %v3922_v4 = vld [vmem:[#allocation14 + $0x7fc] sm:$0xf] }
0x1078   :  { %v2181_v18 = vmul.f32 0.5, %v2180_v62  ;;  %v3520_v46 = vor.u32 %v3888_v31, %v3519_v38  ;;  %v3607_v38 = vld [vmem:[#allocation14 + $0x828] sm:$0xf]  ;;  %v3927_v31 = vld [vmem:[#allocation14 + $0x830] sm:$0xf0]  ;;  %v3596_v16 = vor.u32 %v3922_v4, %v3593_v47 }
0x1079   :  { %v2190_v57 = vmul.f32 %v2188_v27, %v2148_v26  ;;  %v3933_v27 = vld [vmem:[#allocation14 + $0x878] sm:$0xf0]  ;;  %v3919_v1 = vld [vmem:[#allocation14 + $0x7d0] sm:$0xf0]  ;;  %v3639_v4 = vld [vmem:[#allocation14 + $0x708] sm:$0xf] }
0x107a   :  { %v2182_v60 = vsub.f32 1.5, %v2181_v18  ;;  %2347 = vmatpush.bf16.msrb.mxu1 %v3520_v46  ;;  %2450 = vmatpush.bf16.msrb.mxu2 %v3560_v48  ;;  %v2381_v18 = vpack.c.bf16 %v2380_v10, %v2380_v10  ;;  %v3608_v46 = vor.u32 %v3927_v31, %v3607_v38  ;;  %v3575_v48 = vld [vmem:[#allocation14 + $0x7c8] sm:$0xf]  ;;  %v3673_v38 = vld [vmem:[#allocation14 + $0x774] sm:$0xf0] }
0x107b   :  { %v2192_v5 = vadd.f32 %v2190_v57, %v2149_v63  ;;  %v3576_v35 = vor.u32 %v3919_v1, %v3575_v48  ;;  %v3903_v47 = vld [vmem:[#allocation14 + $0x710] sm:$0xf0]  ;;  %v3641_v1 = vld [vmem:[#allocation14 + $0x714] sm:$0xf0] }
0x107c   :  { %v2183_v20 = vmul.f32 %v4115_v58, %v2182_v60  ;;  %v3631_v60 = vld [vmem:[#allocation14 + $0x870] sm:$0xf]  ;;  %v3640_v48 = vor.u32 %v3903_v47, %v3639_v4 }
0x107e   :  { %v2187_v39 = vsel %vm2186_vm4, %v4115_v58, %v2183_v20  ;;  %2348 = vmatpush.bf16.msrb.mxu1 %v3516_v55  ;;  %2451 = vmatpush.bf16.msrb.mxu2 %v3556_v42  ;;  %v3632_v20 = vor.u32 %v3933_v27, %v3631_v60  ;;  %v3600_v55 = vor.u32 %v3925_v15, %v3599_v13  ;;  %v3695_v42 = vld [vmem:[#allocation14 + $0x7b0] sm:$0xf]  ;;  %v3909_v15 = vld [vmem:[#allocation14 + $0x758] sm:$0xf0] }
0x107f   :  { %v2189_v28 = vmul.f32 %v2187_v39, %v5119_v41  ;;  %v3886_v41 = vld [vmem:[#allocation14 + $0x590] sm:$0xf0]  ;;  %v3931_v39 = vld [vmem:[#allocation14 + $0x860] sm:$0xf0]  ;;  %v3663_v13 = vld [vmem:[#allocation14 + $0x750] sm:$0xf] }
0x1080   :  { %v3512_v24 = vor.u32 %v3886_v41, %v3511_v12  ;;  %2574 = vmatpush.bf16.msrb.mxu0 %v3632_v20  ;;  %v3591_v12 = vld [vmem:[#allocation14 + $0x7f8] sm:$0xf]  ;;  %v3923_v41 = vld [vmem:[#allocation14 + $0x800] sm:$0xf0] }
0x1081   :  { %v2191_v29 = vmul.f32 %v2189_v28, %v2148_v26  ;;  %v3623_v26 = vld [vmem:[#allocation14 + $0x858] sm:$0xf]  ;;  %v3615_v28 = vld [vmem:[#allocation14 + $0x840] sm:$0xf] }
0x1082   :  { %2349 = vmatpush.bf16.msrb.mxu1 %v3512_v24  ;;  %2452 = vmatpush.bf16.msrb.mxu2 %v3552_v56  ;;  %v3624_v57 = vor.u32 %v3931_v39, %v3623_v26  ;;  %v3592_v24 = vor.u32 %v3923_v41, %v3591_v12  ;;  %v3696_v56 = vor.u32 %v3917_v19, %v3695_v42  ;;  %v3577_v26 = vld [vmem:[#allocation14 + $0x7d4] sm:$0xf0]  ;;  %v3679_v39 = vld [vmem:[#allocation14 + $0x780] sm:$0xf]  ;;  %v3939_v42 = vld [vmem:[#allocation14 + $0x8c0] sm:$0xf0] }
0x1083   :  { %v2193_v59 = vadd.f32 %v2191_v29, %v2149_v63  ;;  %v3929_v63 = vld [vmem:[#allocation14 + $0x848] sm:$0xf0]  ;;  %v3932_v29 = vld [vmem:[#allocation14 + $0x874] sm:$0xf]  ;;  %v3664_v12 = vor.u32 %v3909_v15, %v3663_v13  ;;  %v3665_v41 = vld [vmem:[#allocation14 + $0x75c] sm:$0xf0] }
0x1084   :  { %2575 = vmatpush.bf16.msrb.mxu0 %v3624_v57  ;;  %v3616_v45 = vor.u32 %v3929_v63, %v3615_v28  ;;  %v3913_v57 = vld [vmem:[#allocation14 + $0x788] sm:$0xf0]  ;;  %v3912_v28 = vld [vmem:[#allocation14 + $0x784] sm:$0xf]  ;;  %v2357_v13 = vld [vmem:[#allocation16 + $0x30] ss:$0 sm:$0xff] }
0x1085   :  { %v2194_v25 = vpack.c.bf16 %v2193_v59, %v2192_v5  ;;  %v3633_v59 = vld [vmem:[#allocation14 + $0x87c] sm:$0xf0] }
0x1086   :  { %2453 = vmatpush.bf16.msrb.mxu2 %v3548_v33  ;;  %v3700_v33 = vor.u32 %v3916_v50, %v3697_v17  ;;  %v3711_v17 = vld [vmem:[#allocation14 + $0x8a0] sm:$0xf] }
0x1087   :  { %2268 = vmatmul.bf16.vlgmr.msra.gmra.mxu0 %v2194_v25  ;;  %v3930_v25 = vld [vmem:[#allocation14 + $0x85c] sm:$0xf] }
0x1088   :  { %v3628_v37 = vor.u32 %v3930_v25, %v3625_v44  ;;  %2576 = vmatpush.bf16.msrb.mxu0 %v3616_v45  ;;  %v3671_v25 = vld [vmem:[#allocation14 + $0x768] sm:$0xf]  ;;  %v3911_v44 = vld [vmem:[#allocation14 + $0x770] sm:$0xf0]  ;;  %v3910_v45 = vld [vmem:[#allocation14 + $0x76c] sm:$0xf] }
0x108a   :  { %2454 = vmatpush.bf16.msrb.mxu2 %v3544_v22  ;;  %v3689_v22 = vld [vmem:[#allocation14 + $0x7a4] sm:$0xf0] }
0x108c   :  { %2577 = vmatpush.bf16.msrb.mxu0 %v3608_v46  ;;  %v3676_v46 = vor.u32 %v3910_v45, %v3673_v38  ;;  %v2356_v38 = vld [vmem:[#allocation16 + $0x1f] ss:$0 sm:$0xff] }
0x108d   :  { %2455 = vmatmul.bf16.vlgmr.msrb.gmra.mxu2 %v2381_v18  ;;  %v3918_v18 = vld [vmem:[#allocation14 + $0x7cc] sm:$0xf] }
0x108e   :  { %2683 = vmatpush.bf16.msra.mxu2 %v3696_v56  ;;  %v3580_v20 = vor.u32 %v3918_v18, %v3577_v26  ;;  %v3936_v26 = vld [vmem:[#allocation14 + $0x8a4] sm:$0xf] }
0x1090   :  { %2578 = vmatpush.bf16.msrb.mxu0 %v3600_v55  ;;  %v3908_v55 = vld [vmem:[#allocation14 + $0x754] sm:$0xf] }
0x1094   :  { %2579 = vmatpush.bf16.msrb.mxu0 %v3592_v24  ;;  %v3668_v24 = vor.u32 %v3908_v55, %v3665_v41 }
0x1104   :  { %v2269_v53 = vpop.f32.mrf.mxu0 }
0x1105   :  { %v2270_v61 = vadd.f32 %v2269_v53, %v2211_v32  ;;  %v3583_v53 = vld [vmem:[#allocation14 + $0x7e0] sm:$0xf] }
0x1107   :  { %v2274_v23 = vmax.f32 %v2270_v61, 0.0 }
0x110c   :  { %v2271_v3 = vpop.f32.mrf.mxu0 }
0x110d   :  { %v2272_v0 = vadd.f32 %v2271_v3, %v2211_v32  ;;  %v3921_v32 = vld [vmem:[#allocation14 + $0x7e8] sm:$0xf0] }
0x110e   :  { %v3584_v61 = vor.u32 %v3921_v32, %v3583_v53  ;;  %v3655_v53 = vld [vmem:[#allocation14 + $0x738] sm:$0xf]  ;;  %v3907_v32 = vld [vmem:[#allocation14 + $0x740] sm:$0xf0] }
0x110f   :  { %v2275_v9 = vmax.f32 %v2272_v0, 0.0 }
0x1110   :  { %2580 = vmatpush.bf16.msrb.mxu0 %v3584_v61  ;;  %v2456_v10 = vpop.f32.mrf.mxu2  ;;  %v3906_v61 = vld [vmem:[#allocation14 + $0x73c] sm:$0xf] }
0x1111   :  { %v2276_v34 = vpack.c.bf16 %v2275_v9, %v2274_v23 }
0x1113   :  { %2350 = vmatmul.bf16.vlgmr.msrb.gmra.mxu1 %v2276_v34  ;;  %v3928_v34 = vld [vmem:[#allocation14 + $0x844] sm:$0xf] }
0x1114   :  { %v3620_v14 = vor.u32 %v3928_v34, %v3617_v30  ;;  %2581 = vmatpush.bf16.msrb.mxu0 %v3576_v35  ;;  %v3647_v34 = vld [vmem:[#allocation14 + $0x720] sm:$0xf]  ;;  %v3905_v30 = vld [vmem:[#allocation14 + $0x728] sm:$0xf0]  ;;  %v3719_v35 = vld [vmem:[#allocation14 + $0x8b8] sm:$0xf] }
0x1115   :  { %v3648_v2 = vor.u32 %v3905_v30, %v3647_v34  ;;  %v3720_v50 = vor.u32 %v3939_v42, %v3719_v35  ;;  %v2792_v34 = vld [vmem:[#allocation16 + $0x32] ss:$8 sm:$0x3] }
0x1116   :  { %v2795_v4 = vperm.slane %v2792_v34, 1 }
0x1118   :  { %2696 = vmatpush.bf16.msra.mxu0 %v3700_v33  ;;  %v2458_v31 = vpop.f32.mrf.mxu2 }
0x1190   :  { %v2351_v8 = vpop.f32.mrf.mxu1 }
0x1191   :  { %v2352_v58 = vadd.f32 %v2351_v8, %v2293_v21  ;;  %v3585_v21 = vld [vmem:[#allocation14 + $0x7ec] sm:$0xf0] }
0x1192   :  { %v3588_v8 = vor.u32 %v3920_v52, %v3585_v21  ;;  %v3937_v52 = vld [vmem:[#allocation14 + $0x8a8] sm:$0xf0]  ;;  %v3940_v21 = vld [vmem:[#allocation14 + $0x8d4] sm:$0xf] }
0x1193   :  { %v2355_v51 = vadd.f32 %v2352_v58, %v2192_v5  ;;  %v3636_v5 = vor.u32 %v3932_v29, %v3633_v59  ;;  %v3914_v58 = vld [vmem:[#allocation14 + $0x79c] sm:$0xf]  ;;  %v3680_v29 = vor.u32 %v3913_v57, %v3679_v39  ;;  %v3681_v59 = vld [vmem:[#allocation14 + $0x78c] sm:$0xf0]  ;;  %v3934_v57 = vld [vmem:[#allocation14 + $0x88c] sm:$0xf] }
0x1194   :  { %v3692_v60 = vor.u32 %v3914_v58, %v3689_v22  ;;  %v3935_v58 = vld [vmem:[#allocation14 + $0x890] sm:$0xf0]  ;;  %v3938_v22 = vld [vmem:[#allocation14 + $0x8bc] sm:$0xf] }
0x1195   :  { %2358 = vadd.xlane.f32.xlu1 %v2355_v51  ;;  %2587 = vmatpush.bf16.msra.mxu1 %v3636_v5  ;;  %v3684_v5 = vor.u32 %v3912_v28, %v3681_v59  ;;  %v3705_v28 = vld [vmem:[#allocation14 + $0x894] sm:$0xf0] }
0x1196   :  { %2697 = vmatpush.bf16.msra.mxu0 %v3692_v60  ;;  %v3708_v59 = vor.u32 %v3934_v57, %v3705_v28 }
0x1198   :  { %v2353_v62 = vpop.f32.mrf.mxu1 }
0x1199   :  { %2588 = vmatpush.bf16.msra.mxu1 %v3628_v37  ;;  %v2398_v62 = vld [vmem:[#allocation16 + $0x31] ss:$0 sm:$0xff]  ;;  %v3672_v37 = vor.u32 %v3911_v44, %v3671_v25  ;;  %v2844_v44 = vld [vmem:[#allocation8] sm:$0x3] }
0x119a   :  { %v2457_v27 = vadd.f32 %v2456_v10, %v2398_v62  ;;  %2698 = vmatpush.bf16.msra.mxu0 %v3684_v5  ;;  %v3721_v62 = vld [vmem:[#allocation14 + $0x8c4] sm:$0xf0]  ;;  %2846 = vrot.lane.b32.xlu0 %v2844_v44, %s4465_s17  ;;  %v3747_v44 = vld [vmem:[#allocation14 + $0x918] sm:$0xf] }
0x119b   :  { %v3724_v60 = vor.u32 %v3938_v22, %v3721_v62  ;;  %v2819_v62 = vld [vmem:[#allocation16 + $0x35] ss:$0 sm:$0xff] }
0x119c   :  { %v2477_v63 = vpack.c.bf16 %v2457_v27, %v2457_v27  ;;  %v2709_v27 = vld [vmem:[#allocation7] sm:$0x3]  ;;  %vm2820_vm14 = vcmp.gt.f32.partialorder %v2819_v62, 0.5 }
0x119d   :  { %2589 = vmatpush.bf16.msra.mxu1 %v3620_v14  ;;  %v3904_v14 = vld [vmem:[#allocation14 + $0x724] sm:$0xf]  ;;  %v2710_v39 = vpack.c.bf16 %v2709_v27, %v2709_v27 }
0x119e   :  { %2582 = vmatmul.bf16.vlgmr.msrb.gmra.mxu0 %v2477_v63  ;;  %v3652_v11 = vor.u32 %v3904_v14, %v3649_v49 }
0x119f   :  { %2699 = vmatpush.bf16.msra.mxu0 %v3676_v46 }
0x11a1   :  { %2590 = vmatpush.bf16.msra.mxu1 %v3612_v36  ;;  %v3727_v36 = vld [vmem:[#allocation14 + $0x8d0] sm:$0xf] }
0x11a3   :  { %2700 = vmatpush.bf16.msra.mxu0 %v3668_v24 }
0x11a5   :  { %2591 = vmatpush.bf16.msra.mxu1 %v3604_v7  ;;  %v3728_v7 = vor.u32 %v3941_v6, %v3727_v36 }
0x11a9   :  { %2592 = vmatpush.bf16.msra.mxu1 %v3596_v16  ;;  %v3902_v16 = vld [vmem:[#allocation14 + $0x70c] sm:$0xf] }
0x11aa   :  { %v3644_v19 = vor.u32 %v3902_v16, %v3641_v1 }
0x11ad   :  { %2593 = vmatpush.bf16.msra.mxu1 %v3588_v8  ;;  %v3712_v8 = vor.u32 %v3937_v52, %v3711_v17 }
0x11b1   :  { %2594 = vmatpush.bf16.msra.mxu1 %v3580_v20  ;;  %v3713_v20 = vld [vmem:[#allocation14 + $0x8ac] sm:$0xf0] }
0x11b4   :  { %2595 = vmatmul.bf16.vlgmr.msra.gmra.mxu1 %v2477_v63 }
0x11b5   :  { %2767 = vmatpush.bf16.msrb.mxu1 %v3728_v7 }
0x11b9   :  { %2768 = vmatpush.bf16.msrb.mxu1 %v3720_v50 }
0x11bd   :  { %2769 = vmatpush.bf16.msrb.mxu1 %v3712_v8 }
0x1208   :  { %v2359_v3 = vpop.xlane.xlu1 %2358 }
0x1209   :  { %v2360_v0 = vmul.f32 %v2359_v3, %v4813_v54  ;;  %v3656_v3 = vor.u32 %v3907_v32, %v3655_v53 }
0x120b   :  { %v5128_v23 = vsub.f32 %v2355_v51, %v2360_v0  ;;  %v3688_v51 = vor.u32 %v3915_v40, %v3687_v43  ;;  %v3657_v0 = vld [vmem:[#allocation14 + $0x744] sm:$0xf0]  ;;  %v3729_v43 = vld [vmem:[#allocation14 + $0x8dc] sm:$0xf0] }
0x120c   :  { %v3703_v40 = vld [vmem:[#allocation14 + $0x888] sm:$0xf] }
0x120d   :  { %v2362_v9 = vmul.f32 %v5128_v23, %v5128_v23  ;;  %2684 = vmatpush.bf16.msra.mxu2 %v3688_v51  ;;  %v3732_v51 = vor.u32 %v3940_v21, %v3729_v43  ;;  %v3704_v18 = vor.u32 %v3935_v58, %v3703_v40 }
0x120f   :  { %2363 = vadd.xlane.f32.xlu2 %v2362_v9  ;;  %v3660_v9 = vor.u32 %v3906_v61, %v3657_v0  ;;  %2770 = vmatpush.bf16.msrb.mxu1 %v3704_v18 }
0x1211   :  { %2685 = vmatpush.bf16.msra.mxu2 %v3680_v29  ;;  %2701 = vmatpush.bf16.msra.mxu0 %v3660_v9 }
0x1212   :  { %3733 = vmatmul.msk.bf16.vlgmr.msrb.gmra.mxu1 %vm2759_vm5, %v2710_v39 }
0x1215   :  { %2686 = vmatpush.bf16.msra.mxu2 %v3672_v37  ;;  %2702 = vmatpush.bf16.msra.mxu0 %v3652_v11 }
0x1219   :  { %2687 = vmatpush.bf16.msra.mxu2 %v3664_v12  ;;  %2703 = vmatpush.bf16.msra.mxu0 %v3644_v19 }
0x121b   :  { %v2583_v24 = vpop.f32.mrf.mxu0 }
0x121d   :  { %2688 = vmatpush.bf16.msra.mxu2 %v3656_v3  ;;  %2780 = vmatpush.bf16.msrb.mxu0 %v3732_v51 }
0x1221   :  { %2689 = vmatpush.bf16.msra.mxu2 %v3648_v2  ;;  %2781 = vmatpush.bf16.msrb.mxu0 %v3724_v60 }
0x1223   :  { %v2585_v32 = vpop.f32.mrf.mxu0 }
0x1225   :  { %2690 = vmatpush.bf16.msra.mxu2 %v3640_v48 }
0x1231   :  { %v2596_v53 = vpop.f32.mrf.mxu1 }
0x1239   :  { %v2598_v61 = vpop.f32.mrf.mxu1 }
0x1282   :  { %v2364_v56 = vpop.xlane.xlu2 %2363 }
0x1283   :  { %v2365_v33 = vmul.f32 %v2364_v56, %v4813_v54  ;;  %v3716_v54 = vor.u32 %v3936_v26, %v3713_v20 }
0x1285   :  { %v2366_v10 = vadd.f32 1e-05, %v2365_v33  ;;  %2782 = vmatpush.bf16.msrb.mxu0 %v3716_v54 }
0x1287   :  { %4116 = vrsqrt.f32 %v2366_v10  ;;  %vm2373_vm7 = vweird.f32 %v2366_v10 }
0x1289   :  { %2783 = vmatpush.bf16.msrb.mxu0 %v3708_v59 }
0x128d   :  { %v4117_v63 = vpop.eup %4116 }
0x128e   :  { %v2368_v29 = vmul.f32 %v4117_v63, %v2366_v10  ;;  %vm2374_vm6 = vweird.f32 %v4117_v63 }
0x128f   :  { %vm2375_vm8 = vmor %vm2373_vm7, %vm2374_vm6  ;;  %v2772_v3 = vpop.f32.mrf.mxu1 }
0x1290   :  { %v2369_v5 = vmul.f32 %v4117_v63, %v2368_v29 }
0x1292   :  { %v2370_v25 = vmul.f32 0.5, %v2369_v5  ;;  %v3751_v5 = vld [vmem:[#allocation14 + $0x930] sm:$0xf] }
0x1294   :  { %v2371_v45 = vsub.f32 1.5, %v2370_v25  ;;  %v3945_v25 = vld [vmem:[#allocation14 + $0x938] sm:$0xf0] }
0x1296   :  { %v2372_v37 = vmul.f32 %v4117_v63, %v2371_v45  ;;  %v3752_v45 = vor.u32 %v3945_v25, %v3751_v5 }
0x1297   :  { %v2774_v0 = vpop.f32.mrf.mxu1 }
0x1298   :  { %v2376_v31 = vsel %vm2375_vm8, %v4117_v63, %v2372_v37  ;;  %v3944_v37 = vld [vmem:[#allocation14 + $0x920] sm:$0xf0]  ;;  %2908 = vmatpush.bf16.msra.mxu1 %v3752_v45 }
0x1299   :  { %v2377_v46 = vmul.f32 %v2376_v31, %v5128_v23  ;;  %v2794_v23 = vperm.slane %v2792_v34, 0  ;;  %v3743_v31 = vld [vmem:[#allocation14 + $0x900] sm:$0xf]  ;;  %v3953_v34 = vld [vmem:[#allocation14 + $0x9f8] sm:$0xf0] }
0x129b   :  { %v2378_v15 = vmul.f32 %v2377_v46, %v2356_v38  ;;  %v3748_v38 = vor.u32 %v3944_v37, %v3747_v44  ;;  %v3943_v46 = vld [vmem:[#allocation14 + $0x908] sm:$0xf0] }
0x129d   :  { %v2379_v55 = vadd.f32 %v2378_v15, %v2357_v13  ;;  %2909 = vmatpush.bf16.msra.mxu1 %v3748_v38  ;;  %v3744_v13 = vor.u32 %v3943_v46, %v3743_v31  ;;  %v3739_v15 = vld [vmem:[#allocation14 + $0x8e8] sm:$0xf] }
0x129f   :  { %v2460_v12 = vpack.c.bf16 %v2379_v55, %v2379_v55  ;;  %v3942_v55 = vld [vmem:[#allocation14 + $0x8f0] sm:$0xf0] }
0x12a1   :  { %v2601_v41 = vrot.slane %v2460_v12, 3  ;;  %2910 = vmatpush.bf16.msra.mxu1 %v3744_v13  ;;  %v3740_v12 = vor.u32 %v3942_v55, %v3739_v15 }
0x12a3   :  { %2691 = vmatmul.bf16.vlgmr.msra.gmra.mxu2 %v2601_v41  ;;  %2704 = vmatmul.bf16.vlgmr.msra.gmra.mxu0 %v2601_v41  ;;  %v2847_v41 = vpop.permute.xlu0 %2846 }
0x12a5   :  { %2911 = vmatpush.bf16.msra.mxu1 %v3740_v12 }
0x12b3   :  { %3734 = vmatmul.msk.bf16.vlgmr.msrb.gmra.mxu0 %vm2759_vm5, %v2710_v39 }
0x1320   :  { %v2705_v9 = vpop.f32.mrf.mxu0 }
0x1321   :  { %v2706_v7 = vadd.f32 %v2705_v9, %v2596_v53  ;;  %v3784_v9 = vld [vmem:[#allocation14 + $0x9f0] sm:$0xf] }
0x1326   :  { %v2692_v30 = vpop.f32.mrf.mxu2 }
0x1327   :  { %v2693_v14 = vadd.f32 %v2692_v30, %v2583_v24  ;;  %v3780_v30 = vld [vmem:[#allocation14 + $0x9d8] sm:$0xf] }
0x1328   :  { %v2707_v2 = vpop.f32.mrf.mxu0 }
0x1329   :  { %v2789_v49 = vadd.f32 %v2772_v3, %v2693_v14  ;;  %v3785_v14 = vor.u32 %v3953_v34, %v3784_v9 }
0x132b   :  { %v2798_v36 = vadd.f32 %v2794_v23, %v2789_v49  ;;  %v3952_v23 = vld [vmem:[#allocation14 + $0x9e0] sm:$0xf0]  ;;  %2984 = vmatpush.bf16.msrb.mxu2 %v3785_v14  ;;  %v3776_v49 = vld [vmem:[#allocation14 + $0x9c0] sm:$0xf] }
0x132c   :  { %v3781_v2 = vor.u32 %v3952_v23, %v3780_v30 }
0x132d   :  { %v3735_v6 = vmul.f32 -1.442695, %v2798_v36  ;;  %v3951_v36 = vld [vmem:[#allocation14 + $0x9c8] sm:$0xf0] }
0x132e   :  { %v2694_v11 = vpop.f32.mrf.mxu2 }
0x132f   :  { %4118 = vpow2.f32 %v3735_v6  ;;  %2985 = vmatpush.bf16.msrb.mxu2 %v3781_v2  ;;  %v3777_v6 = vor.u32 %v3951_v36, %v3776_v49 }
0x1330   :  { %v2785_v47 = vpop.f32.mrf.mxu0 }
0x1331   :  { %v2790_v16 = vadd.f32 %v2785_v47, %v2706_v7  ;;  %v3772_v7 = vld [vmem:[#allocation14 + $0x9a8] sm:$0xf] }
0x1333   :  { %v2799_v48 = vadd.f32 %v2795_v4, %v2790_v16  ;;  %v3950_v4 = vld [vmem:[#allocation14 + $0x9b0] sm:$0xf0]  ;;  %2986 = vmatpush.bf16.msrb.mxu2 %v3777_v6  ;;  %v3768_v16 = vld [vmem:[#allocation14 + $0x990] sm:$0xf] }
0x1334   :  { %v3773_v47 = vor.u32 %v3950_v4, %v3772_v7 }
0x1335   :  { %v4119_v1 = vpop.eup %4118  ;;  %v3736_v35 = vmul.f32 -1.442695, %v2799_v48 }
0x1336   :  { %v2803_v42 = vadd.f32 1.0, %v4119_v1 }
0x1337   :  { %4120 = vpow2.f32 %v3736_v35  ;;  %2987 = vmatpush.bf16.msrb.mxu2 %v3773_v47  ;;  %v3764_v35 = vld [vmem:[#allocation14 + $0x978] sm:$0xf] }
0x1338   :  { %4122 = vrcp.f32 %v2803_v42  ;;  %v2787_v19 = vpop.f32.mrf.mxu0  ;;  %v2815_v22 = vand.u32 2147483648, %v2803_v42  ;;  %vm2809_vm11 = vweird.f32 %v2803_v42  ;;  %v2813_v60 = vand.u32 2147483647, %v2803_v42 }
0x133a   :  { %v2816_v39 = vor.u32 1.1754944e-38, %v2815_v22  ;;  %vm2814_vm1 = vcmp.eq.f32.partialorder %v2813_v60, 8.507059e+37 }
0x133d   :  { %v4121_v50 = vpop.eup %4120 }
0x133e   :  { %v4123_v56 = vpop.eup %4122  ;;  %v2827_v17 = vadd.f32 1.0, %v4121_v50 }
0x133f   :  { %v2805_v52 = vmul.f32 %v4123_v56, %v2803_v42  ;;  %vm2810_vm9 = vweird.f32 %v4123_v56  ;;  %v3948_v42 = vld [vmem:[#allocation14 + $0x980] sm:$0xf0] }
0x1340   :  { %4124 = vrcp.f32 %v2827_v17  ;;  %v2839_v51 = vand.u32 2147483648, %v2827_v17  ;;  %v2837_v18 = vand.u32 2147483647, %v2827_v17  ;;  %vm2811_vm12 = vmor %vm2809_vm11, %vm2810_vm9  ;;  %vm2833_vm13 = vweird.f32 %v2827_v17 }
0x1341   :  { %v2806_v21 = vsub.f32 1.0, %v2805_v52  ;;  %4126 = vtanh.f32 %v2799_v48  ;;  %v3949_v48 = vld [vmem:[#allocation14 + $0x998] sm:$0xf0]  ;;  %v3765_v19 = vor.u32 %v3948_v42, %v3764_v35  ;;  %v3947_v52 = vld [vmem:[#allocation14 + $0x968] sm:$0xf0] }
0x1342   :  { %v2840_v20 = vor.u32 1.1754944e-38, %v2839_v51  ;;  %vm2838_vm0 = vcmp.eq.f32.partialorder %v2837_v18, 8.507059e+37  ;;  %v3769_v1 = vor.u32 %v3949_v48, %v3768_v16  ;;  %v2935_v18 = vld [vmem:[#allocation16 + $0x34] ss:$0 sm:$0xff] }
0x1343   :  { %v2807_v8 = vmul.f32 %v4123_v56, %v2806_v21 }
0x1344   :  { %2988 = vmatpush.bf16.msrb.mxu2 %v3769_v1 }
0x1345   :  { %v2808_v58 = vadd.f32 %v4123_v56, %v2807_v8  ;;  %v3946_v8 = vld [vmem:[#allocation14 + $0x950] sm:$0xf0] }
0x1346   :  { %v4125_v33 = vpop.eup %4124 }
0x1347   :  { %v2829_v43 = vmul.f32 %v4125_v33, %v2827_v17  ;;  %vm2834_vm10 = vweird.f32 %v4125_v33  ;;  %v2812_v26 = vsel %vm2811_vm12, %v4123_v56, %v2808_v58  ;;  %v4127_v57 = vpop.eup %4126  ;;  %v3760_v17 = vld [vmem:[#allocation14 + $0x960] sm:$0xf] }
0x1348   :  { %vm2835_vm15 = vmor %vm2833_vm13, %vm2834_vm10  ;;  %v2817_v63 = vsel %vm2814_vm1, %v2816_v39, %v2812_v26  ;;  %2989 = vmatpush.bf16.msrb.mxu2 %v3765_v19  ;;  %v3761_v21 = vor.u32 %v3947_v52, %v3760_v17 }
0x1349   :  { %v2830_v40 = vsub.f32 1.0, %v2829_v43  ;;  %v2849_v24 = vmul.f32 %v2847_v41, %v2817_v63 }
0x134b   :  { %v2831_v10 = vmul.f32 %v4125_v33, %v2830_v40  ;;  %v2873_v40 = vld [vmem:[#allocation16 + $0x33] ss:$0 sm:$0xff] }
0x134c   :  { %2990 = vmatpush.bf16.msrb.mxu2 %v3761_v21 }
0x134d   :  { %v2832_v27 = vadd.f32 %v4125_v33, %v2831_v10 }
0x134f   :  { %v2836_v54 = vsel %vm2835_vm15, %v4125_v33, %v2832_v27  ;;  %v3756_v33 = vld [vmem:[#allocation14 + $0x948] sm:$0xf] }
0x1350   :  { %v2841_v28 = vsel %vm2838_vm0, %v2840_v20, %v2836_v54  ;;  %v3757_v43 = vor.u32 %v3946_v8, %v3756_v33 }
0x1351   :  { %v2843_v29 = vsel %vm2820_vm14, %v4127_v57, %v2841_v28 }
0x1352   :  { %v2850_v59 = vmul.f32 %v2843_v29, %v2817_v63  ;;  %2991 = vmatpush.bf16.msrb.mxu2 %v3757_v43 }
0x1354   :  { %2852 = vrot.lane.b32.xlu1 %v2850_v59, %s4465_s17 }
0x13c6   :  { %v2853_v53 = vpop.permute.xlu1 %2852 }
0x13c7   :  { %v2855_v32 = vadd.f32 %v2853_v53, %v2849_v24 }
0x13c9   :  { %4128 = vtanh.f32 %v2855_v32 }
0x13cf   :  { %v4129_v61 = vpop.eup %4128 }
0x13d0   :  { %v2857_v3 = vmul.f32 %v4129_v61, %v2843_v29 }
0x13d2   :  { %2859 = vrot.lane.b32.xlu1 %v2857_v3, %s4465_s17  ;;  %v2864_v0 = vpack.c.bf16 %v2857_v3, %v2857_v3 }
0x13d4   :  { %2875 = vrot.lane.b32.xlu2 %v2864_v0, %s4465_s17  ;;  %s3039_s17 = sshll.u32 %s4471_s6, 4  ;;  %s3040_s17 = int_to_ptr.vmem [resolvable:$true] %s3039_s17 }
0x142e   :  { %v2876_v11 = vpop.permute.xlu2 %2875 }
0x142f   :  { %3753 = vmatmul.msk.bf16.vlgmr.msra.gmra.mxu1 %vm2759_vm5, %v2876_v11 }
0x1444   :  { %v2860_v50 = vpop.permute.xlu1 %2859 }
0x1445   :  { %v2862_v56 = vsel %vm2759_vm5, %v2860_v50, %v2855_v32 }
0x1446   :  { %2863 = vst [vmem:[#allocation18] sm:$0x3] %v2862_v56 }
0x1447   :  { %3044 = dma.vmem_to_hbm [thread:$0]  %s3040_s17, 32, %s3042_s26, [#allocation19]  }
0x14ac   :  { %v2913_v58 = vpop.f32.mrf.mxu1 }
0x14ad   :  { %v2914_v51 = vadd.f32 %v2913_v58, %v2873_v40 }
0x14af   :  { %v2917_v22 = vmax.f32 %v2914_v51, 0.0 }
0x14b1   :  { %v2918_v62 = vpack.c.bf16 %v2917_v22, %v2917_v22 }
0x14b3   :  { %2992 = vmatmul.bf16.vlgmr.msrb.gmra.mxu2 %v2918_v62 }
0x14b4   :  { %v2915_v10 = vpop.f32.mrf.mxu1 }
0x1536   :  { %v2993_v60 = vpop.f32.mrf.mxu2 }
0x1537   :  { %v2994_v27 = vadd.f32 %v2993_v60, %v2935_v18 }
0x1539   :  { %v2998_v26 = vsel %vm2997_vm2, %v2994_v27, -inf }
0x153a   :  { %2999 = vmax.xlane.f32.xlu0 %v2998_v26 }
0x153e   :  { %v2995_v20 = vpop.f32.mrf.mxu2 }
0x15ad   :  { %v3000_v39 = vpop.xlane.xlu0 %2999 }
0x15ae   :  { %v3001_v54 = vsub.f32 %v2994_v27, %v3000_v39 }
0x15b0   :  { %v3002_v57 = vmul.f32 1.442695, %v3001_v54 }
0x15b2   :  { %4130 = vpow2.f32 %v3002_v57 }
0x15b8   :  { %v4131_v28 = vpop.eup %4130 }
0x15b9   :  { %v3004_v63 = vsel %vm2997_vm2, %v4131_v28, 0.0 }
0x15ba   :  { %3005 = vadd.xlane.f32.xlu2 %v3004_v63 }
0x162d   :  { %v3006_v29 = vpop.xlane.xlu2 %3005 }
0x162e   :  { %4132 = vrcp.f32 %v3006_v29  ;;  %v3018_v44 = vand.u32 2147483648, %v3006_v29  ;;  %v3016_v37 = vand.u32 2147483647, %v3006_v29  ;;  %vm3012_vm4 = vweird.f32 %v3006_v29 }
0x1630   :  { %v3019_v31 = vor.u32 1.1754944e-38, %v3018_v44  ;;  %vm3017_vm6 = vcmp.eq.f32.partialorder %v3016_v37, 8.507059e+37 }
0x1634   :  { %v4133_v59 = vpop.eup %4132 }
0x1635   :  { %v3008_v5 = vmul.f32 %v4133_v59, %v3006_v29  ;;  %vm3013_vm3 = vweird.f32 %v4133_v59 }
0x1636   :  { %vm3014_vm5 = vmor %vm3012_vm4, %vm3013_vm3 }
0x1637   :  { %v3009_v25 = vsub.f32 1.0, %v3008_v5 }
0x1639   :  { %v3010_v45 = vmul.f32 %v4133_v59, %v3009_v25 }
0x163b   :  { %v3011_v38 = vadd.f32 %v4133_v59, %v3010_v45 }
0x163d   :  { %v3015_v46 = vsel %vm3014_vm5, %v4133_v59, %v3011_v38 }
0x163e   :  { %v3020_v13 = vsel %vm3017_vm6, %v3019_v31, %v3015_v46 }
0x163f   :  { %v3021_v15 = vmul.f32 %v4131_v28, %v3020_v13 }
0x1641   :  { %3022 = vst [vmem:[#allocation17] sm:$0x3] %v3021_v15 }
0x1642   :  { %3033 = dma.vmem_to_hbm [thread:$0]  %s3029_s28, 32, %s3031_s1, [#allocation4]  }
0x1643   :  { %4449 = dma.done.wait [#allocation4], 32  }
0x1644   :  { %4450 = vsyncadd [#allocation4], 4294967264 }
0x1645   :  { %4451 = dma.done.wait [#allocation19], 32  }
0x1646   :  { %4452 = vsyncadd [#allocation19], 4294967264 }
0x1647   :  { %3053 = vsyncpa [#allocation3], 1 }
0x1648   :  { %3054 = vsyncpa [#allocation6], 1 }
0x1649   :  { %3055 = vsyncpa [#allocation9], 1 }
0x164a   :  { %3056 = vsyncpa [#allocation12], 1 }
0x164b   :  { %3057 = vsyncpa [#allocation15], 1 }
0x164c   :  { %3058 = vsyncpa [#allocation4], 1 }
0x164d   :  { %3059 = vsyncpa [#allocation19], 1 }

</bundles_post_ra>
